<compile_context>
chip_gen: v5e
topology: v5e:2x2
jax: 0.10.0
libtpu: 0.0.40
codegen_flags: <defaults>
</compile_context>

<pallas_src>
import math
import numpy as np

import jax
import jax.numpy as jnp
from jax import lax
from jax.experimental import pallas as pl
from jax.experimental.pallas import tpu as pltpu

# ----------------------------- config (small) --------------------------------
B = 2          # batch_size
S = 64         # seq_len
DIM = 128      # dim
HEADS = 4
HEAD_DIM = DIM // HEADS            # 32
L_CMP = 8
STRIDE = 4
L_SLC = 16
L_WIN = 16
TOP_K = 2

KV_CMP_LEN = (S - L_CMP) // STRIDE + 1     # 15
LC_PAD = 16                                # 15 padded to a sublane multiple
KV_SLC_LEN = S // L_SLC                    # 4
KL = TOP_K * L_SLC                         # 32
assert KV_SLC_LEN > TOP_K
SCALE = 1.0 / math.sqrt(HEAD_DIM)

N_PROJ = 3 * DIM                           # 384 (q,k,v)
N_ALL = ((N_PROJ + 3 + 127) // 128) * 128  # 512 (q,k,v,gate, zero pad)
N_PAD = N_ALL - N_PROJ - 3                 # 125


# --------------------------- constant structures -------------------------------
def _build_sel_matrix():
    # p_t_slc[..., j] = sum over (m, n) of p_t_cmp[..., m_max*j + m + n]
    m_max = L_SLC // STRIDE
    n_max = L_CMP // STRIDE
    M = np.zeros((LC_PAD, KV_SLC_LEN), np.float32)   # padded row 15 stays 0
    for j in range(KV_SLC_LEN):
        for m in range(m_max):
            for n in range(n_max):
                idx = m_max * j + m + n
                if 0 <= idx < KV_CMP_LEN:
                    M[idx, j] += 1.0
    return M


def _build_band_onehot():
    # one-hot (LC_PAD, S, L_CMP): band[i, i*STRIDE + t, t] = 1  (padded row 15 = 0)
    Bnd = np.zeros((LC_PAD, S, L_CMP), np.float32)
    for i in range(KV_CMP_LEN):
        for t in range(L_CMP):
            Bnd[i, i * STRIDE + t, t] = 1.0
    return Bnd


M_SEL_NP = _build_sel_matrix()
BAND_ONEHOT_NP = _build_band_onehot()


# ------------------------------ kernels ---------------------------------------
def _softmax_lastdim(s):
    m = jnp.max(s, axis=-1, keepdims=True)
    p = jnp.exp(s - m)
    return p / jnp.sum(p, axis=-1, keepdims=True)


def _proj_kernel(x_ref, w_ref, b_ref, o_ref):
    acc = jnp.dot(x_ref[...], w_ref[...], preferred_element_type=jnp.float32)
    o_ref[...] = (acc + b_ref[...]).astype(o_ref.dtype)


def qkv_gate_proj(x2d, w_all, b_all):
    """Single-block fused (x @ [W_qkv | W_gate | 0]) + bias, grid=(1,)."""
    M, K = x2d.shape
    N = w_all.shape[1]
    return pl.pallas_call(
        _proj_kernel,
        out_shape=jax.ShapeDtypeStruct((M, N), x2d.dtype),
        grid=(1,),
        in_specs=[
            pl.BlockSpec((M, K), lambda i: (0, 0)),
            pl.BlockSpec((K, N), lambda i: (0, 0)),
            pl.BlockSpec((1, N), lambda i: (0, 0)),
        ],
        out_specs=pl.BlockSpec((M, N), lambda i: (0, 0)),
        compiler_params=pltpu.CompilerParams(
            dimension_semantics=("arbitrary",)),
    )(x2d, w_all, b_all.reshape(1, N))


def _nsa_attn_kernel(q_ref, k_ref, v_ref, wkb_ref, wvb_ref, msel_ref, bias_ref,
                     cmp_ref, win_ref, pslc_ref):
    # blocks: q/k/v (1,S,DIM); wkb/wvb (LC_PAD,S); msel (LC_PAD,KV_SLC_LEN); bias SMEM (2,)
    q = q_ref[0]                  # (S, D)
    k = k_ref[0]
    v = v_ref[0]
    wkb = wkb_ref[...]            # (LC_PAD, S) banded compression weights
    wvb = wvb_ref[...]
    msel = msel_ref[...]          # (LC_PAD, KV_SLC_LEN)

    # ---- fused strided-window kv compression: one banded matmul each ----
    k_cmp = jnp.dot(wkb, k, preferred_element_type=jnp.float32) + bias_ref[0]  # (LC_PAD, D)
    v_cmp = jnp.dot(wvb, v, preferred_element_type=jnp.float32) + bias_ref[1]

    # ---- masks (shared across heads) ----
    rc = lax.broadcasted_iota(jnp.int32, (S, LC_PAD), 0)
    cc = lax.broadcasted_iota(jnp.int32, (S, LC_PAD), 1)
    cmp_allowed = (cc < rc) & (cc < KV_CMP_LEN)        # tril(diag=-1), pad col excluded

    rw = lax.broadcasted_iota(jnp.int32, (S, S), 0)
    cw = lax.broadcasted_iota(jnp.int32, (S, S), 1)
    win_allowed = (cw <= rw) & (cw >= rw - L_WIN)

    lane = lax.broadcasted_iota(jnp.int32, (1, DIM), 1)
    head_row = lax.broadcasted_iota(jnp.int32, (HEADS, 1), 0)

    dn = (((1,), (1,)), ((), ()))   # contract last dims, no batch

    cmp_acc = jnp.zeros((S, DIM), jnp.float32)
    win_acc = jnp.zeros((S, DIM), jnp.float32)
    pslc_acc = jnp.zeros((HEADS, KV_SLC_LEN), jnp.float32)

    for h in range(HEADS):        # static unrolled loop -> back-to-back MXU pushes
        m_h = ((lane >= h * HEAD_DIM) & (lane < (h + 1) * HEAD_DIM)).astype(jnp.float32)
        qh = q * m_h              # zero out other heads' features (exact)
        kh = k * m_h
        vh = v * m_h
        kch = k_cmp * m_h
        vch = v_cmp * m_h

        # ---- compressed attention ----
        s_c = lax.dot_general(qh, kch, dn, preferred_element_type=jnp.float32) * SCALE
        s_c = jnp.where(cmp_allowed, s_c, -jnp.inf)
        p_c = _softmax_lastdim(s_c)                    # row 0 -> NaN (matches reference)
        cmp_acc = cmp_acc + jnp.dot(p_c, vch, preferred_element_type=jnp.float32)

        # block-selection scores: only the last query row is ever consumed
        p_last = jnp.sum(jnp.where(rc == (S - 1), p_c, 0.0), axis=0, keepdims=True)  # (1,LC_PAD)
        pslc_h = jnp.dot(p_last, msel, preferred_element_type=jnp.float32)           # (1,KV_SLC_LEN)
        pslc_acc = pslc_acc + (head_row == h).astype(jnp.float32) * pslc_h

        # ---- sliding-window causal attention ----
        s_w = lax.dot_general(qh, kh, dn, preferred_element_type=jnp.float32) * SCALE
        s_w = jnp.where(win_allowed, s_w, -jnp.inf)
        p_w = _softmax_lastdim(s_w)
        win_acc = win_acc + jnp.dot(p_w, vh, preferred_element_type=jnp.float32)

    # lane-dense (S, 128) stores
    cmp_ref[0] = cmp_acc.astype(cmp_ref.dtype)
    win_ref[0] = win_acc.astype(win_ref.dtype)
    pslc_ref[0] = pslc_acc.astype(pslc_ref.dtype)


def nsa_attention(q, k, v, wk_band, wv_band, m_sel, cmp_bias):
    Bn = q.shape[0]
    return pl.pallas_call(
        _nsa_attn_kernel,
        out_shape=(jax.ShapeDtypeStruct((Bn, S, DIM), q.dtype),
                   jax.ShapeDtypeStruct((Bn, S, DIM), q.dtype),
                   jax.ShapeDtypeStruct((Bn, HEADS, KV_SLC_LEN), jnp.float32)),
        grid=(Bn,),
        in_specs=[
            pl.BlockSpec((1, S, DIM), lambda b_: (b_, 0, 0)),
            pl.BlockSpec((1, S, DIM), lambda b_: (b_, 0, 0)),
            pl.BlockSpec((1, S, DIM), lambda b_: (b_, 0, 0)),
            pl.BlockSpec((LC_PAD, S), lambda b_: (0, 0)),
            pl.BlockSpec((LC_PAD, S), lambda b_: (0, 0)),
            pl.BlockSpec((LC_PAD, KV_SLC_LEN), lambda b_: (0, 0)),
            pl.BlockSpec(memory_space=pltpu.MemorySpace.SMEM),
        ],
        out_specs=(pl.BlockSpec((1, S, DIM), lambda b_: (b_, 0, 0)),
                   pl.BlockSpec((1, S, DIM), lambda b_: (b_, 0, 0)),
                   pl.BlockSpec((1, HEADS, KV_SLC_LEN), lambda b_: (b_, 0, 0))),
        compiler_params=pltpu.CompilerParams(
            dimension_semantics=("parallel",)),   # B=2 -> both v7x TensorCores
    )(q, k, v, wk_band, wv_band, m_sel, cmp_bias)


def _cls_attn_kernel(q_ref, k_ref, v_ref, o_ref):
    # blocks: q (1,H,hd); K/V (1,KL,hd); out (1,H,hd) -- single query position
    qh = q_ref[0]     # (H, hd)
    Kb = k_ref[0]     # (KL, hd)   shared across heads (already head-summed)
    Vb = v_ref[0]
    dn = (((1,), (1,)), ((), ()))
    s = lax.dot_general(qh, Kb, dn, preferred_element_type=jnp.float32) * SCALE  # (H, KL)
    p = _softmax_lastdim(s)
    o = jnp.dot(p, Vb, preferred_element_type=jnp.float32)                       # (H, hd)
    o_ref[0] = o.astype(o_ref.dtype)


def cls_attention_last(q_last, K_slc, V_slc):
    Bn = q_last.shape[0]
    return pl.pallas_call(
        _cls_attn_kernel,
        out_shape=jax.ShapeDtypeStruct((Bn, HEADS, HEAD_DIM), q_last.dtype),
        grid=(Bn,),
        in_specs=[
            pl.BlockSpec((1, HEADS, HEAD_DIM), lambda b_: (b_, 0, 0)),
            pl.BlockSpec((1, KL, HEAD_DIM), lambda b_: (b_, 0, 0)),
            pl.BlockSpec((1, KL, HEAD_DIM), lambda b_: (b_, 0, 0)),
        ],
        out_specs=pl.BlockSpec((1, HEADS, HEAD_DIM), lambda b_: (b_, 0, 0)),
        compiler_params=pltpu.CompilerParams(dimension_semantics=("parallel",)),
    )(q_last, K_slc, V_slc)


# -------------------------- forward (orchestration) ---------------------------
def nsa_forward(x, params):
    Bn, Sn, D = x.shape

    # ---- fused QKV + gate projection (single-block Pallas matmul) ----
    w_all = jnp.concatenate(
        [params['w_attn'], params['w_gate'], jnp.zeros((D, N_PAD), x.dtype)], axis=1)
    b_all = jnp.concatenate(
        [params['b_attn'], params['b_gate'], jnp.zeros((N_PAD,), x.dtype)])
    proj = qkv_gate_proj(x.reshape(Bn * Sn, D), w_all, b_all).reshape(Bn, Sn, N_ALL)
    q = proj[..., 0:D]
    k = proj[..., D:2 * D]
    v = proj[..., 2 * D:3 * D]
    gate = proj[..., 3 * D:3 * D + 3]

    # ---- tiny banded compression weights (built once per call in JAX) ----
    band = jnp.asarray(BAND_ONEHOT_NP)
    wk_band = jnp.einsum('t,ist->is', params['w_kcmp'], band)     # (LC_PAD, S)
    wv_band = jnp.einsum('t,ist->is', params['w_vcmp'], band)
    cmp_bias = jnp.stack([params['b_kcmp'][0], params['b_vcmp'][0]])  # (2,) scalars -> SMEM

    # ---- fused compressed + window attention (kv compression & p@M_sel inside) ----
    cmp_attn, win_attn, p_slc_last = nsa_attention(
        q, k, v, wk_band, wv_band, jnp.asarray(M_SEL_NP), cmp_bias)

    # ---- selected-block attention ----
    # The reference writes inside `for i in range(seq_len)` to the stale index
    # `j` (= kv_slc_len - 1), so only query position S-1 survives, stored at row
    # kv_slc_len-1.  Therefore only that position's top-k / gather / attention is
    # computed.  (top-k + data-dependent gather stay in plain JAX glue.)
    _, idx = lax.top_k(p_slc_last, TOP_K)                          # (B, H, K)
    pos = (idx[..., None] * L_SLC + jnp.arange(L_SLC)).reshape(Bn, HEADS, KL)
    b_idx = jnp.arange(Bn)[:, None, None]
    h_idx = jnp.arange(HEADS)[None, :, None]
    k4 = k.reshape(Bn, Sn, HEADS, HEAD_DIM)
    v4 = v.reshape(Bn, Sn, HEADS, HEAD_DIM)
    K_slc = k4[b_idx, pos, h_idx].sum(axis=1)                      # (B, KL, hd) head-summed
    V_slc = v4[b_idx, pos, h_idx].sum(axis=1)

    q_last = q[:, Sn - 1, :].reshape(Bn, HEADS, HEAD_DIM)
    cls_last = cls_attention_last(q_last, K_slc, V_slc).reshape(Bn, D)
    cls_attn = jnp.zeros((Bn, Sn, D), x.dtype).at[:, KV_SLC_LEN - 1, :].set(cls_last)

    # ---- gate fusion (elementwise glue; XLA fuses into one op) ----
    o_fused = (gate[..., 0:1] * cmp_attn
               + gate[..., 1:2] * cls_attn
               + gate[..., 2:3] * win_attn)
    return o_fused


# --------------------------------- main ---------------------------------------
if __name__ == "__main__":
    key = jax.random.PRNGKey(0)
    ks = jax.random.split(key, 10)

    def uinit(k_, shape, fan_in):
        bound = 1.0 / math.sqrt(fan_in)
        return jax.random.uniform(k_, shape, jnp.float32, -bound, bound)

    params = {
        'w_attn': uinit(ks[0], (DIM, 3 * DIM), DIM),
        'b_attn': uinit(ks[1], (3 * DIM,), DIM),
        'w_kcmp': uinit(ks[2], (L_CMP,), L_CMP),
        'b_kcmp': uinit(ks[3], (1,), L_CMP),
        'w_vcmp': uinit(ks[4], (L_CMP,), L_CMP),
        'b_vcmp': uinit(ks[5], (1,), L_CMP),
        'w_gate': uinit(ks[6], (DIM, 3), DIM),
        'b_gate': uinit(ks[7], (3,), DIM),
    }
    x = jax.random.normal(ks[8], (B, S, DIM), jnp.float32)

    out = jax.jit(nsa_forward)(x, params)
    out = jax.block_until_ready(out)
    assert out.shape == (B, S, DIM)
    # (row 0 is NaN by construction, matching the reference's all-masked cmp row)
    print("KERNEL_OK")
</pallas_src>

<mosaic_0001>
module attributes {stable_mosaic.version = 11 : i64} {
  func.func @_proj_kernel(%arg0: i32, %arg1: memref<128x128xf32, #tpu.memory_space<vmem>>, %arg2: memref<128x512xf32, #tpu.memory_space<vmem>>, %arg3: memref<1x512xf32, #tpu.memory_space<vmem>>, %arg4: memref<128x512xf32, #tpu.memory_space<vmem>>) attributes {dimension_semantics = [#tpu.dimension_semantics<arbitrary>], iteration_bounds = array<i64: 1>, scalar_prefetch = 0 : i64, scratch_operands = 0 : i64, tpu.core_type = #tpu.core_type<tc>, window_params = [{pipeline_mode = #tpu.pipeline_mode<synchronous>, transform_indices = @transform_0, window_bounds = array<i64: 128, 128>}, {pipeline_mode = #tpu.pipeline_mode<synchronous>, transform_indices = @transform_1, window_bounds = array<i64: 128, 512>}, {pipeline_mode = #tpu.pipeline_mode<synchronous>, transform_indices = @transform_2, window_bounds = array<i64: 1, 512>}, {pipeline_mode = #tpu.pipeline_mode<synchronous>, transform_indices = @transform_3, window_bounds = array<i64: 128, 512>}]} {
    %c0 = arith.constant 0 : index
    %c0_0 = arith.constant 0 : index
    %0 = vector.load %arg1[%c0, %c0_0] : memref<128x128xf32, #tpu.memory_space<vmem>>, vector<128x128xf32>
    %c0_1 = arith.constant 0 : index
    %c0_2 = arith.constant 0 : index
    %1 = vector.load %arg2[%c0_1, %c0_2] : memref<128x512xf32, #tpu.memory_space<vmem>>, vector<128x512xf32>
    %cst = arith.constant dense<0.000000e+00> : vector<128x512xf32>
    %2 = tpu.matmul %0, %1, %cst {dimension_numbers = #tpu.dot_dimension_numbers<[1], [0], [0], [1], [0, 0, 1, 1], [], []>} : vector<128x128xf32>, vector<128x512xf32>, vector<128x512xf32> -> vector<128x512xf32>
    %c0_3 = arith.constant 0 : index
    %c0_4 = arith.constant 0 : index
    %3 = vector.load %arg3[%c0_3, %c0_4] : memref<1x512xf32, #tpu.memory_space<vmem>>, vector<1x512xf32>
    %4 = vector.broadcast %3 : vector<1x512xf32> to vector<128x512xf32>
    %5 = arith.addf %2, %4 : vector<128x512xf32>
    %c0_5 = arith.constant 0 : index
    %c0_6 = arith.constant 0 : index
    %6 = vector.load %arg4[%c0_5, %c0_6] : memref<128x512xf32, #tpu.memory_space<vmem>>, vector<128x512xf32>
    tpu.vector_store %arg4[%c0_5, %c0_6], %5 {strides = array<i32>} : memref<128x512xf32, #tpu.memory_space<vmem>>, vector<128x512xf32>,
    return
  }
  func.func @transform_0(%arg0: i32) -> (i32, i32) {
    %c0_i32 = arith.constant 0 : i32
    %c0_i32_0 = arith.constant 0 : i32
    %c0_i32_1 = arith.constant 0 : i32
    return %c0_i32, %c0_i32_0 : i32, i32
  }
  func.func @transform_1(%arg0: i32) -> (i32, i32) {
    %c0_i32 = arith.constant 0 : i32
    %c0_i32_0 = arith.constant 0 : i32
    %c0_i32_1 = arith.constant 0 : i32
    return %c0_i32, %c0_i32_0 : i32, i32
  }
  func.func @transform_2(%arg0: i32) -> (i32, i32) {
    %c0_i32 = arith.constant 0 : i32
    %c0_i32_0 = arith.constant 0 : i32
    %c0_i32_1 = arith.constant 0 : i32
    return %c0_i32, %c0_i32_0 : i32, i32
  }
  func.func @transform_3(%arg0: i32) -> (i32, i32) {
    %c0_i32 = arith.constant 0 : i32
    %c0_i32_0 = arith.constant 0 : i32
    %c0_i32_1 = arith.constant 0 : i32
    return %c0_i32, %c0_i32_0 : i32, i32
  }
}

module attributes {stable_mosaic.version = 11 : i64} {
  func.func @_nsa_attn_kernel(%arg0: i32, %arg1: memref<1x64x128xf32, #tpu.memory_space<vmem>>, %arg2: memref<1x64x128xf32, #tpu.memory_space<vmem>>, %arg3: memref<1x64x128xf32, #tpu.memory_space<vmem>>, %arg4: memref<16x64xf32, #tpu.memory_space<vmem>>, %arg5: memref<16x64xf32, #tpu.memory_space<vmem>>, %arg6: memref<16x4xf32, #tpu.memory_space<vmem>>, %arg7: memref<2xf32, #tpu.memory_space<smem>>, %arg8: memref<1x64x128xf32, #tpu.memory_space<vmem>>, %arg9: memref<1x64x128xf32, #tpu.memory_space<vmem>>, %arg10: memref<1x4x4xf32, #tpu.memory_space<vmem>>) attributes {dimension_semantics = [#tpu.dimension_semantics<parallel>], iteration_bounds = array<i64: 2>, scalar_prefetch = 0 : i64, scratch_operands = 0 : i64, tpu.core_type = #tpu.core_type<tc>, window_params = [{transform_indices = @transform_0, window_bounds = array<i64: 1, 64, 128>}, {transform_indices = @transform_1, window_bounds = array<i64: 1, 64, 128>}, {transform_indices = @transform_2, window_bounds = array<i64: 1, 64, 128>}, {pipeline_mode = #tpu.pipeline_mode<synchronous>, transform_indices = @transform_3, window_bounds = array<i64: 16, 64>}, {pipeline_mode = #tpu.pipeline_mode<synchronous>, transform_indices = @transform_4, window_bounds = array<i64: 16, 64>}, {pipeline_mode = #tpu.pipeline_mode<synchronous>, transform_indices = @transform_5, window_bounds = array<i64: 16, 4>}, {transform_indices = @transform_6, window_bounds = array<i64: 2>}, {transform_indices = @transform_7, window_bounds = array<i64: 1, 64, 128>}, {transform_indices = @transform_8, window_bounds = array<i64: 1, 64, 128>}, {transform_indices = @transform_9, window_bounds = array<i64: 1, 4, 4>}]} {
    %c0 = arith.constant 0 : index
    %c0_0 = arith.constant 0 : index
    %c0_1 = arith.constant 0 : index
    %0 = vector.load %arg1[%c0, %c0_0, %c0_1] : memref<1x64x128xf32, #tpu.memory_space<vmem>>, vector<1x64x128xf32>
    %1 = vector.shape_cast %0 : vector<1x64x128xf32> to vector<64x128xf32>
    %c0_2 = arith.constant 0 : index
    %c0_3 = arith.constant 0 : index
    %c0_4 = arith.constant 0 : index
    %2 = vector.load %arg2[%c0_2, %c0_3, %c0_4] : memref<1x64x128xf32, #tpu.memory_space<vmem>>, vector<1x64x128xf32>
    %3 = vector.shape_cast %2 : vector<1x64x128xf32> to vector<64x128xf32>
    %c0_5 = arith.constant 0 : index
    %c0_6 = arith.constant 0 : index
    %c0_7 = arith.constant 0 : index
    %4 = vector.load %arg3[%c0_5, %c0_6, %c0_7] : memref<1x64x128xf32, #tpu.memory_space<vmem>>, vector<1x64x128xf32>
    %5 = vector.shape_cast %4 : vector<1x64x128xf32> to vector<64x128xf32>
    %c0_8 = arith.constant 0 : index
    %c0_9 = arith.constant 0 : index
    %6 = vector.load %arg4[%c0_8, %c0_9] : memref<16x64xf32, #tpu.memory_space<vmem>>, vector<16x64xf32>
    %c0_10 = arith.constant 0 : index
    %c0_11 = arith.constant 0 : index
    %7 = vector.load %arg5[%c0_10, %c0_11] : memref<16x64xf32, #tpu.memory_space<vmem>>, vector<16x64xf32>
    %c0_12 = arith.constant 0 : index
    %c0_13 = arith.constant 0 : index
    %8 = vector.load %arg6[%c0_12, %c0_13] : memref<16x4xf32, #tpu.memory_space<vmem>>, vector<16x4xf32>
    %cst = arith.constant dense<0.000000e+00> : vector<16x128xf32>
    %9 = tpu.matmul %6, %3, %cst {dimension_numbers = #tpu.dot_dimension_numbers<[1], [0], [0], [1], [0, 0, 1, 1], [], []>} : vector<16x64xf32>, vector<64x128xf32>, vector<16x128xf32> -> vector<16x128xf32>
    %c0_14 = arith.constant 0 : index
    %10 = memref.load %arg7[%c0_14] : memref<2xf32, #tpu.memory_space<smem>>
    %11 = vector.broadcast %10 : f32 to vector<16x128xf32>
    %12 = arith.addf %9, %11 : vector<16x128xf32>
    %cst_15 = arith.constant dense<0.000000e+00> : vector<16x128xf32>
    %13 = tpu.matmul %7, %5, %cst_15 {dimension_numbers = #tpu.dot_dimension_numbers<[1], [0], [0], [1], [0, 0, 1, 1], [], []>} : vector<16x64xf32>, vector<64x128xf32>, vector<16x128xf32> -> vector<16x128xf32>
    %c1 = arith.constant 1 : index
    %14 = memref.load %arg7[%c1] : memref<2xf32, #tpu.memory_space<smem>>
    %15 = vector.broadcast %14 : f32 to vector<16x128xf32>
    %16 = arith.addf %13, %15 : vector<16x128xf32>
    %17 = tpu.iota {dimensions = array<i32: 0>} : vector<64x16xi32>
    %18 = tpu.iota {dimensions = array<i32: 1>} : vector<64x16xi32>
    %19 = arith.cmpi slt, %18, %17 : vector<64x16xi32>
    %c15_i32 = arith.constant 15 : i32
    %20 = vector.broadcast %c15_i32 : i32 to vector<64x16xi32>
    %21 = arith.cmpi slt, %18, %20 : vector<64x16xi32>
    %22 = arith.andi %19, %21 : vector<64x16xi1>
    %23 = tpu.iota {dimensions = array<i32: 0>} : vector<64x64xi32>
    %24 = tpu.iota {dimensions = array<i32: 1>} : vector<64x64xi32>
    %25 = arith.cmpi sle, %24, %23 : vector<64x64xi32>
    %c16_i32 = arith.constant 16 : i32
    %26 = vector.broadcast %c16_i32 : i32 to vector<64x64xi32>
    %27 = arith.subi %23, %26 : vector<64x64xi32>
    %28 = arith.cmpi sge, %24, %27 : vector<64x64xi32>
    %29 = arith.andi %25, %28 : vector<64x64xi1>
    %30 = tpu.iota {dimensions = array<i32: 1>} : vector<1x128xi32>
    %31 = tpu.iota {dimensions = array<i32: 0>} : vector<4x1xi32>
    %cst_16 = arith.constant 0.000000e+00 : f32
    %32 = vector.broadcast %cst_16 : f32 to vector<64x128xf32>
    %cst_17 = arith.constant 0.000000e+00 : f32
    %33 = vector.broadcast %cst_17 : f32 to vector<64x128xf32>
    %cst_18 = arith.constant 0.000000e+00 : f32
    %34 = vector.broadcast %cst_18 : f32 to vector<4x4xf32>
    %c0_i32 = arith.constant 0 : i32
    %35 = vector.broadcast %c0_i32 : i32 to vector<1x128xi32>
    %36 = arith.cmpi sge, %30, %35 : vector<1x128xi32>
    %c32_i32 = arith.constant 32 : i32
    %37 = vector.broadcast %c32_i32 : i32 to vector<1x128xi32>
    %38 = arith.cmpi slt, %30, %37 : vector<1x128xi32>
    %39 = arith.andi %36, %38 : vector<1x128xi1>
    %40 = arith.extui %39 : vector<1x128xi1> to vector<1x128xi32>
    %41 = arith.sitofp %40 : vector<1x128xi32> to vector<1x128xf32>
    %42 = vector.broadcast %41 : vector<1x128xf32> to vector<64x128xf32>
    %43 = arith.mulf %1, %42 : vector<64x128xf32>
    %44 = vector.broadcast %41 : vector<1x128xf32> to vector<64x128xf32>
    %45 = arith.mulf %3, %44 : vector<64x128xf32>
    %46 = vector.broadcast %41 : vector<1x128xf32> to vector<64x128xf32>
    %47 = arith.mulf %5, %46 : vector<64x128xf32>
    %48 = vector.broadcast %41 : vector<1x128xf32> to vector<16x128xf32>
    %49 = arith.mulf %12, %48 : vector<16x128xf32>
    %50 = vector.broadcast %41 : vector<1x128xf32> to vector<16x128xf32>
    %51 = arith.mulf %16, %50 : vector<16x128xf32>
    %cst_19 = arith.constant dense<0.000000e+00> : vector<64x16xf32>
    %52 = tpu.matmul %43, %49, %cst_19 {dimension_numbers = #tpu.dot_dimension_numbers<[1], [1], [0], [0], [0, 0, 1, 0], [], []>} : vector<64x128xf32>, vector<16x128xf32>, vector<64x16xf32> -> vector<64x16xf32>
    %cst_20 = arith.constant 0.176776692 : f32
    %53 = vector.broadcast %cst_20 : f32 to vector<64x16xf32>
    %54 = arith.mulf %52, %53 : vector<64x16xf32>
    %cst_21 = arith.constant 0xFF800000 : f32
    %55 = vector.broadcast %cst_21 : f32 to vector<64x16xf32>
    %56 = arith.select %22, %54, %55 : vector<64x16xi1>, vector<64x16xf32>
    %cst_22 = arith.constant dense<0xFF800000> : vector<64xf32>
    %57 = vector.multi_reduction <maximumf>, %56, %cst_22 [1] : vector<64x16xf32> to vector<64xf32>
    %58 = vector.shape_cast %57 : vector<64xf32> to vector<64x1xf32>
    %59 = vector.broadcast %58 : vector<64x1xf32> to vector<64x16xf32>
    %60 = arith.subf %56, %59 : vector<64x16xf32>
    %61 = math.exp %60 : vector<64x16xf32>
    %cst_23 = arith.constant dense<0.000000e+00> : vector<64xf32>
    %62 = vector.multi_reduction <add>, %61, %cst_23 [1] : vector<64x16xf32> to vector<64xf32>
    %63 = vector.shape_cast %62 : vector<64xf32> to vector<64x1xf32>
    %64 = vector.broadcast %63 : vector<64x1xf32> to vector<64x16xf32>
    %65 = arith.divf %61, %64 : vector<64x16xf32>
    %cst_24 = arith.constant dense<0.000000e+00> : vector<64x128xf32>
    %66 = tpu.matmul %65, %51, %cst_24 {dimension_numbers = #tpu.dot_dimension_numbers<[1], [0], [0], [1], [0, 0, 1, 1], [], []>} : vector<64x16xf32>, vector<16x128xf32>, vector<64x128xf32> -> vector<64x128xf32>
    %67 = arith.addf %32, %66 : vector<64x128xf32>
    %c63_i32 = arith.constant 63 : i32
    %68 = vector.broadcast %c63_i32 : i32 to vector<64x16xi32>
    %69 = arith.cmpi eq, %17, %68 : vector<64x16xi32>
    %cst_25 = arith.constant 0.000000e+00 : f32
    %70 = vector.broadcast %cst_25 : f32 to vector<64x16xf32>
    %71 = arith.select %69, %65, %70 : vector<64x16xi1>, vector<64x16xf32>
    %cst_26 = arith.constant dense<0.000000e+00> : vector<16xf32>
    %72 = vector.multi_reduction <add>, %71, %cst_26 [0] : vector<64x16xf32> to vector<16xf32>
    %73 = vector.shape_cast %72 : vector<16xf32> to vector<1x16xf32>
    %cst_27 = arith.constant dense<0.000000e+00> : vector<1x4xf32>
    %74 = tpu.matmul %73, %8, %cst_27 {dimension_numbers = #tpu.dot_dimension_numbers<[1], [0], [0], [1], [0, 0, 1, 1], [], []>} : vector<1x16xf32>, vector<16x4xf32>, vector<1x4xf32> -> vector<1x4xf32>
    %c0_i32_28 = arith.constant 0 : i32
    %75 = vector.broadcast %c0_i32_28 : i32 to vector<4x1xi32>
    %76 = arith.cmpi eq, %31, %75 : vector<4x1xi32>
    %77 = arith.extui %76 : vector<4x1xi1> to vector<4x1xi32>
    %78 = arith.sitofp %77 : vector<4x1xi32> to vector<4x1xf32>
    %79 = vector.broadcast %78 : vector<4x1xf32> to vector<4x4xf32>
    %80 = vector.broadcast %74 : vector<1x4xf32> to vector<4x4xf32>
    %81 = arith.mulf %79, %80 : vector<4x4xf32>
    %82 = arith.addf %34, %81 : vector<4x4xf32>
    %cst_29 = arith.constant dense<0.000000e+00> : vector<64x64xf32>
    %83 = tpu.matmul %43, %45, %cst_29 {dimension_numbers = #tpu.dot_dimension_numbers<[1], [1], [0], [0], [0, 0, 1, 0], [], []>} : vector<64x128xf32>, vector<64x128xf32>, vector<64x64xf32> -> vector<64x64xf32>
    %cst_30 = arith.constant 0.176776692 : f32
    %84 = vector.broadcast %cst_30 : f32 to vector<64x64xf32>
    %85 = arith.mulf %83, %84 : vector<64x64xf32>
    %cst_31 = arith.constant 0xFF800000 : f32
    %86 = vector.broadcast %cst_31 : f32 to vector<64x64xf32>
    %87 = arith.select %29, %85, %86 : vector<64x64xi1>, vector<64x64xf32>
    %cst_32 = arith.constant dense<0xFF800000> : vector<64xf32>
    %88 = vector.multi_reduction <maximumf>, %87, %cst_32 [1] : vector<64x64xf32> to vector<64xf32>
    %89 = vector.shape_cast %88 : vector<64xf32> to vector<64x1xf32>
    %90 = vector.broadcast %89 : vector<64x1xf32> to vector<64x64xf32>
    %91 = arith.subf %87, %90 : vector<64x64xf32>
    %92 = math.exp %91 : vector<64x64xf32>
    %cst_33 = arith.constant dense<0.000000e+00> : vector<64xf32>
    %93 = vector.multi_reduction <add>, %92, %cst_33 [1] : vector<64x64xf32> to vector<64xf32>
    %94 = vector.shape_cast %93 : vector<64xf32> to vector<64x1xf32>
    %95 = vector.broadcast %94 : vector<64x1xf32> to vector<64x64xf32>
    %96 = arith.divf %92, %95 : vector<64x64xf32>
    %cst_34 = arith.constant dense<0.000000e+00> : vector<64x128xf32>
    %97 = tpu.matmul %96, %47, %cst_34 {dimension_numbers = #tpu.dot_dimension_numbers<[1], [0], [0], [1], [0, 0, 1, 1], [], []>} : vector<64x64xf32>, vector<64x128xf32>, vector<64x128xf32> -> vector<64x128xf32>
    %98 = arith.addf %33, %97 : vector<64x128xf32>
    %c32_i32_35 = arith.constant 32 : i32
    %99 = vector.broadcast %c32_i32_35 : i32 to vector<1x128xi32>
    %100 = arith.cmpi sge, %30, %99 : vector<1x128xi32>
    %c64_i32 = arith.constant 64 : i32
    %101 = vector.broadcast %c64_i32 : i32 to vector<1x128xi32>
    %102 = arith.cmpi slt, %30, %101 : vector<1x128xi32>
    %103 = arith.andi %100, %102 : vector<1x128xi1>
    %104 = arith.extui %103 : vector<1x128xi1> to vector<1x128xi32>
    %105 = arith.sitofp %104 : vector<1x128xi32> to vector<1x128xf32>
    %106 = vector.broadcast %105 : vector<1x128xf32> to vector<64x128xf32>
    %107 = arith.mulf %1, %106 : vector<64x128xf32>
    %108 = vector.broadcast %105 : vector<1x128xf32> to vector<64x128xf32>
    %109 = arith.mulf %3, %108 : vector<64x128xf32>
    %110 = vector.broadcast %105 : vector<1x128xf32> to vector<64x128xf32>
    %111 = arith.mulf %5, %110 : vector<64x128xf32>
    %112 = vector.broadcast %105 : vector<1x128xf32> to vector<16x128xf32>
    %113 = arith.mulf %12, %112 : vector<16x128xf32>
    %114 = vector.broadcast %105 : vector<1x128xf32> to vector<16x128xf32>
    %115 = arith.mulf %16, %114 : vector<16x128xf32>
    %cst_36 = arith.constant dense<0.000000e+00> : vector<64x16xf32>
    %116 = tpu.matmul %107, %113, %cst_36 {dimension_numbers = #tpu.dot_dimension_numbers<[1], [1], [0], [0], [0, 0, 1, 0], [], []>} : vector<64x128xf32>, vector<16x128xf32>, vector<64x16xf32> -> vector<64x16xf32>
    %cst_37 = arith.constant 0.176776692 : f32
    %117 = vector.broadcast %cst_37 : f32 to vector<64x16xf32>
    %118 = arith.mulf %116, %117 : vector<64x16xf32>
    %cst_38 = arith.constant 0xFF800000 : f32
    %119 = vector.broadcast %cst_38 : f32 to vector<64x16xf32>
    %120 = arith.select %22, %118, %119 : vector<64x16xi1>, vector<64x16xf32>
    %cst_39 = arith.constant dense<0xFF800000> : vector<64xf32>
    %121 = vector.multi_reduction <maximumf>, %120, %cst_39 [1] : vector<64x16xf32> to vector<64xf32>
    %122 = vector.shape_cast %121 : vector<64xf32> to vector<64x1xf32>
    %123 = vector.broadcast %122 : vector<64x1xf32> to vector<64x16xf32>
    %124 = arith.subf %120, %123 : vector<64x16xf32>
    %125 = math.exp %124 : vector<64x16xf32>
    %cst_40 = arith.constant dense<0.000000e+00> : vector<64xf32>
    %126 = vector.multi_reduction <add>, %125, %cst_40 [1] : vector<64x16xf32> to vector<64xf32>
    %127 = vector.shape_cast %126 : vector<64xf32> to vector<64x1xf32>
    %128 = vector.broadcast %127 : vector<64x1xf32> to vector<64x16xf32>
    %129 = arith.divf %125, %128 : vector<64x16xf32>
    %cst_41 = arith.constant dense<0.000000e+00> : vector<64x128xf32>
    %130 = tpu.matmul %129, %115, %cst_41 {dimension_numbers = #tpu.dot_dimension_numbers<[1], [0], [0], [1], [0, 0, 1, 1], [], []>} : vector<64x16xf32>, vector<16x128xf32>, vector<64x128xf32> -> vector<64x128xf32>
    %131 = arith.addf %67, %130 : vector<64x128xf32>
    %c63_i32_42 = arith.constant 63 : i32
    %132 = vector.broadcast %c63_i32_42 : i32 to vector<64x16xi32>
    %133 = arith.cmpi eq, %17, %132 : vector<64x16xi32>
    %cst_43 = arith.constant 0.000000e+00 : f32
    %134 = vector.broadcast %cst_43 : f32 to vector<64x16xf32>
    %135 = arith.select %133, %129, %134 : vector<64x16xi1>, vector<64x16xf32>
    %cst_44 = arith.constant dense<0.000000e+00> : vector<16xf32>
    %136 = vector.multi_reduction <add>, %135, %cst_44 [0] : vector<64x16xf32> to vector<16xf32>
    %137 = vector.shape_cast %136 : vector<16xf32> to vector<1x16xf32>
    %cst_45 = arith.constant dense<0.000000e+00> : vector<1x4xf32>
    %138 = tpu.matmul %137, %8, %cst_45 {dimension_numbers = #tpu.dot_dimension_numbers<[1], [0], [0], [1], [0, 0, 1, 1], [], []>} : vector<1x16xf32>, vector<16x4xf32>, vector<1x4xf32> -> vector<1x4xf32>
    %c1_i32 = arith.constant 1 : i32
    %139 = vector.broadcast %c1_i32 : i32 to vector<4x1xi32>
    %140 = arith.cmpi eq, %31, %139 : vector<4x1xi32>
    %141 = arith.extui %140 : vector<4x1xi1> to vector<4x1xi32>
    %142 = arith.sitofp %141 : vector<4x1xi32> to vector<4x1xf32>
    %143 = vector.broadcast %142 : vector<4x1xf32> to vector<4x4xf32>
    %144 = vector.broadcast %138 : vector<1x4xf32> to vector<4x4xf32>
    %145 = arith.mulf %143, %144 : vector<4x4xf32>
    %146 = arith.addf %82, %145 : vector<4x4xf32>
    %cst_46 = arith.constant dense<0.000000e+00> : vector<64x64xf32>
    %147 = tpu.matmul %107, %109, %cst_46 {dimension_numbers = #tpu.dot_dimension_numbers<[1], [1], [0], [0], [0, 0, 1, 0], [], []>} : vector<64x128xf32>, vector<64x128xf32>, vector<64x64xf32> -> vector<64x64xf32>
    %cst_47 = arith.constant 0.176776692 : f32
    %148 = vector.broadcast %cst_47 : f32 to vector<64x64xf32>
    %149 = arith.mulf %147, %148 : vector<64x64xf32>
    %cst_48 = arith.constant 0xFF800000 : f32
    %150 = vector.broadcast %cst_48 : f32 to vector<64x64xf32>
    %151 = arith.select %29, %149, %150 : vector<64x64xi1>, vector<64x64xf32>
    %cst_49 = arith.constant dense<0xFF800000> : vector<64xf32>
    %152 = vector.multi_reduction <maximumf>, %151, %cst_49 [1] : vector<64x64xf32> to vector<64xf32>
    %153 = vector.shape_cast %152 : vector<64xf32> to vector<64x1xf32>
    %154 = vector.broadcast %153 : vector<64x1xf32> to vector<64x64xf32>
    %155 = arith.subf %151, %154 : vector<64x64xf32>
    %156 = math.exp %155 : vector<64x64xf32>
    %cst_50 = arith.constant dense<0.000000e+00> : vector<64xf32>
    %157 = vector.multi_reduction <add>, %156, %cst_50 [1] : vector<64x64xf32> to vector<64xf32>
    %158 = vector.shape_cast %157 : vector<64xf32> to vector<64x1xf32>
    %159 = vector.broadcast %158 : vector<64x1xf32> to vector<64x64xf32>
    %160 = arith.divf %156, %159 : vector<64x64xf32>
    %cst_51 = arith.constant dense<0.000000e+00> : vector<64x128xf32>
    %161 = tpu.matmul %160, %111, %cst_51 {dimension_numbers = #tpu.dot_dimension_numbers<[1], [0], [0], [1], [0, 0, 1, 1], [], []>} : vector<64x64xf32>, vector<64x128xf32>, vector<64x128xf32> -> vector<64x128xf32>
    %162 = arith.addf %98, %161 : vector<64x128xf32>
    %c64_i32_52 = arith.constant 64 : i32
    %163 = vector.broadcast %c64_i32_52 : i32 to vector<1x128xi32>
    %164 = arith.cmpi sge, %30, %163 : vector<1x128xi32>
    %c96_i32 = arith.constant 96 : i32
    %165 = vector.broadcast %c96_i32 : i32 to vector<1x128xi32>
    %166 = arith.cmpi slt, %30, %165 : vector<1x128xi32>
    %167 = arith.andi %164, %166 : vector<1x128xi1>
    %168 = arith.extui %167 : vector<1x128xi1> to vector<1x128xi32>
    %169 = arith.sitofp %168 : vector<1x128xi32> to vector<1x128xf32>
    %170 = vector.broadcast %169 : vector<1x128xf32> to vector<64x128xf32>
    %171 = arith.mulf %1, %170 : vector<64x128xf32>
    %172 = vector.broadcast %169 : vector<1x128xf32> to vector<64x128xf32>
    %173 = arith.mulf %3, %172 : vector<64x128xf32>
    %174 = vector.broadcast %169 : vector<1x128xf32> to vector<64x128xf32>
    %175 = arith.mulf %5, %174 : vector<64x128xf32>
    %176 = vector.broadcast %169 : vector<1x128xf32> to vector<16x128xf32>
    %177 = arith.mulf %12, %176 : vector<16x128xf32>
    %178 = vector.broadcast %169 : vector<1x128xf32> to vector<16x128xf32>
    %179 = arith.mulf %16, %178 : vector<16x128xf32>
    %cst_53 = arith.constant dense<0.000000e+00> : vector<64x16xf32>
    %180 = tpu.matmul %171, %177, %cst_53 {dimension_numbers = #tpu.dot_dimension_numbers<[1], [1], [0], [0], [0, 0, 1, 0], [], []>} : vector<64x128xf32>, vector<16x128xf32>, vector<64x16xf32> -> vector<64x16xf32>
    %cst_54 = arith.constant 0.176776692 : f32
    %181 = vector.broadcast %cst_54 : f32 to vector<64x16xf32>
    %182 = arith.mulf %180, %181 : vector<64x16xf32>
    %cst_55 = arith.constant 0xFF800000 : f32
    %183 = vector.broadcast %cst_55 : f32 to vector<64x16xf32>
    %184 = arith.select %22, %182, %183 : vector<64x16xi1>, vector<64x16xf32>
    %cst_56 = arith.constant dense<0xFF800000> : vector<64xf32>
    %185 = vector.multi_reduction <maximumf>, %184, %cst_56 [1] : vector<64x16xf32> to vector<64xf32>
    %186 = vector.shape_cast %185 : vector<64xf32> to vector<64x1xf32>
    %187 = vector.broadcast %186 : vector<64x1xf32> to vector<64x16xf32>
    %188 = arith.subf %184, %187 : vector<64x16xf32>
    %189 = math.exp %188 : vector<64x16xf32>
    %cst_57 = arith.constant dense<0.000000e+00> : vector<64xf32>
    %190 = vector.multi_reduction <add>, %189, %cst_57 [1] : vector<64x16xf32> to vector<64xf32>
    %191 = vector.shape_cast %190 : vector<64xf32> to vector<64x1xf32>
    %192 = vector.broadcast %191 : vector<64x1xf32> to vector<64x16xf32>
    %193 = arith.divf %189, %192 : vector<64x16xf32>
    %cst_58 = arith.constant dense<0.000000e+00> : vector<64x128xf32>
    %194 = tpu.matmul %193, %179, %cst_58 {dimension_numbers = #tpu.dot_dimension_numbers<[1], [0], [0], [1], [0, 0, 1, 1], [], []>} : vector<64x16xf32>, vector<16x128xf32>, vector<64x128xf32> -> vector<64x128xf32>
    %195 = arith.addf %131, %194 : vector<64x128xf32>
    %c63_i32_59 = arith.constant 63 : i32
    %196 = vector.broadcast %c63_i32_59 : i32 to vector<64x16xi32>
    %197 = arith.cmpi eq, %17, %196 : vector<64x16xi32>
    %cst_60 = arith.constant 0.000000e+00 : f32
    %198 = vector.broadcast %cst_60 : f32 to vector<64x16xf32>
    %199 = arith.select %197, %193, %198 : vector<64x16xi1>, vector<64x16xf32>
    %cst_61 = arith.constant dense<0.000000e+00> : vector<16xf32>
    %200 = vector.multi_reduction <add>, %199, %cst_61 [0] : vector<64x16xf32> to vector<16xf32>
    %201 = vector.shape_cast %200 : vector<16xf32> to vector<1x16xf32>
    %cst_62 = arith.constant dense<0.000000e+00> : vector<1x4xf32>
    %202 = tpu.matmul %201, %8, %cst_62 {dimension_numbers = #tpu.dot_dimension_numbers<[1], [0], [0], [1], [0, 0, 1, 1], [], []>} : vector<1x16xf32>, vector<16x4xf32>, vector<1x4xf32> -> vector<1x4xf32>
    %c2_i32 = arith.constant 2 : i32
    %203 = vector.broadcast %c2_i32 : i32 to vector<4x1xi32>
    %204 = arith.cmpi eq, %31, %203 : vector<4x1xi32>
    %205 = arith.extui %204 : vector<4x1xi1> to vector<4x1xi32>
    %206 = arith.sitofp %205 : vector<4x1xi32> to vector<4x1xf32>
    %207 = vector.broadcast %206 : vector<4x1xf32> to vector<4x4xf32>
    %208 = vector.broadcast %202 : vector<1x4xf32> to vector<4x4xf32>
    %209 = arith.mulf %207, %208 : vector<4x4xf32>
    %210 = arith.addf %146, %209 : vector<4x4xf32>
    %cst_63 = arith.constant dense<0.000000e+00> : vector<64x64xf32>
    %211 = tpu.matmul %171, %173, %cst_63 {dimension_numbers = #tpu.dot_dimension_numbers<[1], [1], [0], [0], [0, 0, 1, 0], [], []>} : vector<64x128xf32>, vector<64x128xf32>, vector<64x64xf32> -> vector<64x64xf32>
    %cst_64 = arith.constant 0.176776692 : f32
    %212 = vector.broadcast %cst_64 : f32 to vector<64x64xf32>
    %213 = arith.mulf %211, %212 : vector<64x64xf32>
    %cst_65 = arith.constant 0xFF800000 : f32
    %214 = vector.broadcast %cst_65 : f32 to vector<64x64xf32>
    %215 = arith.select %29, %213, %214 : vector<64x64xi1>, vector<64x64xf32>
    %cst_66 = arith.constant dense<0xFF800000> : vector<64xf32>
    %216 = vector.multi_reduction <maximumf>, %215, %cst_66 [1] : vector<64x64xf32> to vector<64xf32>
    %217 = vector.shape_cast %216 : vector<64xf32> to vector<64x1xf32>
    %218 = vector.broadcast %217 : vector<64x1xf32> to vector<64x64xf32>
    %219 = arith.subf %215, %218 : vector<64x64xf32>
    %220 = math.exp %219 : vector<64x64xf32>
    %cst_67 = arith.constant dense<0.000000e+00> : vector<64xf32>
    %221 = vector.multi_reduction <add>, %220, %cst_67 [1] : vector<64x64xf32> to vector<64xf32>
    %222 = vector.shape_cast %221 : vector<64xf32> to vector<64x1xf32>
    %223 = vector.broadcast %222 : vector<64x1xf32> to vector<64x64xf32>
    %224 = arith.divf %220, %223 : vector<64x64xf32>
    %cst_68 = arith.constant dense<0.000000e+00> : vector<64x128xf32>
    %225 = tpu.matmul %224, %175, %cst_68 {dimension_numbers = #tpu.dot_dimension_numbers<[1], [0], [0], [1], [0, 0, 1, 1], [], []>} : vector<64x64xf32>, vector<64x128xf32>, vector<64x128xf32> -> vector<64x128xf32>
    %226 = arith.addf %162, %225 : vector<64x128xf32>
    %c96_i32_69 = arith.constant 96 : i32
    %227 = vector.broadcast %c96_i32_69 : i32 to vector<1x128xi32>
    %228 = arith.cmpi sge, %30, %227 : vector<1x128xi32>
    %c128_i32 = arith.constant 128 : i32
    %229 = vector.broadcast %c128_i32 : i32 to vector<1x128xi32>
    %230 = arith.cmpi slt, %30, %229 : vector<1x128xi32>
    %231 = arith.andi %228, %230 : vector<1x128xi1>
    %232 = arith.extui %231 : vector<1x128xi1> to vector<1x128xi32>
    %233 = arith.sitofp %232 : vector<1x128xi32> to vector<1x128xf32>
    %234 = vector.broadcast %233 : vector<1x128xf32> to vector<64x128xf32>
    %235 = arith.mulf %1, %234 : vector<64x128xf32>
    %236 = vector.broadcast %233 : vector<1x128xf32> to vector<64x128xf32>
    %237 = arith.mulf %3, %236 : vector<64x128xf32>
    %238 = vector.broadcast %233 : vector<1x128xf32> to vector<64x128xf32>
    %239 = arith.mulf %5, %238 : vector<64x128xf32>
    %240 = vector.broadcast %233 : vector<1x128xf32> to vector<16x128xf32>
    %241 = arith.mulf %12, %240 : vector<16x128xf32>
    %242 = vector.broadcast %233 : vector<1x128xf32> to vector<16x128xf32>
    %243 = arith.mulf %16, %242 : vector<16x128xf32>
    %cst_70 = arith.constant dense<0.000000e+00> : vector<64x16xf32>
    %244 = tpu.matmul %235, %241, %cst_70 {dimension_numbers = #tpu.dot_dimension_numbers<[1], [1], [0], [0], [0, 0, 1, 0], [], []>} : vector<64x128xf32>, vector<16x128xf32>, vector<64x16xf32> -> vector<64x16xf32>
    %cst_71 = arith.constant 0.176776692 : f32
    %245 = vector.broadcast %cst_71 : f32 to vector<64x16xf32>
    %246 = arith.mulf %244, %245 : vector<64x16xf32>
    %cst_72 = arith.constant 0xFF800000 : f32
    %247 = vector.broadcast %cst_72 : f32 to vector<64x16xf32>
    %248 = arith.select %22, %246, %247 : vector<64x16xi1>, vector<64x16xf32>
    %cst_73 = arith.constant dense<0xFF800000> : vector<64xf32>
    %249 = vector.multi_reduction <maximumf>, %248, %cst_73 [1] : vector<64x16xf32> to vector<64xf32>
    %250 = vector.shape_cast %249 : vector<64xf32> to vector<64x1xf32>
    %251 = vector.broadcast %250 : vector<64x1xf32> to vector<64x16xf32>
    %252 = arith.subf %248, %251 : vector<64x16xf32>
    %253 = math.exp %252 : vector<64x16xf32>
    %cst_74 = arith.constant dense<0.000000e+00> : vector<64xf32>
    %254 = vector.multi_reduction <add>, %253, %cst_74 [1] : vector<64x16xf32> to vector<64xf32>
    %255 = vector.shape_cast %254 : vector<64xf32> to vector<64x1xf32>
    %256 = vector.broadcast %255 : vector<64x1xf32> to vector<64x16xf32>
    %257 = arith.divf %253, %256 : vector<64x16xf32>
    %cst_75 = arith.constant dense<0.000000e+00> : vector<64x128xf32>
    %258 = tpu.matmul %257, %243, %cst_75 {dimension_numbers = #tpu.dot_dimension_numbers<[1], [0], [0], [1], [0, 0, 1, 1], [], []>} : vector<64x16xf32>, vector<16x128xf32>, vector<64x128xf32> -> vector<64x128xf32>
    %259 = arith.addf %195, %258 : vector<64x128xf32>
    %c63_i32_76 = arith.constant 63 : i32
    %260 = vector.broadcast %c63_i32_76 : i32 to vector<64x16xi32>
    %261 = arith.cmpi eq, %17, %260 : vector<64x16xi32>
    %cst_77 = arith.constant 0.000000e+00 : f32
    %262 = vector.broadcast %cst_77 : f32 to vector<64x16xf32>
    %263 = arith.select %261, %257, %262 : vector<64x16xi1>, vector<64x16xf32>
    %cst_78 = arith.constant dense<0.000000e+00> : vector<16xf32>
    %264 = vector.multi_reduction <add>, %263, %cst_78 [0] : vector<64x16xf32> to vector<16xf32>
    %265 = vector.shape_cast %264 : vector<16xf32> to vector<1x16xf32>
    %cst_79 = arith.constant dense<0.000000e+00> : vector<1x4xf32>
    %266 = tpu.matmul %265, %8, %cst_79 {dimension_numbers = #tpu.dot_dimension_numbers<[1], [0], [0], [1], [0, 0, 1, 1], [], []>} : vector<1x16xf32>, vector<16x4xf32>, vector<1x4xf32> -> vector<1x4xf32>
    %c3_i32 = arith.constant 3 : i32
    %267 = vector.broadcast %c3_i32 : i32 to vector<4x1xi32>
    %268 = arith.cmpi eq, %31, %267 : vector<4x1xi32>
    %269 = arith.extui %268 : vector<4x1xi1> to vector<4x1xi32>
    %270 = arith.sitofp %269 : vector<4x1xi32> to vector<4x1xf32>
    %271 = vector.broadcast %270 : vector<4x1xf32> to vector<4x4xf32>
    %272 = vector.broadcast %266 : vector<1x4xf32> to vector<4x4xf32>
    %273 = arith.mulf %271, %272 : vector<4x4xf32>
    %274 = arith.addf %210, %273 : vector<4x4xf32>
    %cst_80 = arith.constant dense<0.000000e+00> : vector<64x64xf32>
    %275 = tpu.matmul %235, %237, %cst_80 {dimension_numbers = #tpu.dot_dimension_numbers<[1], [1], [0], [0], [0, 0, 1, 0], [], []>} : vector<64x128xf32>, vector<64x128xf32>, vector<64x64xf32> -> vector<64x64xf32>
    %cst_81 = arith.constant 0.176776692 : f32
    %276 = vector.broadcast %cst_81 : f32 to vector<64x64xf32>
    %277 = arith.mulf %275, %276 : vector<64x64xf32>
    %cst_82 = arith.constant 0xFF800000 : f32
    %278 = vector.broadcast %cst_82 : f32 to vector<64x64xf32>
    %279 = arith.select %29, %277, %278 : vector<64x64xi1>, vector<64x64xf32>
    %cst_83 = arith.constant dense<0xFF800000> : vector<64xf32>
    %280 = vector.multi_reduction <maximumf>, %279, %cst_83 [1] : vector<64x64xf32> to vector<64xf32>
    %281 = vector.shape_cast %280 : vector<64xf32> to vector<64x1xf32>
    %282 = vector.broadcast %281 : vector<64x1xf32> to vector<64x64xf32>
    %283 = arith.subf %279, %282 : vector<64x64xf32>
    %284 = math.exp %283 : vector<64x64xf32>
    %cst_84 = arith.constant dense<0.000000e+00> : vector<64xf32>
    %285 = vector.multi_reduction <add>, %284, %cst_84 [1] : vector<64x64xf32> to vector<64xf32>
    %286 = vector.shape_cast %285 : vector<64xf32> to vector<64x1xf32>
    %287 = vector.broadcast %286 : vector<64x1xf32> to vector<64x64xf32>
    %288 = arith.divf %284, %287 : vector<64x64xf32>
    %cst_85 = arith.constant dense<0.000000e+00> : vector<64x128xf32>
    %289 = tpu.matmul %288, %239, %cst_85 {dimension_numbers = #tpu.dot_dimension_numbers<[1], [0], [0], [1], [0, 0, 1, 1], [], []>} : vector<64x64xf32>, vector<64x128xf32>, vector<64x128xf32> -> vector<64x128xf32>
    %290 = arith.addf %226, %289 : vector<64x128xf32>
    %c0_86 = arith.constant 0 : index
    %c0_87 = arith.constant 0 : index
    %c0_88 = arith.constant 0 : index
    %291 = vector.load %arg8[%c0_86, %c0_87, %c0_88] : memref<1x64x128xf32, #tpu.memory_space<vmem>>, vector<1x64x128xf32>
    %292 = vector.shape_cast %291 : vector<1x64x128xf32> to vector<64x128xf32>
    %293 = vector.shape_cast %259 : vector<64x128xf32> to vector<1x64x128xf32>
    tpu.vector_store %arg8[%c0_86, %c0_87, %c0_88], %293 {strides = array<i32>} : memref<1x64x128xf32, #tpu.memory_space<vmem>>, vector<1x64x128xf32>,
    %c0_89 = arith.constant 0 : index
    %c0_90 = arith.constant 0 : index
    %c0_91 = arith.constant 0 : index
    %294 = vector.load %arg9[%c0_89, %c0_90, %c0_91] : memref<1x64x128xf32, #tpu.memory_space<vmem>>, vector<1x64x128xf32>
    %295 = vector.shape_cast %294 : vector<1x64x128xf32> to vector<64x128xf32>
    %296 = vector.shape_cast %290 : vector<64x128xf32> to vector<1x64x128xf32>
    tpu.vector_store %arg9[%c0_89, %c0_90, %c0_91], %296 {strides = array<i32>} : memref<1x64x128xf32, #tpu.memory_space<vmem>>, vector<1x64x128xf32>,
    %c0_92 = arith.constant 0 : index
    %c0_93 = arith.constant 0 : index
    %c0_94 = arith.constant 0 : index
    %297 = vector.load %arg10[%c0_92, %c0_93, %c0_94] : memref<1x4x4xf32, #tpu.memory_space<vmem>>, vector<1x4x4xf32>
    %298 = vector.shape_cast %297 : vector<1x4x4xf32> to vector<4x4xf32>
    %299 = vector.shape_cast %274 : vector<4x4xf32> to vector<1x4x4xf32>
    tpu.vector_store %arg10[%c0_92, %c0_93, %c0_94], %299 {strides = array<i32>} : memref<1x4x4xf32, #tpu.memory_space<vmem>>, vector<1x4x4xf32>,
    return
  }
  func.func @transform_0(%arg0: i32) -> (i32, i32, i32) {
    %c0_i32 = arith.constant 0 : i32
    %c0_i32_0 = arith.constant 0 : i32
    %c0_i32_1 = arith.constant 0 : i32
    return %arg0, %c0_i32, %c0_i32_0 : i32, i32, i32
  }
  func.func @transform_1(%arg0: i32) -> (i32, i32, i32) {
    %c0_i32 = arith.constant 0 : i32
    %c0_i32_0 = arith.constant 0 : i32
    %c0_i32_1 = arith.constant 0 : i32
    return %arg0, %c0_i32, %c0_i32_0 : i32, i32, i32
  }
  func.func @transform_2(%arg0: i32) -> (i32, i32, i32) {
    %c0_i32 = arith.constant 0 : i32
    %c0_i32_0 = arith.constant 0 : i32
    %c0_i32_1 = arith.constant 0 : i32
    return %arg0, %c0_i32, %c0_i32_0 : i32, i32, i32
  }
  func.func @transform_3(%arg0: i32) -> (i32, i32) {
    %c0_i32 = arith.constant 0 : i32
    %c0_i32_0 = arith.constant 0 : i32
    %c0_i32_1 = arith.constant 0 : i32
    return %c0_i32, %c0_i32_0 : i32, i32
  }
  func.func @transform_4(%arg0: i32) -> (i32, i32) {
    %c0_i32 = arith.constant 0 : i32
    %c0_i32_0 = arith.constant 0 : i32
    %c0_i32_1 = arith.constant 0 : i32
    return %c0_i32, %c0_i32_0 : i32, i32
  }
  func.func @transform_5(%arg0: i32) -> (i32, i32) {
    %c0_i32 = arith.constant 0 : i32
    %c0_i32_0 = arith.constant 0 : i32
    %c0_i32_1 = arith.constant 0 : i32
    return %c0_i32, %c0_i32_0 : i32, i32
  }
  func.func @transform_6(%arg0: i32) -> i32 {
    %c0_i32 = arith.constant 0 : i32
    %c0_i32_0 = arith.constant 0 : i32
    return %c0_i32 : i32
  }
  func.func @transform_7(%arg0: i32) -> (i32, i32, i32) {
    %c0_i32 = arith.constant 0 : i32
    %c0_i32_0 = arith.constant 0 : i32
    %c0_i32_1 = arith.constant 0 : i32
    return %arg0, %c0_i32, %c0_i32_0 : i32, i32, i32
  }
  func.func @transform_8(%arg0: i32) -> (i32, i32, i32) {
    %c0_i32 = arith.constant 0 : i32
    %c0_i32_0 = arith.constant 0 : i32
    %c0_i32_1 = arith.constant 0 : i32
    return %arg0, %c0_i32, %c0_i32_0 : i32, i32, i32
  }
  func.func @transform_9(%arg0: i32) -> (i32, i32, i32) {
    %c0_i32 = arith.constant 0 : i32
    %c0_i32_0 = arith.constant 0 : i32
    %c0_i32_1 = arith.constant 0 : i32
    return %arg0, %c0_i32, %c0_i32_0 : i32, i32, i32
  }
}

module attributes {stable_mosaic.version = 11 : i64} {
  func.func @_cls_attn_kernel(%arg0: i32, %arg1: memref<1x4x32xf32, #tpu.memory_space<vmem>>, %arg2: memref<1x32x32xf32, #tpu.memory_space<vmem>>, %arg3: memref<1x32x32xf32, #tpu.memory_space<vmem>>, %arg4: memref<1x4x32xf32, #tpu.memory_space<vmem>>) attributes {dimension_semantics = [#tpu.dimension_semantics<parallel>], iteration_bounds = array<i64: 2>, scalar_prefetch = 0 : i64, scratch_operands = 0 : i64, tpu.core_type = #tpu.core_type<tc>, window_params = [{transform_indices = @transform_0, window_bounds = array<i64: 1, 4, 32>}, {transform_indices = @transform_1, window_bounds = array<i64: 1, 32, 32>}, {transform_indices = @transform_2, window_bounds = array<i64: 1, 32, 32>}, {transform_indices = @transform_3, window_bounds = array<i64: 1, 4, 32>}]} {
    %c0 = arith.constant 0 : index
    %c0_0 = arith.constant 0 : index
    %c0_1 = arith.constant 0 : index
    %0 = vector.load %arg1[%c0, %c0_0, %c0_1] : memref<1x4x32xf32, #tpu.memory_space<vmem>>, vector<1x4x32xf32>
    %1 = vector.shape_cast %0 : vector<1x4x32xf32> to vector<4x32xf32>
    %c0_2 = arith.constant 0 : index
    %c0_3 = arith.constant 0 : index
    %c0_4 = arith.constant 0 : index
    %2 = vector.load %arg2[%c0_2, %c0_3, %c0_4] : memref<1x32x32xf32, #tpu.memory_space<vmem>>, vector<1x32x32xf32>
    %3 = vector.shape_cast %2 : vector<1x32x32xf32> to vector<32x32xf32>
    %c0_5 = arith.constant 0 : index
    %c0_6 = arith.constant 0 : index
    %c0_7 = arith.constant 0 : index
    %4 = vector.load %arg3[%c0_5, %c0_6, %c0_7] : memref<1x32x32xf32, #tpu.memory_space<vmem>>, vector<1x32x32xf32>
    %5 = vector.shape_cast %4 : vector<1x32x32xf32> to vector<32x32xf32>
    %cst = arith.constant dense<0.000000e+00> : vector<4x32xf32>
    %6 = tpu.matmul %1, %3, %cst {dimension_numbers = #tpu.dot_dimension_numbers<[1], [1], [0], [0], [0, 0, 1, 0], [], []>} : vector<4x32xf32>, vector<32x32xf32>, vector<4x32xf32> -> vector<4x32xf32>
    %cst_8 = arith.constant 0.176776692 : f32
    %7 = vector.broadcast %cst_8 : f32 to vector<4x32xf32>
    %8 = arith.mulf %6, %7 : vector<4x32xf32>
    %cst_9 = arith.constant dense<0xFF800000> : vector<4xf32>
    %9 = vector.multi_reduction <maximumf>, %8, %cst_9 [1] : vector<4x32xf32> to vector<4xf32>
    %10 = vector.shape_cast %9 : vector<4xf32> to vector<4x1xf32>
    %11 = vector.broadcast %10 : vector<4x1xf32> to vector<4x32xf32>
    %12 = arith.subf %8, %11 : vector<4x32xf32>
    %13 = math.exp %12 : vector<4x32xf32>
    %cst_10 = arith.constant dense<0.000000e+00> : vector<4xf32>
    %14 = vector.multi_reduction <add>, %13, %cst_10 [1] : vector<4x32xf32> to vector<4xf32>
    %15 = vector.shape_cast %14 : vector<4xf32> to vector<4x1xf32>
    %16 = vector.broadcast %15 : vector<4x1xf32> to vector<4x32xf32>
    %17 = arith.divf %13, %16 : vector<4x32xf32>
    %cst_11 = arith.constant dense<0.000000e+00> : vector<4x32xf32>
    %18 = tpu.matmul %17, %5, %cst_11 {dimension_numbers = #tpu.dot_dimension_numbers<[1], [0], [0], [1], [0, 0, 1, 1], [], []>} : vector<4x32xf32>, vector<32x32xf32>, vector<4x32xf32> -> vector<4x32xf32>
    %c0_12 = arith.constant 0 : index
    %c0_13 = arith.constant 0 : index
    %c0_14 = arith.constant 0 : index
    %19 = vector.load %arg4[%c0_12, %c0_13, %c0_14] : memref<1x4x32xf32, #tpu.memory_space<vmem>>, vector<1x4x32xf32>
    %20 = vector.shape_cast %19 : vector<1x4x32xf32> to vector<4x32xf32>
    %21 = vector.shape_cast %18 : vector<4x32xf32> to vector<1x4x32xf32>
    tpu.vector_store %arg4[%c0_12, %c0_13, %c0_14], %21 {strides = array<i32>} : memref<1x4x32xf32, #tpu.memory_space<vmem>>, vector<1x4x32xf32>,
    return
  }
  func.func @transform_0(%arg0: i32) -> (i32, i32, i32) {
    %c0_i32 = arith.constant 0 : i32
    %c0_i32_0 = arith.constant 0 : i32
    %c0_i32_1 = arith.constant 0 : i32
    return %arg0, %c0_i32, %c0_i32_0 : i32, i32, i32
  }
  func.func @transform_1(%arg0: i32) -> (i32, i32, i32) {
    %c0_i32 = arith.constant 0 : i32
    %c0_i32_0 = arith.constant 0 : i32
    %c0_i32_1 = arith.constant 0 : i32
    return %arg0, %c0_i32, %c0_i32_0 : i32, i32, i32
  }
  func.func @transform_2(%arg0: i32) -> (i32, i32, i32) {
    %c0_i32 = arith.constant 0 : i32
    %c0_i32_0 = arith.constant 0 : i32
    %c0_i32_1 = arith.constant 0 : i32
    return %arg0, %c0_i32, %c0_i32_0 : i32, i32, i32
  }
  func.func @transform_3(%arg0: i32) -> (i32, i32, i32) {
    %c0_i32 = arith.constant 0 : i32
    %c0_i32_0 = arith.constant 0 : i32
    %c0_i32_1 = arith.constant 0 : i32
    return %arg0, %c0_i32, %c0_i32_0 : i32, i32, i32
  }
}

</mosaic_0001>

<bundles_post_ra>
// kernel: squeeze.1
= control target key start
LH: loop header
LB: loop body
LE: loop exit
PB: predicated region body
PF: predicated region fallthrough
CT: control target
= control target key end

     0   :  { %s44_s8 = smov 32   ;;  %s45_s9 = smov 64   ;;  %vm7_vm0 = vcmask 261120   ;;  %s65_s0 = inlined_call_operand.vmem [shape: f32[2,128], index: 0, kind: input, shape index: {}]   ;;  %s66_s1 = inlined_call_operand.vmem [shape: f32[2,4,32], index: 1, kind: output, shape index: {}]  }
   0x1   :  { %v4_v0 = vld [vmem:[%s65_s0] sm:$0x3]  ;;  %s43_s0 = smov 96  }
   0x2   :  { %5 = vst [vmem:[#allocation1] sm:$0x3] %v4_v0 }
   0x9   :  { %v9_v1 = vld [vmem:[#allocation1] sm:$0x3]  }
   0xa   :  { %v21_v2 = vld [vmem:[#allocation1] sm:$0x3]   ;;  %10 = vrot.lane.b32.xlu0 %v9_v1, %s43_s0 }
   0xb   :  { %22 = vrot.lane.b32.xlu1 %v21_v2, %s44_s8  ;;  %v15_v3 = vld [vmem:[#allocation1] sm:$0x3]  }
   0xc   :  { %v6_v4 = vld [vmem:[#allocation1] sm:$0x3]  }
   0xd   :  { %8 = vst.msk [vmem:[#allocation0] ss:$8 sm:$0x3] %vm7_vm0, %v6_v4  }
  0x12   :  { %16 = vrot.lane.b32.xlu0 %v15_v3, %s45_s9 }
  0x7c   :  { %v11_v5 = vpop.permute.xlu0 %10  }
  0x7d   :  { %v23_v6 = vpop.permute.xlu1 %22   ;;  %14 = vst.msk [vmem:[#allocation0 + $0x1] ss:$8 sm:$0x3] %vm7_vm0, %v11_v5  }
  0x7e   :  { %26 = vst.msk [vmem:[#allocation0 + $0x3] ss:$8 sm:$0x3] %vm7_vm0, %v23_v6  }
  0x84   :  { %v17_v7 = vpop.permute.xlu0 %16  }
  0x85   :  { %20 = vst.msk [vmem:[#allocation0 + $0x2] ss:$8 sm:$0x3] %vm7_vm0, %v17_v7  }
  0x8c   :  { %v29_v8 = vld [vmem:[#allocation0] sm:$0xf]  ;;  %v34_v9 = vld [vmem:[#allocation0 + $0x8] sm:$0xf] }
  0x8d   :  { %32 = vst [vmem:[%s66_s1] sm:$0xf] %v29_v8 }
  0x8e   :  { %39 = vst [vmem:[%s66_s1 + $0x4] sm:$0xf] %v34_v9 }

// kernel: nsa_forward.3
= control target key start
LH: loop header
LB: loop body
LE: loop exit
PB: predicated region body
PF: predicated region fallthrough
CT: control target
= control target key end

     0   :  { %s959_s1 = inlined_call_operand.vmem [shape: f32[128,512], index: 1, kind: input, shape index: {}]   ;;  %s960_s0 = inlined_call_operand.vmem [shape: f32[128,128], index: 0, kind: input, shape index: {}]   ;;  %s961_s2 = inlined_call_operand.vmem [shape: f32[1,512], index: 2, kind: input, shape index: {}]   ;;  %s962_s3 = inlined_call_operand.vmem [shape: f32[128,512], index: 3, kind: output, shape index: {}]  }
   0x1   :  { %v92_v0 = vld [vmem:[%s959_s1 + $0x1f0] sm:$0xff]  ;;  %v93_v1 = vld [vmem:[%s959_s1 + $0x1f8] sm:$0xff]  ;;  %v90_v6 = vld [vmem:[%s959_s1 + $0x1e0] sm:$0xff] }
   0x2   :  { %v88_v2 = vld [vmem:[%s959_s1 + $0x1d0] sm:$0xff]  ;;  %234 = vmatpush.msra.mxu2 %v92_v0  ;;  %299 = vmatpush.msra.mxu3 %v93_v1  ;;  %v89_v3 = vld [vmem:[%s959_s1 + $0x1d8] sm:$0xff]  ;;  %v91_v7 = vld [vmem:[%s959_s1 + $0x1e8] sm:$0xff] }
   0x3   :  { %v84_v4 = vld [vmem:[%s959_s1 + $0x1b0] sm:$0xff]  ;;  %v85_v5 = vld [vmem:[%s959_s1 + $0x1b8] sm:$0xff]  ;;  %v86_v8 = vld [vmem:[%s959_s1 + $0x1c0] sm:$0xff]  ;;  %104 = vmatpush.msra.mxu0 %v90_v6  ;;  %169 = vmatpush.msra.mxu1 %v91_v7 }
   0x4   :  { %235 = vmatpush.msra.mxu2 %v88_v2  ;;  %300 = vmatpush.msra.mxu3 %v89_v3  ;;  %v87_v9 = vld [vmem:[%s959_s1 + $0x1c8] sm:$0xff]  ;;  %v80_v10 = vld [vmem:[%s959_s1 + $0x190] sm:$0xff]  ;;  %v81_v11 = vld [vmem:[%s959_s1 + $0x198] sm:$0xff] }
   0x5   :  { %v82_v12 = vld [vmem:[%s959_s1 + $0x1a0] sm:$0xff]  ;;  %v83_v13 = vld [vmem:[%s959_s1 + $0x1a8] sm:$0xff]  ;;  %105 = vmatpush.msra.mxu0 %v86_v8  ;;  %170 = vmatpush.msra.mxu1 %v87_v9  ;;  %v76_v14 = vld [vmem:[%s959_s1 + $0x170] sm:$0xff] }
   0x6   :  { %236 = vmatpush.msra.mxu2 %v84_v4  ;;  %301 = vmatpush.msra.mxu3 %v85_v5  ;;  %v77_v15 = vld [vmem:[%s959_s1 + $0x178] sm:$0xff]  ;;  %v78_v16 = vld [vmem:[%s959_s1 + $0x180] sm:$0xff]  ;;  %v79_v17 = vld [vmem:[%s959_s1 + $0x188] sm:$0xff] }
   0x7   :  { %106 = vmatpush.msra.mxu0 %v82_v12  ;;  %171 = vmatpush.msra.mxu1 %v83_v13  ;;  %v72_v18 = vld [vmem:[%s959_s1 + $0x150] sm:$0xff]  ;;  %v73_v19 = vld [vmem:[%s959_s1 + $0x158] sm:$0xff]  ;;  %v74_v20 = vld [vmem:[%s959_s1 + $0x160] sm:$0xff] }
   0x8   :  { %237 = vmatpush.msra.mxu2 %v80_v10  ;;  %302 = vmatpush.msra.mxu3 %v81_v11  ;;  %v75_v21 = vld [vmem:[%s959_s1 + $0x168] sm:$0xff]  ;;  %v68_v22 = vld [vmem:[%s959_s1 + $0x130] sm:$0xff]  ;;  %v69_v23 = vld [vmem:[%s959_s1 + $0x138] sm:$0xff] }
   0x9   :  { %107 = vmatpush.msra.mxu0 %v78_v16  ;;  %172 = vmatpush.msra.mxu1 %v79_v17  ;;  %v70_v24 = vld [vmem:[%s959_s1 + $0x140] sm:$0xff]  ;;  %v71_v25 = vld [vmem:[%s959_s1 + $0x148] sm:$0xff]  ;;  %v64_v26 = vld [vmem:[%s959_s1 + $0x110] sm:$0xff] }
   0xa   :  { %238 = vmatpush.msra.mxu2 %v76_v14  ;;  %303 = vmatpush.msra.mxu3 %v77_v15  ;;  %v65_v27 = vld [vmem:[%s959_s1 + $0x118] sm:$0xff]  ;;  %v66_v28 = vld [vmem:[%s959_s1 + $0x120] sm:$0xff]  ;;  %v67_v29 = vld [vmem:[%s959_s1 + $0x128] sm:$0xff] }
   0xb   :  { %108 = vmatpush.msra.mxu0 %v74_v20  ;;  %173 = vmatpush.msra.mxu1 %v75_v21  ;;  %v60_v30 = vld [vmem:[%s959_s1 + $0xf0] sm:$0xff]  ;;  %v61_v31 = vld [vmem:[%s959_s1 + $0xf8] sm:$0xff]  ;;  %v62_v32 = vld [vmem:[%s959_s1 + $0x100] sm:$0xff] }
   0xc   :  { %239 = vmatpush.msra.mxu2 %v72_v18  ;;  %304 = vmatpush.msra.mxu3 %v73_v19  ;;  %v63_v33 = vld [vmem:[%s959_s1 + $0x108] sm:$0xff]  ;;  %v56_v34 = vld [vmem:[%s959_s1 + $0xd0] sm:$0xff]  ;;  %v57_v35 = vld [vmem:[%s959_s1 + $0xd8] sm:$0xff] }
   0xd   :  { %109 = vmatpush.msra.mxu0 %v70_v24  ;;  %174 = vmatpush.msra.mxu1 %v71_v25  ;;  %v58_v36 = vld [vmem:[%s959_s1 + $0xe0] sm:$0xff]  ;;  %v59_v37 = vld [vmem:[%s959_s1 + $0xe8] sm:$0xff]  ;;  %v52_v38 = vld [vmem:[%s959_s1 + $0xb0] sm:$0xff] }
   0xe   :  { %240 = vmatpush.msra.mxu2 %v68_v22  ;;  %305 = vmatpush.msra.mxu3 %v69_v23  ;;  %v53_v39 = vld [vmem:[%s959_s1 + $0xb8] sm:$0xff]  ;;  %v54_v40 = vld [vmem:[%s959_s1 + $0xc0] sm:$0xff]  ;;  %v55_v41 = vld [vmem:[%s959_s1 + $0xc8] sm:$0xff] }
   0xf   :  { %110 = vmatpush.msra.mxu0 %v66_v28  ;;  %175 = vmatpush.msra.mxu1 %v67_v29  ;;  %v48_v42 = vld [vmem:[%s959_s1 + $0x90] sm:$0xff]  ;;  %v49_v43 = vld [vmem:[%s959_s1 + $0x98] sm:$0xff]  ;;  %v50_v44 = vld [vmem:[%s959_s1 + $0xa0] sm:$0xff] }
  0x10   :  { %241 = vmatpush.msra.mxu2 %v64_v26  ;;  %306 = vmatpush.msra.mxu3 %v65_v27  ;;  %v51_v45 = vld [vmem:[%s959_s1 + $0xa8] sm:$0xff]  ;;  %v44_v46 = vld [vmem:[%s959_s1 + $0x70] sm:$0xff]  ;;  %v45_v47 = vld [vmem:[%s959_s1 + $0x78] sm:$0xff] }
  0x11   :  { %111 = vmatpush.msra.mxu0 %v62_v32  ;;  %176 = vmatpush.msra.mxu1 %v63_v33  ;;  %v46_v48 = vld [vmem:[%s959_s1 + $0x80] sm:$0xff]  ;;  %v47_v49 = vld [vmem:[%s959_s1 + $0x88] sm:$0xff]  ;;  %v40_v50 = vld [vmem:[%s959_s1 + $0x50] sm:$0xff] }
  0x12   :  { %242 = vmatpush.msra.mxu2 %v60_v30  ;;  %307 = vmatpush.msra.mxu3 %v61_v31  ;;  %v41_v51 = vld [vmem:[%s959_s1 + $0x58] sm:$0xff]  ;;  %v42_v52 = vld [vmem:[%s959_s1 + $0x60] sm:$0xff]  ;;  %v43_v53 = vld [vmem:[%s959_s1 + $0x68] sm:$0xff] }
  0x13   :  { %112 = vmatpush.msra.mxu0 %v58_v36  ;;  %177 = vmatpush.msra.mxu1 %v59_v37  ;;  %v36_v54 = vld [vmem:[%s959_s1 + $0x30] sm:$0xff]  ;;  %v37_v55 = vld [vmem:[%s959_s1 + $0x38] sm:$0xff]  ;;  %v38_v56 = vld [vmem:[%s959_s1 + $0x40] sm:$0xff] }
  0x14   :  { %243 = vmatpush.msra.mxu2 %v56_v34  ;;  %308 = vmatpush.msra.mxu3 %v57_v35  ;;  %v39_v57 = vld [vmem:[%s959_s1 + $0x48] sm:$0xff]  ;;  %v32_v58 = vld [vmem:[%s959_s1 + $0x10] sm:$0xff]  ;;  %v33_v59 = vld [vmem:[%s959_s1 + $0x18] sm:$0xff] }
  0x15   :  { %113 = vmatpush.msra.mxu0 %v54_v40  ;;  %178 = vmatpush.msra.mxu1 %v55_v41  ;;  %v14_v60 = vld [vmem:[%s960_s0] sm:$0xff]  ;;  %v35_v62 = vld [vmem:[%s959_s1 + $0x28] sm:$0xff]  ;;  %v16_v2 = vld [vmem:[%s960_s0 + $0x10] sm:$0xff] }
  0x16   :  { %244 = vmatpush.msra.mxu2 %v52_v38  ;;  %309 = vmatpush.msra.mxu3 %v53_v39  ;;  %v34_v61 = vld [vmem:[%s959_s1 + $0x20] sm:$0xff]  ;;  %v31_v0 = vld [vmem:[%s959_s1 + $0x8] sm:$0xff]  ;;  %v17_v3 = vld [vmem:[%s960_s0 + $0x18] sm:$0xff] }
  0x17   :  { %114 = vmatpush.msra.mxu0 %v50_v44  ;;  %179 = vmatpush.msra.mxu1 %v51_v45  ;;  %v30_v63 = vld [vmem:[%s959_s1] sm:$0xff]  ;;  %v15_v1 = vld [vmem:[%s960_s0 + $0x8] sm:$0xff]  ;;  %v20_v6 = vld [vmem:[%s960_s0 + $0x30] sm:$0xff] }
  0x18   :  { %245 = vmatpush.msra.mxu2 %v48_v42  ;;  %310 = vmatpush.msra.mxu3 %v49_v43  ;;  %v18_v4 = vld [vmem:[%s960_s0 + $0x20] sm:$0xff]  ;;  %v19_v5 = vld [vmem:[%s960_s0 + $0x28] sm:$0xff]  ;;  %v21_v7 = vld [vmem:[%s960_s0 + $0x38] sm:$0xff] }
  0x19   :  { %115 = vmatpush.msra.mxu0 %v46_v48  ;;  %180 = vmatpush.msra.mxu1 %v47_v49  ;;  %v22_v8 = vld [vmem:[%s960_s0 + $0x40] sm:$0xff]  ;;  %v23_v9 = vld [vmem:[%s960_s0 + $0x48] sm:$0xff]  ;;  %v24_v10 = vld [vmem:[%s960_s0 + $0x50] sm:$0xff] }
  0x1a   :  { %246 = vmatpush.msra.mxu2 %v44_v46  ;;  %311 = vmatpush.msra.mxu3 %v45_v47  ;;  %v25_v11 = vld [vmem:[%s960_s0 + $0x58] sm:$0xff]  ;;  %v26_v12 = vld [vmem:[%s960_s0 + $0x60] sm:$0xff]  ;;  %v27_v13 = vld [vmem:[%s960_s0 + $0x68] sm:$0xff] }
  0x1b   :  { %116 = vmatpush.msra.mxu0 %v42_v52  ;;  %181 = vmatpush.msra.mxu1 %v43_v53  ;;  %v28_v14 = vld [vmem:[%s960_s0 + $0x70] sm:$0xff]  ;;  %v29_v15 = vld [vmem:[%s960_s0 + $0x78] sm:$0xff]  ;;  %v94_v16 = vld [vmem:[%s961_s2] sm:$0xf] }
  0x1c   :  { %247 = vmatpush.msra.mxu2 %v40_v50  ;;  %312 = vmatpush.msra.mxu3 %v41_v51  ;;  %v695_v17 = vperm.slane %v94_v16, 0  ;;  %v697_v18 = vperm.slane %v94_v16, 1  ;;  %v699_v19 = vperm.slane %v94_v16, 2  ;;  %v701_v20 = vperm.slane %v94_v16, 3 }
  0x1d   :  { %117 = vmatpush.msra.mxu0 %v38_v56  ;;  %182 = vmatpush.msra.mxu1 %v39_v57 }
  0x1e   :  { %248 = vmatpush.msra.mxu2 %v36_v54  ;;  %313 = vmatpush.msra.mxu3 %v37_v55 }
  0x1f   :  { %118 = vmatpush.msra.mxu0 %v34_v61  ;;  %183 = vmatpush.msra.mxu1 %v35_v62 }
  0x20   :  { %249 = vmatpush.msra.mxu2 %v32_v58  ;;  %314 = vmatpush.msra.mxu3 %v33_v59 }
  0x21   :  { %250 = vmatmul.f32.vlgmr.msra.gmra.mxu2 %v14_v60  ;;  %315 = vmatmul.f32.vlgmr.msra.gmra.mxu3 %v14_v60 }
  0x22   :  { %119 = vmatpush.msra.mxu0 %v30_v63  ;;  %184 = vmatpush.msra.mxu1 %v31_v0 }
  0x23   :  { %120 = vmatmul.f32.vlgmr.msra.gmra.mxu0 %v14_v60  ;;  %185 = vmatmul.f32.vlgmr.msra.gmra.mxu1 %v14_v60 }
  0x29   :  { %253 = vmatmul.f32.gmra.mxu2 %v15_v1  ;;  %318 = vmatmul.f32.gmra.mxu3 %v15_v1 }
  0x2b   :  { %123 = vmatmul.f32.gmra.mxu0 %v15_v1  ;;  %188 = vmatmul.f32.gmra.mxu1 %v15_v1 }
  0x31   :  { %256 = vmatmul.f32.gmra.mxu2 %v16_v2  ;;  %321 = vmatmul.f32.gmra.mxu3 %v16_v2 }
  0x33   :  { %126 = vmatmul.f32.gmra.mxu0 %v16_v2  ;;  %191 = vmatmul.f32.gmra.mxu1 %v16_v2 }
  0x39   :  { %259 = vmatmul.f32.gmra.mxu2 %v17_v3  ;;  %324 = vmatmul.f32.gmra.mxu3 %v17_v3 }
  0x3b   :  { %129 = vmatmul.f32.gmra.mxu0 %v17_v3  ;;  %194 = vmatmul.f32.gmra.mxu1 %v17_v3 }
  0x41   :  { %262 = vmatmul.f32.gmra.mxu2 %v18_v4  ;;  %327 = vmatmul.f32.gmra.mxu3 %v18_v4 }
  0x43   :  { %132 = vmatmul.f32.gmra.mxu0 %v18_v4  ;;  %197 = vmatmul.f32.gmra.mxu1 %v18_v4 }
  0x49   :  { %265 = vmatmul.f32.gmra.mxu2 %v19_v5  ;;  %330 = vmatmul.f32.gmra.mxu3 %v19_v5 }
  0x4b   :  { %135 = vmatmul.f32.gmra.mxu0 %v19_v5  ;;  %200 = vmatmul.f32.gmra.mxu1 %v19_v5 }
  0x51   :  { %268 = vmatmul.f32.gmra.mxu2 %v20_v6  ;;  %333 = vmatmul.f32.gmra.mxu3 %v20_v6 }
  0x53   :  { %138 = vmatmul.f32.gmra.mxu0 %v20_v6  ;;  %203 = vmatmul.f32.gmra.mxu1 %v20_v6 }
  0x59   :  { %271 = vmatmul.f32.gmra.mxu2 %v21_v7  ;;  %336 = vmatmul.f32.gmra.mxu3 %v21_v7 }
  0x5b   :  { %141 = vmatmul.f32.gmra.mxu0 %v21_v7  ;;  %206 = vmatmul.f32.gmra.mxu1 %v21_v7 }
  0x61   :  { %274 = vmatmul.f32.gmra.mxu2 %v22_v8  ;;  %339 = vmatmul.f32.gmra.mxu3 %v22_v8 }
  0x63   :  { %144 = vmatmul.f32.gmra.mxu0 %v22_v8  ;;  %209 = vmatmul.f32.gmra.mxu1 %v22_v8 }
  0x69   :  { %277 = vmatmul.f32.gmra.mxu2 %v23_v9  ;;  %342 = vmatmul.f32.gmra.mxu3 %v23_v9 }
  0x6b   :  { %147 = vmatmul.f32.gmra.mxu0 %v23_v9  ;;  %212 = vmatmul.f32.gmra.mxu1 %v23_v9 }
  0x71   :  { %280 = vmatmul.f32.gmra.mxu2 %v24_v10  ;;  %345 = vmatmul.f32.gmra.mxu3 %v24_v10 }
  0x73   :  { %150 = vmatmul.f32.gmra.mxu0 %v24_v10  ;;  %215 = vmatmul.f32.gmra.mxu1 %v24_v10 }
  0x79   :  { %283 = vmatmul.f32.gmra.mxu2 %v25_v11  ;;  %348 = vmatmul.f32.gmra.mxu3 %v25_v11 }
  0x7b   :  { %153 = vmatmul.f32.gmra.mxu0 %v25_v11  ;;  %218 = vmatmul.f32.gmra.mxu1 %v25_v11 }
  0x81   :  { %286 = vmatmul.f32.gmra.mxu2 %v26_v12  ;;  %351 = vmatmul.f32.gmra.mxu3 %v26_v12 }
  0x83   :  { %156 = vmatmul.f32.gmra.mxu0 %v26_v12  ;;  %221 = vmatmul.f32.gmra.mxu1 %v26_v12 }
  0x89   :  { %289 = vmatmul.f32.gmra.mxu2 %v27_v13  ;;  %354 = vmatmul.f32.gmra.mxu3 %v27_v13 }
  0x8b   :  { %159 = vmatmul.f32.gmra.mxu0 %v27_v13  ;;  %224 = vmatmul.f32.gmra.mxu1 %v27_v13 }
  0x91   :  { %292 = vmatmul.f32.gmra.mxu2 %v28_v14  ;;  %357 = vmatmul.f32.gmra.mxu3 %v28_v14 }
  0x93   :  { %162 = vmatmul.f32.gmra.mxu0 %v28_v14  ;;  %227 = vmatmul.f32.gmra.mxu1 %v28_v14 }
  0x99   :  { %295 = vmatmul.f32.gmra.mxu2 %v29_v15  ;;  %360 = vmatmul.f32.gmra.mxu3 %v29_v15 }
  0x9b   :  { %165 = vmatmul.f32.gmra.mxu0 %v29_v15  ;;  %230 = vmatmul.f32.gmra.mxu1 %v29_v15 }
  0xa0   :  { %v121_v21 = vpop.f32.mrf.mxu0  ;;  %v186_v22 = vpop.f32.mrf.mxu1 }
  0xa1   :  { %v122_v23 = vadd.f32 %v121_v21, %v695_v17  ;;  %v187_v24 = vadd.f32 %v186_v22, %v697_v18 }
  0xa3   :  { %364 = vst [vmem:[%s962_s3] sm:$0xff] %v122_v23 }
  0xa4   :  { %v251_v25 = vpop.f32.mrf.mxu2  ;;  %v316_v26 = vpop.f32.mrf.mxu3  ;;  %365 = vst [vmem:[%s962_s3 + $0x8] sm:$0xff] %v187_v24 }
  0xa5   :  { %v252_v27 = vadd.f32 %v251_v25, %v699_v19  ;;  %v317_v28 = vadd.f32 %v316_v26, %v701_v20 }
  0xa7   :  { %366 = vst [vmem:[%s962_s3 + $0x10] sm:$0xff] %v252_v27 }
  0xa8   :  { %367 = vst [vmem:[%s962_s3 + $0x18] sm:$0xff] %v317_v28  ;;  %v124_v29 = vpop.f32.mrf.mxu0  ;;  %v189_v30 = vpop.f32.mrf.mxu1 }
  0xa9   :  { %v125_v31 = vadd.f32 %v124_v29, %v695_v17  ;;  %v190_v32 = vadd.f32 %v189_v30, %v697_v18 }
  0xab   :  { %368 = vst [vmem:[%s962_s3 + $0x20] sm:$0xff] %v125_v31 }
  0xac   :  { %v254_v33 = vpop.f32.mrf.mxu2  ;;  %v319_v34 = vpop.f32.mrf.mxu3  ;;  %369 = vst [vmem:[%s962_s3 + $0x28] sm:$0xff] %v190_v32 }
  0xad   :  { %v255_v35 = vadd.f32 %v254_v33, %v699_v19  ;;  %v320_v36 = vadd.f32 %v319_v34, %v701_v20 }
  0xaf   :  { %370 = vst [vmem:[%s962_s3 + $0x30] sm:$0xff] %v255_v35 }
  0xb0   :  { %371 = vst [vmem:[%s962_s3 + $0x38] sm:$0xff] %v320_v36  ;;  %v127_v37 = vpop.f32.mrf.mxu0  ;;  %v192_v38 = vpop.f32.mrf.mxu1 }
  0xb1   :  { %v128_v39 = vadd.f32 %v127_v37, %v695_v17  ;;  %v193_v40 = vadd.f32 %v192_v38, %v697_v18 }
  0xb3   :  { %372 = vst [vmem:[%s962_s3 + $0x40] sm:$0xff] %v128_v39 }
  0xb4   :  { %v257_v41 = vpop.f32.mrf.mxu2  ;;  %v322_v42 = vpop.f32.mrf.mxu3  ;;  %373 = vst [vmem:[%s962_s3 + $0x48] sm:$0xff] %v193_v40 }
  0xb5   :  { %v258_v43 = vadd.f32 %v257_v41, %v699_v19  ;;  %v323_v44 = vadd.f32 %v322_v42, %v701_v20 }
  0xb7   :  { %374 = vst [vmem:[%s962_s3 + $0x50] sm:$0xff] %v258_v43 }
  0xb8   :  { %375 = vst [vmem:[%s962_s3 + $0x58] sm:$0xff] %v323_v44  ;;  %v130_v45 = vpop.f32.mrf.mxu0  ;;  %v195_v46 = vpop.f32.mrf.mxu1 }
  0xb9   :  { %v131_v47 = vadd.f32 %v130_v45, %v695_v17  ;;  %v196_v48 = vadd.f32 %v195_v46, %v697_v18 }
  0xbb   :  { %376 = vst [vmem:[%s962_s3 + $0x60] sm:$0xff] %v131_v47 }
  0xbc   :  { %v260_v49 = vpop.f32.mrf.mxu2  ;;  %v325_v50 = vpop.f32.mrf.mxu3  ;;  %377 = vst [vmem:[%s962_s3 + $0x68] sm:$0xff] %v196_v48 }
  0xbd   :  { %v261_v51 = vadd.f32 %v260_v49, %v699_v19  ;;  %v326_v52 = vadd.f32 %v325_v50, %v701_v20 }
  0xbf   :  { %378 = vst [vmem:[%s962_s3 + $0x70] sm:$0xff] %v261_v51 }
  0xc0   :  { %379 = vst [vmem:[%s962_s3 + $0x78] sm:$0xff] %v326_v52  ;;  %v133_v53 = vpop.f32.mrf.mxu0  ;;  %v198_v54 = vpop.f32.mrf.mxu1 }
  0xc1   :  { %v134_v55 = vadd.f32 %v133_v53, %v695_v17  ;;  %v199_v56 = vadd.f32 %v198_v54, %v697_v18 }
  0xc3   :  { %380 = vst [vmem:[%s962_s3 + $0x80] sm:$0xff] %v134_v55 }
  0xc4   :  { %v263_v57 = vpop.f32.mrf.mxu2  ;;  %v328_v58 = vpop.f32.mrf.mxu3  ;;  %381 = vst [vmem:[%s962_s3 + $0x88] sm:$0xff] %v199_v56 }
  0xc5   :  { %v264_v59 = vadd.f32 %v263_v57, %v699_v19  ;;  %v329_v60 = vadd.f32 %v328_v58, %v701_v20 }
  0xc7   :  { %382 = vst [vmem:[%s962_s3 + $0x90] sm:$0xff] %v264_v59 }
  0xc8   :  { %383 = vst [vmem:[%s962_s3 + $0x98] sm:$0xff] %v329_v60  ;;  %v136_v61 = vpop.f32.mrf.mxu0  ;;  %v201_v62 = vpop.f32.mrf.mxu1 }
  0xc9   :  { %v137_v63 = vadd.f32 %v136_v61, %v695_v17  ;;  %v202_v0 = vadd.f32 %v201_v62, %v697_v18 }
  0xcb   :  { %384 = vst [vmem:[%s962_s3 + $0xa0] sm:$0xff] %v137_v63 }
  0xcc   :  { %v266_v1 = vpop.f32.mrf.mxu2  ;;  %v331_v2 = vpop.f32.mrf.mxu3  ;;  %385 = vst [vmem:[%s962_s3 + $0xa8] sm:$0xff] %v202_v0 }
  0xcd   :  { %v267_v3 = vadd.f32 %v266_v1, %v699_v19  ;;  %v332_v4 = vadd.f32 %v331_v2, %v701_v20 }
  0xcf   :  { %386 = vst [vmem:[%s962_s3 + $0xb0] sm:$0xff] %v267_v3 }
  0xd0   :  { %387 = vst [vmem:[%s962_s3 + $0xb8] sm:$0xff] %v332_v4  ;;  %v139_v5 = vpop.f32.mrf.mxu0  ;;  %v204_v6 = vpop.f32.mrf.mxu1 }
  0xd1   :  { %v140_v7 = vadd.f32 %v139_v5, %v695_v17  ;;  %v205_v8 = vadd.f32 %v204_v6, %v697_v18 }
  0xd3   :  { %388 = vst [vmem:[%s962_s3 + $0xc0] sm:$0xff] %v140_v7 }
  0xd4   :  { %v269_v9 = vpop.f32.mrf.mxu2  ;;  %v334_v10 = vpop.f32.mrf.mxu3  ;;  %389 = vst [vmem:[%s962_s3 + $0xc8] sm:$0xff] %v205_v8 }
  0xd5   :  { %v270_v11 = vadd.f32 %v269_v9, %v699_v19  ;;  %v335_v12 = vadd.f32 %v334_v10, %v701_v20 }
  0xd7   :  { %390 = vst [vmem:[%s962_s3 + $0xd0] sm:$0xff] %v270_v11 }
  0xd8   :  { %391 = vst [vmem:[%s962_s3 + $0xd8] sm:$0xff] %v335_v12  ;;  %v142_v13 = vpop.f32.mrf.mxu0  ;;  %v207_v14 = vpop.f32.mrf.mxu1 }
  0xd9   :  { %v143_v15 = vadd.f32 %v142_v13, %v695_v17  ;;  %v208_v16 = vadd.f32 %v207_v14, %v697_v18 }
  0xdb   :  { %392 = vst [vmem:[%s962_s3 + $0xe0] sm:$0xff] %v143_v15 }
  0xdc   :  { %v272_v21 = vpop.f32.mrf.mxu2  ;;  %v337_v22 = vpop.f32.mrf.mxu3  ;;  %393 = vst [vmem:[%s962_s3 + $0xe8] sm:$0xff] %v208_v16 }
  0xdd   :  { %v273_v23 = vadd.f32 %v272_v21, %v699_v19  ;;  %v338_v24 = vadd.f32 %v337_v22, %v701_v20 }
  0xdf   :  { %394 = vst [vmem:[%s962_s3 + $0xf0] sm:$0xff] %v273_v23 }
  0xe0   :  { %395 = vst [vmem:[%s962_s3 + $0xf8] sm:$0xff] %v338_v24  ;;  %v145_v25 = vpop.f32.mrf.mxu0  ;;  %v210_v26 = vpop.f32.mrf.mxu1 }
  0xe1   :  { %v146_v27 = vadd.f32 %v145_v25, %v695_v17  ;;  %v211_v28 = vadd.f32 %v210_v26, %v697_v18 }
  0xe3   :  { %396 = vst [vmem:[%s962_s3 + $0x100] sm:$0xff] %v146_v27 }
  0xe4   :  { %v275_v29 = vpop.f32.mrf.mxu2  ;;  %v340_v30 = vpop.f32.mrf.mxu3  ;;  %397 = vst [vmem:[%s962_s3 + $0x108] sm:$0xff] %v211_v28 }
  0xe5   :  { %v276_v31 = vadd.f32 %v275_v29, %v699_v19  ;;  %v341_v32 = vadd.f32 %v340_v30, %v701_v20 }
  0xe7   :  { %398 = vst [vmem:[%s962_s3 + $0x110] sm:$0xff] %v276_v31 }
  0xe8   :  { %399 = vst [vmem:[%s962_s3 + $0x118] sm:$0xff] %v341_v32  ;;  %v148_v33 = vpop.f32.mrf.mxu0  ;;  %v213_v34 = vpop.f32.mrf.mxu1 }
  0xe9   :  { %v149_v35 = vadd.f32 %v148_v33, %v695_v17  ;;  %v214_v36 = vadd.f32 %v213_v34, %v697_v18 }
  0xeb   :  { %400 = vst [vmem:[%s962_s3 + $0x120] sm:$0xff] %v149_v35 }
  0xec   :  { %v278_v37 = vpop.f32.mrf.mxu2  ;;  %v343_v38 = vpop.f32.mrf.mxu3  ;;  %401 = vst [vmem:[%s962_s3 + $0x128] sm:$0xff] %v214_v36 }
  0xed   :  { %v279_v39 = vadd.f32 %v278_v37, %v699_v19  ;;  %v344_v40 = vadd.f32 %v343_v38, %v701_v20 }
  0xef   :  { %402 = vst [vmem:[%s962_s3 + $0x130] sm:$0xff] %v279_v39 }
  0xf0   :  { %403 = vst [vmem:[%s962_s3 + $0x138] sm:$0xff] %v344_v40  ;;  %v151_v41 = vpop.f32.mrf.mxu0  ;;  %v216_v42 = vpop.f32.mrf.mxu1 }
  0xf1   :  { %v152_v43 = vadd.f32 %v151_v41, %v695_v17  ;;  %v217_v44 = vadd.f32 %v216_v42, %v697_v18 }
  0xf3   :  { %404 = vst [vmem:[%s962_s3 + $0x140] sm:$0xff] %v152_v43 }
  0xf4   :  { %v281_v45 = vpop.f32.mrf.mxu2  ;;  %v346_v46 = vpop.f32.mrf.mxu3  ;;  %405 = vst [vmem:[%s962_s3 + $0x148] sm:$0xff] %v217_v44 }
  0xf5   :  { %v282_v47 = vadd.f32 %v281_v45, %v699_v19  ;;  %v347_v48 = vadd.f32 %v346_v46, %v701_v20 }
  0xf7   :  { %406 = vst [vmem:[%s962_s3 + $0x150] sm:$0xff] %v282_v47 }
  0xf8   :  { %407 = vst [vmem:[%s962_s3 + $0x158] sm:$0xff] %v347_v48  ;;  %v154_v49 = vpop.f32.mrf.mxu0  ;;  %v219_v50 = vpop.f32.mrf.mxu1 }
  0xf9   :  { %v155_v51 = vadd.f32 %v154_v49, %v695_v17  ;;  %v220_v52 = vadd.f32 %v219_v50, %v697_v18 }
  0xfb   :  { %408 = vst [vmem:[%s962_s3 + $0x160] sm:$0xff] %v155_v51 }
  0xfc   :  { %v284_v53 = vpop.f32.mrf.mxu2  ;;  %v349_v54 = vpop.f32.mrf.mxu3  ;;  %409 = vst [vmem:[%s962_s3 + $0x168] sm:$0xff] %v220_v52 }
  0xfd   :  { %v285_v55 = vadd.f32 %v284_v53, %v699_v19  ;;  %v350_v56 = vadd.f32 %v349_v54, %v701_v20 }
  0xff   :  { %410 = vst [vmem:[%s962_s3 + $0x170] sm:$0xff] %v285_v55 }
 0x100   :  { %411 = vst [vmem:[%s962_s3 + $0x178] sm:$0xff] %v350_v56  ;;  %v157_v57 = vpop.f32.mrf.mxu0  ;;  %v222_v58 = vpop.f32.mrf.mxu1 }
 0x101   :  { %v158_v59 = vadd.f32 %v157_v57, %v695_v17  ;;  %v223_v60 = vadd.f32 %v222_v58, %v697_v18 }
 0x103   :  { %412 = vst [vmem:[%s962_s3 + $0x180] sm:$0xff] %v158_v59 }
 0x104   :  { %v287_v61 = vpop.f32.mrf.mxu2  ;;  %v352_v62 = vpop.f32.mrf.mxu3  ;;  %413 = vst [vmem:[%s962_s3 + $0x188] sm:$0xff] %v223_v60 }
 0x105   :  { %v288_v63 = vadd.f32 %v287_v61, %v699_v19  ;;  %v353_v0 = vadd.f32 %v352_v62, %v701_v20 }
 0x107   :  { %414 = vst [vmem:[%s962_s3 + $0x190] sm:$0xff] %v288_v63 }
 0x108   :  { %415 = vst [vmem:[%s962_s3 + $0x198] sm:$0xff] %v353_v0  ;;  %v160_v1 = vpop.f32.mrf.mxu0  ;;  %v225_v2 = vpop.f32.mrf.mxu1 }
 0x109   :  { %v161_v3 = vadd.f32 %v160_v1, %v695_v17  ;;  %v226_v4 = vadd.f32 %v225_v2, %v697_v18 }
 0x10b   :  { %416 = vst [vmem:[%s962_s3 + $0x1a0] sm:$0xff] %v161_v3 }
 0x10c   :  { %v290_v5 = vpop.f32.mrf.mxu2  ;;  %v355_v6 = vpop.f32.mrf.mxu3  ;;  %417 = vst [vmem:[%s962_s3 + $0x1a8] sm:$0xff] %v226_v4 }
 0x10d   :  { %v291_v7 = vadd.f32 %v290_v5, %v699_v19  ;;  %v356_v8 = vadd.f32 %v355_v6, %v701_v20 }
 0x10f   :  { %418 = vst [vmem:[%s962_s3 + $0x1b0] sm:$0xff] %v291_v7 }
 0x110   :  { %419 = vst [vmem:[%s962_s3 + $0x1b8] sm:$0xff] %v356_v8  ;;  %v163_v9 = vpop.f32.mrf.mxu0  ;;  %v228_v10 = vpop.f32.mrf.mxu1 }
 0x111   :  { %v164_v11 = vadd.f32 %v163_v9, %v695_v17  ;;  %v229_v12 = vadd.f32 %v228_v10, %v697_v18 }
 0x113   :  { %420 = vst [vmem:[%s962_s3 + $0x1c0] sm:$0xff] %v164_v11 }
 0x114   :  { %v293_v13 = vpop.f32.mrf.mxu2  ;;  %v358_v14 = vpop.f32.mrf.mxu3  ;;  %421 = vst [vmem:[%s962_s3 + $0x1c8] sm:$0xff] %v229_v12 }
 0x115   :  { %v294_v15 = vadd.f32 %v293_v13, %v699_v19  ;;  %v359_v16 = vadd.f32 %v358_v14, %v701_v20 }
 0x117   :  { %422 = vst [vmem:[%s962_s3 + $0x1d0] sm:$0xff] %v294_v15 }
 0x118   :  { %423 = vst [vmem:[%s962_s3 + $0x1d8] sm:$0xff] %v359_v16  ;;  %v166_v21 = vpop.f32.mrf.mxu0  ;;  %v231_v22 = vpop.f32.mrf.mxu1 }
 0x119   :  { %v167_v23 = vadd.f32 %v166_v21, %v695_v17  ;;  %v232_v24 = vadd.f32 %v231_v22, %v697_v18 }
 0x11b   :  { %424 = vst [vmem:[%s962_s3 + $0x1e0] sm:$0xff] %v167_v23 }
 0x11c   :  { %v296_v25 = vpop.f32.mrf.mxu2  ;;  %v361_v26 = vpop.f32.mrf.mxu3  ;;  %425 = vst [vmem:[%s962_s3 + $0x1e8] sm:$0xff] %v232_v24 }
 0x11d   :  { %v297_v27 = vadd.f32 %v296_v25, %v699_v19  ;;  %v362_v28 = vadd.f32 %v361_v26, %v701_v20 }
 0x11f   :  { %426 = vst [vmem:[%s962_s3 + $0x1f0] sm:$0xff] %v297_v27 }
 0x120   :  { %427 = vst [vmem:[%s962_s3 + $0x1f8] sm:$0xff] %v362_v28 }

// kernel: nsa_forward.4
= control target key start
LH: loop header
LB: loop body
LE: loop exit
PB: predicated region body
PF: predicated region fallthrough
CT: control target
= control target key end

     0   :  { %15 = vsyncpa [#allocation3], 0  ;;  %s4170_s30 = smov 0   ;;  %s6198_s0 = inlined_call_operand.vmem [shape: f32[2,64,128], index: 0, kind: input, shape index: {}]   ;;  %s6199_s1 = inlined_call_operand.vmem [shape: f32[2,64,128], index: 1, kind: input, shape index: {}]   ;;  %s6200_s2 = inlined_call_operand.vmem [shape: f32[2,64,128], index: 2, kind: input, shape index: {}]   ;;  %s6201_s3 = inlined_call_operand.vmem [shape: f32[16,64], index: 3, kind: input, shape index: {}]   ;;  %s6202_s4 = inlined_call_operand.vmem [shape: f32[16,64], index: 4, kind: input, shape index: {}]   ;;  %s6203_s5 = inlined_call_operand.vmem [shape: f32[16,4], index: 5, kind: input, shape index: {}]   ;;  %s6204_s6 = inlined_call_operand.vmem [shape: f32[2], index: 6, kind: input, shape index: {}]   ;;  %s6205_s7 = inlined_call_operand.vmem [shape: f32[2,64,128], index: 7, kind: output, shape index: {0}]   ;;  %s6206_s8 = inlined_call_operand.vmem [shape: f32[2,64,128], index: 8, kind: output, shape index: {1}]   ;;  %s6207_s9 = inlined_call_operand.vmem [shape: f32[2,4,4], index: 9, kind: output, shape index: {2}]  }
   0x1 LB: > { %s3652_s10 = sadd.s32 4294967295, %s4116_s30   ;;  %p3654_p0 = scmp.ge.s32.totalorder %s4116_s30, 1  ;;  %s4116_s30 = sphi %s4170_s30, %s21_s30  }
   0x2   : > { %p266_p1 = scmp.lt.s32.totalorder %s4116_s30, 3  ;;  %s287_s13 = sshll.u32 %s6204_s6, 4  ;;  %s288_s13 = int_to_ptr.vmem [resolvable:$true] %s287_s13 }
   0x3   : > { %p3773_p3 = scmp.eq.s32.totalorder %s3652_s10, 0  ;;  %s4118_s14 = smov [#allocation2]  }
   0x4   : > { %p267_p2 = pnand %p3654_p0, %p266_p1 }
   0x6   : > { %p3769_p4 = pneg %p267_p2  ;;  %324 = sbr.rel (%p267_p2) target bundleno = 2171 (0x87b), region = 48 }
   0x8   : > { %p3770_p5 = pnand %p3773_p3, %p3769_p4 }
   0xa   : > { %3772 = dma.vmem_to_smem (!%p3770_p5), %s288_s13, 16, %s4118_s14, [#allocation3]  }
   0xb   : > { %4111 = dma.done.wait (%p3773_p3), [#allocation3], 16  }
   0xc   : > { %4113 = vsyncadd (%p3773_p3), [#allocation3], 4294967280 }
   0xd   : > { %331 = sfence }
   0xe   : > { %p381_p6 = scmp.lt.s32.totalorder %s3652_s10, 1  ;;  %v434_v15 = vld [vmem:[%s6201_s3] sm:$0xff]  ;;  %vm6242_vm0 = vcmask 523264   ;;  %v435_v18 = vld [vmem:[%s6201_s3 + $0x8] sm:$0xff]  ;;  %v503_v20 = vlaneseq  ;;  %s3672_s11 = sld [smem:[#allocation2 + $0x1]]  ;;  %v6208_v30 = vmov 0.0  }
   0xf   : > { %v436_v17 = vld [vmem:[%s6202_s4] sm:$0xff]  ;;  %v437_v19 = vld [vmem:[%s6202_s4 + $0x8] sm:$0xff]  ;;  %s440_s12 = sld [smem:[#allocation2]]  ;;  %vm6243_vm11 = vcmask 130048  }
  0x10   : > { %s6637_s10 = smov (!%p381_p6, %s3652_s10), 1  ;;  %v4255_v23 = vand.u32 127, %v503_v20 }
  0x11   : > { %s4184_s15 = sshll.u32 %s6637_s10, 6 }
  0x12   : > { %s4190_s18 = scalar_lea.vmem %s6199_s1, %s4184_s15  ;;  %s4196_s21 = scalar_lea.vmem %s6200_s2, %s4184_s15  ;;  %vm1160_vm1 = vcmp.ge.s32.totalorder %v4255_v23, 32  ;;  %vm1161_vm2 = vcmp.lt.s32.totalorder %v4255_v23, 64  ;;  %vm563_vm3 = vcmp.lt.s32.totalorder %v4255_v23, 32  ;;  %vm2009_vm5 = vcmp.ge.s32.totalorder %v4255_v23, 64 }
  0x13   : > { %v4199_v0 = vld [vmem:[%s4190_s18 + $0x38] sm:$0xff]  ;;  %v4202_v1 = vld [vmem:[%s4190_s18 + $0x30] sm:$0xff]  ;;  %v4206_v2 = vld [vmem:[%s4190_s18 + $0x28] sm:$0xff]  ;;  %v4265_v31 = vsel %vm563_vm3, 1.0, %v6208_v30  ;;  %s4274_s16 = scalar_lea.vmem %s6198_s0, %s4184_s15  ;;  %vm2010_vm6 = vcmp.lt.s32.totalorder %v4255_v23, 96  ;;  %vm522_vm8 = vcmp.lt.s32.totalorder %v4255_v23, 15  ;;  %s6139_s28 = scalar_lea.vmem %s6205_s7, %s4184_s15 }
  0x14   : > { %457 = vmatpush.msra.mxu2 %v4199_v0  ;;  %v433_v3 = vld [vmem:[%s4196_s21 + $0x38] sm:$0xff]  ;;  %v432_v4 = vld [vmem:[%s4196_s21 + $0x30] sm:$0xff]  ;;  %v4212_v5 = vld [vmem:[%s4190_s18 + $0x20] sm:$0xff]  ;;  %v473_v24 = vstv %s3672_s11  ;;  %6280 = vst [vmem:[#allocation7_spill] sm:$0xff] %v4265_v31  ;;  %s6165_s14 = scalar_lea.vmem %s6206_s8, %s4184_s15 }
  0x15   : > { %488 = vmatpush.msra.mxu1 %v433_v3  ;;  %v431_v6 = vld [vmem:[%s4196_s21 + $0x28] sm:$0xff]  ;;  %v4217_v7 = vld [vmem:[%s4190_s18 + $0x18] sm:$0xff]  ;;  %v430_v8 = vld [vmem:[%s4196_s21 + $0x20] sm:$0xff]  ;;  %v441_v26 = vstv %s440_s12 }
  0x16   : > { %458 = vmatpush.msra.mxu2 %v4202_v1  ;;  %v4222_v9 = vld [vmem:[%s4190_s18 + $0x10] sm:$0xff]  ;;  %v429_v10 = vld [vmem:[%s4196_s21 + $0x18] sm:$0xff]  ;;  %v4227_v11 = vld [vmem:[%s4190_s18 + $0x8] sm:$0xff] }
  0x17   : > { %489 = vmatpush.msra.mxu1 %v432_v4  ;;  %v428_v12 = vld [vmem:[%s4196_s21 + $0x10] sm:$0xff]  ;;  %v4232_v13 = vld [vmem:[%s4190_s18] sm:$0xff]  ;;  %v427_v14 = vld [vmem:[%s4196_s21 + $0x8] sm:$0xff] }
  0x18   : > { %459 = vmatpush.msra.mxu2 %v4206_v2  ;;  %v426_v16 = vld [vmem:[%s4196_s21] sm:$0xff]  ;;  %vm1162_vm4 = vmand %vm1160_vm1, %vm1161_vm2  ;;  %v411_v45 = vld [vmem:[%s4274_s16 + $0x8] sm:$0xff] }
  0x19   : > { %490 = vmatpush.msra.mxu1 %v431_v6  ;;  %v4268_v32 = vsel %vm1162_vm4, 1.0, %v6208_v30  ;;  %v410_v37 = vld [vmem:[%s4274_s16] sm:$0xff]  ;;  %vm2011_vm7 = vmand %vm2009_vm5, %vm2010_vm6  ;;  %v4308_v47 = vmul.f32 %v4265_v31, %v411_v45  ;;  %v412_v48 = vld [vmem:[%s4274_s16 + $0x10] sm:$0xff] }
  0x1a   : > { %460 = vmatpush.msra.mxu2 %v4212_v5  ;;  %v4294_v41 = vmul.f32 %v4265_v31, %v410_v37  ;;  %v4299_v43 = vsel %vm2011_vm7, 1.0, %v6208_v30  ;;  %v4313_v49 = vmul.f32 %v4265_v31, %v412_v48  ;;  %v413_v50 = vld [vmem:[%s4274_s16 + $0x18] sm:$0xff]  ;;  %v4322_v52 = vmul.f32 %v4268_v32, %v410_v37  ;;  %v414_v53 = vld [vmem:[%s4274_s16 + $0x20] sm:$0xff]  ;;  %v415_v56 = vld [vmem:[%s4274_s16 + $0x28] sm:$0xff] }
  0x1b   : > { %491 = vmatpush.msra.mxu1 %v430_v8  ;;  %6283 = vst [vmem:[#allocation10_spill] sm:$0xff] %v4299_v43  ;;  %v4318_v51 = vmul.f32 %v4265_v31, %v413_v50  ;;  %v4327_v54 = vmul.f32 %v4265_v31, %v414_v53  ;;  %v4330_v55 = vmul.f32 %v4268_v32, %v411_v45  ;;  %v416_v59 = vld [vmem:[%s4274_s16 + $0x30] sm:$0xff]  ;;  %v417_v61 = vld [vmem:[%s4274_s16 + $0x38] sm:$0xff] }
  0x1c   : > { %461 = vmatpush.msra.mxu2 %v4217_v7  ;;  %6284 = vst [vmem:[#allocation11_spill] sm:$0xff] %v4322_v52  ;;  %v4336_v57 = vmul.f32 %v4265_v31, %v415_v56  ;;  %v4339_v58 = vmul.f32 %v4268_v32, %v412_v48  ;;  %v4345_v60 = vmul.f32 %v4265_v31, %v416_v59 }
  0x1d   : > { %492 = vmatpush.msra.mxu1 %v429_v10  ;;  %6285 = vst [vmem:[#allocation12_spill] sm:$0xff] %v4330_v55  ;;  %v4350_v62 = vmul.f32 %v4265_v31, %v417_v61  ;;  %v4358_v4 = vmul.f32 %v4268_v32, %v413_v50  ;;  %v4364_v8 = vmul.f32 %v4268_v32, %v414_v53  ;;  %v6309_v53 = vmov 0 }
  0x1e   : > { %462 = vmatpush.msra.mxu2 %v4222_v9  ;;  %6286 = vst [vmem:[#allocation13_spill] sm:$0xff] %v4339_v58 }
  0x1f   : > { %493 = vmatpush.msra.mxu1 %v428_v12  ;;  %6289 = vst [vmem:[#allocation16_spill] sm:$0xff] %v4358_v4  ;;  %v4370_v12 = vshrl.u32 %v503_v20, 7 }
  0x20   : > { %463 = vmatpush.msra.mxu2 %v4227_v11  ;;  %6291 = vst [vmem:[#allocation18_spill] sm:$0xff] %v4364_v8 }
  0x21   : > { %494 = vmatpush.msra.mxu1 %v427_v14  ;;  %v4374_v14 = vmul.f32 %v4268_v32, %v415_v56  ;;  %vm514_vm9 = vcmp.lt.s32.totalorder %v4255_v23, %v4370_v12  ;;  %v4390_v20 = vadd.s32 8, %v4370_v12 }
  0x22   : > { %464 = vmatpush.msra.mxu2 %v4232_v13  ;;  %vm4381_vm10 = vmand %vm514_vm9, %vm522_vm8 }
  0x23   : > { %3670 = vmatmul.msk.f32.vlgmr.msra.gmra.mxu2 %vm6242_vm0, %v434_v15  ;;  %495 = vmatpush.msra.mxu1 %v426_v16  ;;  %6293 = vst [vmem:[#allocation20_spill] sm:$0xff] %v4374_v14  ;;  %vm515_vm12 = vcmp.lt.s32.totalorder %v4255_v23, %v4390_v20 }
  0x24   : > { %3673 = vmatmul.msk.f32.vlgmr.msra.gmra.mxu1 %vm6242_vm0, %v436_v17  ;;  %v6294_v17 = vmov 0  ;;  %vm4401_vm13 = vmand %vm515_vm12, %vm522_vm8 }
  0x25   : > { %v6295_v17 = vsel %vm4381_vm10, 4294967295, %v6294_v17 }
  0x26   : > { %6296 = vst [vmem:[#allocation21_spill] sm:$0xff] %v6295_v17 }
  0x2b   : > { %3671 = vmatmul.msk.f32.gmra.mxu2 %vm6242_vm0, %v435_v18 }
  0x2c   : > { %3674 = vmatmul.msk.f32.gmra.mxu1 %vm6242_vm0, %v437_v19 }
  0xa1   : > { %v497_v21 = vpop.f32.mrf.mxu1 }
  0xa2   : > { %v4282_v36 = vadd.f32 %v497_v21, %v473_v24 }
  0xa4   : > { %6282 = vst [vmem:[#allocation9_spill] sm:$0xff] %v4282_v36  ;;  %v593_v42 = vmul.f32 %v4265_v31, %v4282_v36 }
  0xa6   : > { %v466_v22 = vpop.f32.mrf.mxu2 }
  0xa7   : > { %v4276_v33 = vadd.f32 %v466_v22, %v441_v26  ;;  %v4394_v22 = vmul.f32 %v4268_v32, %v416_v59 }
  0xa9   : > { %v500_v25 = vpop.f32.mrf.mxu1  ;;  %6281 = vst [vmem:[#allocation8_spill] sm:$0xff] %v4276_v33  ;;  %v591_v39 = vmul.f32 %v4265_v31, %v4276_v33  ;;  %v1189_v40 = vmul.f32 %v4268_v32, %v4276_v33  ;;  %v2038_v46 = vmul.f32 %v4299_v43, %v4276_v33 }
  0xaa   : > { %v4262_v29 = vadd.f32 %v500_v25, %v473_v24  ;;  %6298 = vst [vmem:[#allocation23_spill] sm:$0xff] %v4394_v22 }
  0xac   : > { %6279 = vst [vmem:[#allocation6_spill] sm:$0xff] %v4262_v29  ;;  %v594_v38 = vmul.f32 %v4265_v31, %v4262_v29 }
  0xae   : > { %v469_v27 = vpop.f32.mrf.mxu2 }
  0xaf   : > { %v4260_v28 = vadd.f32 %v469_v27, %v441_v26  ;;  %v6299_v26 = vmov 0 }
  0xb0   : > { %v6300_v26 = vsel %vm4401_vm13, 4294967295, %v6299_v26 }
  0xb1   : > { %6278 = vst [vmem:[#allocation5_spill] sm:$0xff] %v4260_v28  ;;  %v592_v34 = vmul.f32 %v4265_v31, %v4260_v28  ;;  %v1190_v35 = vmul.f32 %v4268_v32, %v4260_v28  ;;  %v2039_v44 = vmul.f32 %v4299_v43, %v4260_v28 }
  0xb2   : > { %6301 = vst [vmem:[#allocation24_spill] sm:$0xff] %v6300_v26 }
  0xb3   : > { %609 = vmatpush.xpose.msrb.mxu2 %v592_v34  ;;  %1207 = vmatpush.xpose.msra.mxu0 %v1190_v35  ;;  %v4410_v35 = vadd.s32 16, %v4370_v12 }
  0xb5   : > { %vm516_vm14 = vcmp.lt.s32.totalorder %v4255_v23, %v4410_v35 }
  0xb6   : > { %vm4421_vm15 = vmand %vm516_vm14, %vm522_vm8 }
  0xb7   : > { %610 = vmatpush.xpose.msrb.mxu2 %v591_v39  ;;  %1208 = vmatpush.xpose.msra.mxu0 %v1189_v40 }
  0xba   : > { %611 = vmatmul.f32.vlgmr.msrb.gmra.mxu2 %v4294_v41  ;;  %1209 = vmatmul.f32.vlgmr.msra.gmra.mxu0 %v4322_v52 }
  0xbb   : > { %1545 = vmatpush.msra.mxu2 %v594_v38  ;;  %v4414_v38 = vmul.f32 %v4268_v32, %v417_v61 }
  0xbd   : > { %1546 = vmatpush.msra.mxu2 %v593_v42  ;;  %6303 = vst [vmem:[#allocation26_spill] sm:$0xff] %v4414_v38  ;;  %v6304_v42 = vmov 0 }
  0xbe   : > { %v6305_v42 = vsel %vm4421_vm15, 4294967295, %v6304_v42 }
  0xbf   : > { %2056 = vmatpush.xpose.msrb.mxu2 %v2039_v44  ;;  %6306 = vst [vmem:[#allocation27_spill] sm:$0xff] %v6305_v42 }
  0xc2   : > { %614 = vmatmul.f32.gmra.mxu2 %v4308_v47  ;;  %1212 = vmatmul.f32.gmra.mxu0 %v4330_v55  ;;  %v578_v55 = vmul.f32 %v4265_v31, %v4217_v7 }
  0xc3   : > { %2057 = vmatpush.xpose.msrb.mxu2 %v2038_v46  ;;  %v4430_v46 = vadd.s32 56, %v4370_v12 }
  0xc5   : > { %6308 = vst [vmem:[#allocation29_spill] sm:$0xff] %v4430_v46  ;;  %vm521_vm1 = vcmp.lt.s32.totalorder %v4255_v23, %v4430_v46 }
  0xc6   : > { %vm4437_vm2 = vmand %vm521_vm1, %vm522_vm8 }
  0xc7   : > { %v6310_v53 = vsel %vm4437_vm2, 4294967295, %v6309_v53 }
  0xc8   : > { %6311 = vst [vmem:[#allocation30_spill] sm:$0xff] %v6310_v53  ;;  %v580_v53 = vmul.f32 %v4265_v31, %v4206_v2 }
  0xca   : > { %617 = vmatmul.f32.gmra.mxu2 %v4313_v49  ;;  %1215 = vmatmul.f32.gmra.mxu0 %v4339_v58 }
  0xd2   : > { %620 = vmatmul.f32.gmra.mxu2 %v4318_v51  ;;  %1218 = vmatmul.f32.gmra.mxu0 %v4358_v4 }
  0xda   : > { %623 = vmatmul.f32.gmra.mxu2 %v4327_v54  ;;  %1221 = vmatmul.f32.gmra.mxu0 %v4364_v8 }
  0xe2   : > { %626 = vmatmul.f32.gmra.mxu2 %v4336_v57  ;;  %1224 = vmatmul.f32.gmra.mxu0 %v4374_v14 }
  0xea   : > { %629 = vmatmul.f32.gmra.mxu2 %v4345_v60  ;;  %1227 = vmatmul.f32.gmra.mxu0 %v4394_v22 }
  0xf2   : > { %632 = vmatmul.f32.gmra.mxu2 %v4350_v62  ;;  %1230 = vmatmul.f32.gmra.mxu0 %v4414_v38 }
 0x137   : > { %v1210_v15 = vpop.f32.mrf.mxu0 }
 0x138   : > { %v1234_v16 = vmul.f32 0.17677669, %v1210_v15 }
 0x13a   : > { %v1242_v19 = vsel %vm4381_vm10, %v1234_v16, -inf }
 0x13b   : > { %v1250_v21 = vsel %vm6243_vm11, %v1242_v19, -inf }
 0x13c   : > { %1251 = vmax.xlane.f32.xlu1 %v1250_v21  ;;  %v4445_v21 = vadd.s32 24, %v4370_v12 }
 0x13d   : > { %v4353_v63 = vpop.f32.mrf.mxu2 }
 0x13e   : > { %6287 = vst [vmem:[#allocation14_spill] sm:$0xff] %v4353_v63  ;;  %vm517_vm3 = vcmp.lt.s32.totalorder %v4255_v23, %v4445_v21 }
 0x13f   : > { %v1213_v24 = vpop.f32.mrf.mxu0  ;;  %vm4456_vm5 = vmand %vm517_vm3, %vm522_vm8 }
 0x140   : > { %v1235_v25 = vmul.f32 0.17677669, %v1213_v24  ;;  %v4448_v24 = vadd.s32 40, %v4370_v12 }
 0x142   : > { %v1243_v34 = vsel %vm4401_vm13, %v1235_v25, -inf  ;;  %vm519_vm4 = vcmp.lt.s32.totalorder %v4255_v23, %v4448_v24 }
 0x143   : > { %v1253_v37 = vsel %vm6243_vm11, %v1243_v34, -inf  ;;  %vm4468_vm6 = vmand %vm519_vm4, %vm522_vm8 }
 0x144   : > { %1254 = vmax.xlane.f32.xlu1 %v1253_v37 }
 0x145   : > { %v4355_v3 = vpop.f32.mrf.mxu2 }
 0x146   : > { %6288 = vst [vmem:[#allocation15_spill] sm:$0xff] %v4355_v3 }
 0x147   : > { %v1216_v39 = vpop.f32.mrf.mxu0 }
 0x148   : > { %v1236_v40 = vmul.f32 0.17677669, %v1216_v39  ;;  %v6312_v39 = vmov 0 }
 0x149   : > { %v6313_v39 = vsel %vm4456_vm5, 4294967295, %v6312_v39 }
 0x14a   : > { %v1244_v45 = vsel %vm4421_vm15, %v1236_v40, -inf  ;;  %6314 = vst [vmem:[#allocation31_spill] sm:$0xff] %v6313_v39 }
 0x14b   : > { %v1256_v48 = vsel %vm6243_vm11, %v1244_v45, -inf }
 0x14c   : > { %1257 = vmax.xlane.f32.xlu2 %v1256_v48 }
 0x14d   : > { %v4361_v6 = vpop.f32.mrf.mxu2 }
 0x14e   : > { %6290 = vst [vmem:[#allocation17_spill] sm:$0xff] %v4361_v6 }
 0x14f   : > { %v1219_v15 = vpop.f32.mrf.mxu0 }
 0x150   : > { %v1237_v25 = vmul.f32 0.17677669, %v1219_v15  ;;  %v6315_v15 = vmov 0 }
 0x151   : > { %v6316_v15 = vsel %vm4468_vm6, 4294967295, %v6315_v15 }
 0x152   : > { %6317 = vst [vmem:[#allocation32_spill] sm:$0xff] %v6316_v15  ;;  %v579_v15 = vmul.f32 %v4265_v31, %v4212_v5 }
 0x155   : > { %v4367_v10 = vpop.f32.mrf.mxu2 }
 0x156   : > { %6292 = vst [vmem:[#allocation19_spill] sm:$0xff] %v4367_v10 }
 0x157   : > { %v1222_v16 = vpop.f32.mrf.mxu0 }
 0x15d   : > { %v4385_v18 = vpop.f32.mrf.mxu2 }
 0x15e   : > { %6297 = vst [vmem:[#allocation22_spill] sm:$0xff] %v4385_v18 }
 0x15f   : > { %v1225_v37 = vpop.f32.mrf.mxu0 }
 0x160   : > { %v1239_v40 = vmul.f32 0.17677669, %v1225_v37 }
 0x162   : > { %v4474_v30 = vsel %vm4468_vm6, %v1239_v40, -inf }
 0x165   : > { %v4405_v27 = vpop.f32.mrf.mxu2 }
 0x166   : > { %6302 = vst [vmem:[#allocation25_spill] sm:$0xff] %v4405_v27 }
 0x16d   : > { %v4425_v44 = vpop.f32.mrf.mxu2 }
 0x16e   : > { %6307 = vst [vmem:[#allocation28_spill] sm:$0xff] %v4425_v44  ;;  %v576_v44 = vmul.f32 %v4265_v31, %v4227_v11 }
 0x175   : > { %v633_v50 = vpop.f32.mrf.mxu2 }
 0x176   : > { %v643_v56 = vmul.f32 0.17677669, %v633_v50  ;;  %v4462_v50 = vsel %vm4456_vm5, %v1237_v25, -inf  ;;  %v1265_v25 = vsel %vm6243_vm11, %v4474_v30, -inf }
 0x177   : > { %1266 = vmax.xlane.f32.xlu1 %v1265_v25 }
 0x178   : > { %v651_v59 = vsel %vm4437_vm2, %v643_v56, -inf }
 0x179   : > { %v674_v61 = vsel %vm6243_vm11, %v651_v59, -inf }
 0x17a   : > { %675 = vmax.xlane.f32.xlu0 %v674_v61  ;;  %v1259_v61 = vsel %vm6243_vm11, %v4462_v50, -inf }
 0x17b   : > { %1260 = vmax.xlane.f32.xlu2 %v1259_v61 }
 0x1af   : > { %v1252_v48 = vpop.xlane.xlu1 %1251 }
 0x1b0   : > { %v1274_v56 = vsub.f32 %v1242_v19, %v1252_v48  ;;  %v1228_v19 = vpop.f32.mrf.mxu0 }
 0x1b2   : > { %v1282_v37 = vmul.f32 1.442695, %v1274_v56 }
 0x1b4   : > { %3785 = vpow2.f32 %v1282_v37 }
 0x1b7   : > { %v1255_v48 = vpop.xlane.xlu1 %1254 }
 0x1b8   : > { %v1275_v28 = vsub.f32 %v1243_v34, %v1255_v48  ;;  %v1231_v40 = vpop.f32.mrf.mxu0  ;;  %v4497_v48 = vadd.s32 32, %v4370_v12 }
 0x1b9   : > { %v1241_v56 = vmul.f32 0.17677669, %v1231_v40  ;;  %v1238_v40 = vmul.f32 0.17677669, %v1222_v16 }
 0x1ba   : > { %v4478_v22 = vpop.eup %3785  ;;  %v1284_v14 = vmul.f32 1.442695, %v1275_v28  ;;  %vm518_vm7 = vcmp.lt.s32.totalorder %v4255_v23, %v4497_v48 }
 0x1bb   : > { %v1298_v61 = vsel %vm6243_vm11, %v4478_v22, 0.0  ;;  %v4484_v37 = vsel %vm4437_vm2, %v1241_v56, -inf  ;;  %vm4507_vm9 = vmand %vm518_vm7, %vm522_vm8  ;;  %v6318_v56 = vmov 0 }
 0x1bc   : > { %1299 = vadd.xlane.f32.xlu1 %v1298_v61  ;;  %v1271_v34 = vsel %vm6243_vm11, %v4484_v37, -inf  ;;  %v6319_v56 = vsel %vm4507_vm9, 4294967295, %v6318_v56 }
 0x1bd   : > { %1272 = vmax.xlane.f32.xlu2 %v1271_v34  ;;  %6320 = vst [vmem:[#allocation33_spill] sm:$0xff] %v6319_v56  ;;  %v4513_v34 = vsel %vm4507_vm9, %v1238_v40, -inf  ;;  %v4544_v40 = vld [vmem:[%s6203_s5] sm:$0xff] }
 0x1be   : > { %v1262_v16 = vsel %vm6243_vm11, %v4513_v34, -inf  ;;  %6325 = vst [vmem:[#allocation36_spill] sm:$0xff] %v4544_v40 }
 0x1bf   : > { %v1258_v33 = vpop.xlane.xlu2 %1257 }
 0x1c0   : > { %v1276_v38 = vsub.f32 %v1244_v45, %v1258_v33 }
 0x1c2   : > { %v1286_v8 = vmul.f32 1.442695, %v1276_v38 }
 0x1c4   : > { %3787 = vpow2.f32 %v1286_v8 }
 0x1c5   : > { %3789 = vpow2.f32 %v1284_v14 }
 0x1ca   : > { %v4488_v45 = vpop.eup %3787 }
 0x1cb   : > { %v4490_v38 = vpop.eup %3789  ;;  %v1304_v25 = vsel %vm6243_vm11, %v4488_v45, 0.0 }
 0x1cc   : > { %1305 = vadd.xlane.f32.xlu1 %v1304_v25  ;;  %v1301_v14 = vsel %vm6243_vm11, %v4490_v38, 0.0  ;;  %v6321_v25 = vmov 0 }
 0x1cd   : > { %1302 = vadd.xlane.f32.xlu2 %v1301_v14 }
 0x1ed   : > { %v676_v33 = vpop.xlane.xlu0 %675 }
 0x1ee   : > { %v684_v28 = vsub.f32 %v651_v59, %v676_v33  ;;  %v4516_v33 = vadd.s32 48, %v4370_v12 }
 0x1f0   : > { %v699_v8 = vmul.f32 1.442695, %v684_v28  ;;  %v1240_v28 = vmul.f32 0.17677669, %v1228_v19  ;;  %vm520_vm12 = vcmp.lt.s32.totalorder %v4255_v23, %v4516_v33  ;;  %v4537_v19 = vld [vmem:[%s6203_s5 + $0x8] sm:$0xff] }
 0x1f1   : > { %vm4524_vm14 = vmand %vm520_vm12, %vm522_vm8  ;;  %6324 = vst [vmem:[#allocation35_spill] sm:$0xff] %v4537_v19  ;;  %899 = vmatpush.msra.mxu3 %v4537_v19  ;;  %1618 = vmatpush.msrb.mxu0 %v4537_v19 }
 0x1f2   : > { %3791 = vpow2.f32 %v699_v8  ;;  %v6322_v25 = vsel %vm4524_vm14, 4294967295, %v6321_v25  ;;  %v4530_v8 = vsel %vm4524_vm14, %v1240_v28, -inf  ;;  %v4551_v28 = vpop.xlane.xlu1 %1266 }
 0x1f3   : > { %6323 = vst [vmem:[#allocation34_spill] sm:$0xff] %v6322_v25  ;;  %v1268_v14 = vsel %vm6243_vm11, %v4530_v8, -inf  ;;  %900 = vmatpush.msra.mxu3 %v4544_v40  ;;  %1619 = vmatpush.msrb.mxu0 %v4544_v40 }
 0x1f8   : > { %v4499_v61 = vpop.eup %3791 }
 0x1f9   : > { %v722_v59 = vsel %vm6243_vm11, %v4499_v61, 0.0 }
 0x1fa   : > { %723 = vadd.xlane.f32.xlu0 %v722_v59  ;;  %v582_v59 = vmul.f32 %v4265_v31, %v4199_v0 }
 0x1fc   : > { %919 = vmatpush.xpose.msrb.mxu3 %v582_v59 }
 0x202   : > { %1263 = vmax.xlane.f32.xlu0 %v1262_v16  ;;  %v4549_v16 = vpop.xlane.xlu2 %1260 }
 0x20a   : > { %1269 = vmax.xlane.f32.xlu0 %v1268_v14  ;;  %v581_v14 = vmul.f32 %v4265_v31, %v4202_v1 }
 0x20c   : > { %920 = vmatpush.xpose.msrb.mxu3 %v581_v14  ;;  %v577_v14 = vmul.f32 %v4265_v31, %v4222_v9 }
 0x210   : > { %921 = vmatpush.xpose.msrb.mxu3 %v580_v53 }
 0x214   : > { %922 = vmatpush.xpose.msrb.mxu3 %v579_v15 }
 0x218   : > { %923 = vmatpush.xpose.msrb.mxu3 %v578_v55 }
 0x21c   : > { %924 = vmatpush.xpose.msrb.mxu3 %v577_v14  ;;  %v1191_v14 = vmul.f32 %v4268_v32, %v4282_v36 }
 0x220   : > { %925 = vmatpush.xpose.msrb.mxu3 %v576_v44 }
 0x22f   : > { %v1300_v4 = vpop.xlane.xlu1 %1299 }
 0x230   : > { %v4558_v58 = vpop.xlane.xlu2 %1272  ;;  %3793 = vrcp.f32 %v1300_v4  ;;  %v1333_v42 = vand.u32 2147483648, %v1300_v4  ;;  %vm1327_vm8 = vweird.f32 %v1300_v4  ;;  %v1331_v53 = vand.u32 2147483647, %v1300_v4 }
 0x232   : > { %v1334_v55 = vor.u32 1.1754944e-38, %v1333_v42  ;;  %vm1332_vm4 = vcmp.eq.f32.partialorder %v1331_v53, 8.507059e+37 }
 0x236   : > { %v3794_v59 = vpop.eup %3793 }
 0x237   : > { %v1323_v27 = vmul.f32 %v3794_v59, %v1300_v4  ;;  %vm1328_vm1 = vweird.f32 %v3794_v59  ;;  %v575_v4 = vmul.f32 %v4265_v31, %v4232_v13 }
 0x238   : > { %vm4566_vm3 = vmor %vm1327_vm8, %vm1328_vm1 }
 0x239   : > { %v1324_v40 = vsub.f32 1.0, %v1323_v27  ;;  %926 = vmatpush.xpose.msrb.mxu3 %v575_v4 }
 0x23b   : > { %v1325_v25 = vmul.f32 %v3794_v59, %v1324_v40 }
 0x23d   : > { %v1326_v52 = vadd.f32 %v3794_v59, %v1325_v25  ;;  %v1192_v25 = vmul.f32 %v4268_v32, %v4262_v29 }
 0x23f   : > { %v1306_v40 = vpop.xlane.xlu1 %1305  ;;  %v1330_v42 = vsel %vm4566_vm3, %v3794_v59, %v1326_v52  ;;  %1480 = vmatpush.msrb.mxu1 %v1192_v25 }
 0x240   : > { %v1303_v56 = vpop.xlane.xlu2 %1302  ;;  %v1335_v53 = vsel %vm1332_vm4, %v1334_v55, %v1330_v42 }
 0x241   : > { %3795 = vrcp.f32 %v1303_v56  ;;  %v1348_v6 = vand.u32 2147483648, %v1303_v56  ;;  %vm1342_vm7 = vweird.f32 %v1303_v56  ;;  %v1336_v44 = vmul.f32 %v4478_v22, %v1335_v53  ;;  %1481 = vmatpush.msrb.mxu1 %v1191_v14 }
 0x242   : > { %v1346_v63 = vand.u32 2147483647, %v1303_v56  ;;  %v1363_v22 = vand.u32 2147483648, %v1306_v40 }
 0x243   : > { %v1349_v31 = vor.u32 1.1754944e-38, %v1348_v6  ;;  %3686 = vmatmul.msk.f32.vlgmr.msrb.gmra.mxu1 %vm6243_vm11, %v1336_v44  ;;  %vm1357_vm11 = vweird.f32 %v1306_v40 }
 0x244   : > { %vm1347_vm1 = vcmp.eq.f32.partialorder %v1346_v63, 8.507059e+37  ;;  %v1364_v42 = vor.u32 1.1754944e-38, %v1363_v22  ;;  %v1281_v22 = vsub.f32 %v4484_v37, %v4558_v58  ;;  %v6336_v58 = vmov 0 }
 0x247   : > { %v3796_v15 = vpop.eup %3795 }
 0x248   : > { %v1338_v27 = vmul.f32 %v3796_v15, %v1303_v56  ;;  %vm1343_vm12 = vweird.f32 %v3796_v15 }
 0x249   : > { %vm1344_vm8 = vmor %vm1342_vm7, %vm1343_vm12  ;;  %vm6248_vm7 = vcmp.eq.s32.totalorder %v4430_v46, 63  ;;  %vm6328_vm12 = vcmask 130048  }
 0x24a   : > { %v1339_v26 = vsub.f32 1.0, %v1338_v27 }
 0x24c   : > { %v1340_v3 = vmul.f32 %v3796_v15, %v1339_v26 }
 0x24e   : > { %v1341_v17 = vadd.f32 %v3796_v15, %v1340_v3 }
 0x250   : > { %v1345_v55 = vsel %vm1344_vm8, %v3796_v15, %v1341_v17 }
 0x251   : > { %v1350_v25 = vsel %vm1347_vm1, %v1349_v31, %v1345_v55  ;;  %v1361_v31 = vand.u32 2147483647, %v1306_v40 }
 0x252   : > { %v1351_v4 = vmul.f32 %v4490_v38, %v1350_v25 }
 0x254   : > { %3687 = vmatmul.msk.f32.gmra.mxu1 %vm6328_vm12, %v1351_v4 }
 0x26d   : > { %v724_v19 = vpop.xlane.xlu0 %723 }
 0x26e   : > { %3797 = vrcp.f32 %v724_v19  ;;  %v839_v18 = vand.u32 2147483647, %v724_v19  ;;  %v841_v52 = vand.u32 2147483648, %v724_v19  ;;  %vm835_vm4 = vweird.f32 %v724_v19 }
 0x26f   : > { %3799 = vrcp.f32 %v1306_v40 }
 0x270   : > { %v842_v3 = vor.u32 1.1754944e-38, %v841_v52  ;;  %vm840_vm2 = vcmp.eq.f32.partialorder %v839_v18, 8.507059e+37 }
 0x274   : > { %v3798_v39 = vpop.eup %3797 }
 0x275   : > { %v831_v10 = vmul.f32 %v3798_v39, %v724_v19  ;;  %v3800_v27 = vpop.eup %3799  ;;  %vm836_vm3 = vweird.f32 %v3798_v39  ;;  %v1264_v55 = vpop.xlane.xlu0 %1263 }
 0x276   : > { %v1353_v59 = vmul.f32 %v3800_v27, %v1306_v40  ;;  %vm837_vm0 = vmor %vm835_vm4, %vm836_vm3  ;;  %vm1358_vm8 = vweird.f32 %v3800_v27  ;;  %vm1362_vm3 = vcmp.eq.f32.partialorder %v1361_v31, 8.507059e+37  ;;  %vm6247_vm4 = vcmp.le.s32.totalorder %v4255_v23, %v4370_v12 }
 0x277   : > { %v832_v36 = vsub.f32 1.0, %v831_v10  ;;  %vm1359_vm1 = vmor %vm1357_vm11, %vm1358_vm8  ;;  %vm6246_vm8 = vcmp.le.s32.totalorder %v4255_v23, %v4390_v20  ;;  %v6339_v31 = vmov 0 }
 0x278   : > { %v1354_v6 = vsub.f32 1.0, %v1353_v59 }
 0x279   : > { %v833_v26 = vmul.f32 %v3798_v39, %v832_v36 }
 0x27a   : > { %v1355_v56 = vmul.f32 %v3800_v27, %v1354_v6 }
 0x27b   : > { %v834_v14 = vadd.f32 %v3798_v39, %v833_v26 }
 0x27c   : > { %v1356_v36 = vadd.f32 %v3800_v27, %v1355_v56  ;;  %v3677_v56 = vadd.s32 4294967280, %v4445_v21 }
 0x27d   : > { %v838_v10 = vsel %vm837_vm0, %v3798_v39, %v834_v14  ;;  %vm6329_vm0 = vmmov %vm6328_vm12  ;;  %vm6333_vm12 = vcmask 523264   ;;  %v1270_v4 = vpop.xlane.xlu0 %1269 }
 0x27e   : > { %v843_v17 = vsel %vm840_vm2, %v842_v3, %v838_v10  ;;  %v1360_v38 = vsel %vm1359_vm1, %v3800_v27, %v1356_v36  ;;  %vm6330_vm2 = vmmov %vm6329_vm0  ;;  %v1277_v27 = vsub.f32 %v4462_v50, %v4549_v16  ;;  %v1280_v10 = vsub.f32 %v4530_v8, %v1270_v4 }
 0x27f   : > { %v4586_v63 = vmul.f32 %v4499_v61, %v843_v17  ;;  %v1365_v19 = vsel %vm1362_vm3, %v1364_v42, %v1360_v38  ;;  %vm6331_vm11 = vmmov %vm6329_vm0  ;;  %v6351_v4 = vmov 0 }
 0x280   : > { %v1366_v53 = vmul.f32 %v4488_v45, %v1365_v19  ;;  %vm6334_vm1 = vmmov %vm6329_vm0  ;;  %v1294_v36 = vmul.f32 1.442695, %v1280_v10  ;;  %v3678_v19 = vadd.s32 4294967280, %v4497_v48 }
 0x281   : > { %v860_v39 = vsel %vm6248_vm7, %v4586_v63, 0.0  ;;  %vm6335_vm3 = vmmov %vm6333_vm12 }
 0x282   : > { %v874_v15 = vsel %vm6329_vm0, %v860_v39, 0.0  ;;  %3688 = vmatmul.msk.f32.gmra.mxu1 %vm6330_vm2, %v1366_v53  ;;  %vm533_vm0 = vcmp.le.s32.totalorder %v4255_v23, %v4410_v35  ;;  %vm548_vm2 = vcmp.ge.s32.totalorder %v4255_v23, %v4370_v12 }
 0x283   : > { %v876_v44 = vrot.slane %v874_v15, 4 }
 0x285   : > { %v877_v18 = vadd.f32 %v876_v44, %v874_v15 }
 0x287   : > { %v878_v40 = vrot.slane %v877_v18, 2 }
 0x289   : > { %v879_v52 = vadd.f32 %v878_v40, %v877_v18  ;;  %v1180_v40 = vmul.f32 %v4268_v32, %v4199_v0  ;;  %v1178_v0 = vmul.f32 %v4268_v32, %v4206_v2  ;;  %v6347_v2 = vmov 0 }
 0x28b   : > { %v880_v61 = vrot.slane %v879_v52, 1  ;;  %1638 = vmatpush.xpose.msra.mxu1 %v1180_v40 }
 0x28d   : > { %v881_v59 = vadd.f32 %v880_v61, %v879_v52  ;;  %v1179_v52 = vmul.f32 %v4268_v32, %v4202_v1 }
 0x28f   : > { %3683 = vmatmul.msk.f32.vlgmr.msra.gmra.mxu3 %vm6331_vm11, %v881_v59  ;;  %vm4638_vm11 = vmand %vm533_vm0, %vm548_vm2  ;;  %vm549_vm0 = vcmp.ge.s32.totalorder %v4255_v23, %v3677_v56  ;;  %v6344_v59 = vmov 0  ;;  %1639 = vmatpush.xpose.msra.mxu1 %v1179_v52 }
 0x290   : > { %v6337_v58 = vsel %vm4638_vm11, 4294967295, %v6336_v58 }
 0x293   : > { %1640 = vmatpush.xpose.msra.mxu1 %v1178_v0 }
 0x297   : > { %927 = vmatmul.f32.vlgmr.msrb.gmra.mxu3 %v4294_v41  ;;  %v1288_v41 = vmul.f32 1.442695, %v1277_v27 }
 0x299   : > { %3801 = vpow2.f32 %v1288_v41 }
 0x29f   : > { %930 = vmatmul.f32.gmra.mxu3 %v4308_v47  ;;  %v4619_v50 = vpop.eup %3801 }
 0x2a0   : > { %v1307_v25 = vsel %vm6334_vm1, %v4619_v50, 0.0 }
 0x2a7   : > { %933 = vmatmul.f32.gmra.mxu3 %v4313_v49 }
 0x2af   : > { %936 = vmatmul.f32.gmra.mxu3 %v4318_v51  ;;  %v1278_v51 = vsub.f32 %v4513_v34, %v1264_v55  ;;  %v1279_v34 = vsub.f32 %v4474_v30, %v4551_v28  ;;  %v1296_v28 = vmul.f32 1.442695, %v1281_v22  ;;  %v6349_v22 = vmov 0 }
 0x2b1   : > { %v1292_v30 = vmul.f32 1.442695, %v1279_v34 }
 0x2b7   : > { %939 = vmatmul.f32.gmra.mxu3 %v4327_v54 }
 0x2bf   : > { %942 = vmatmul.f32.gmra.mxu3 %v4336_v57 }
 0x2c7   : > { %945 = vmatmul.f32.gmra.mxu3 %v4345_v60  ;;  %v1290_v60 = vmul.f32 1.442695, %v1278_v51 }
 0x2c9   : > { %3803 = vpow2.f32 %v1290_v60  ;;  %v3680_v60 = vadd.s32 4294967280, %v4516_v33 }
 0x2ca   : > { %3805 = vpow2.f32 %v1292_v30 }
 0x2cb   : > { %3807 = vpow2.f32 %v1296_v28 }
 0x2cc   : > { %3809 = vpow2.f32 %v1294_v36 }
 0x2cf   : > { %948 = vmatmul.f32.gmra.mxu3 %v4350_v62  ;;  %v4642_v37 = vpop.eup %3803 }
 0x2d0   : > { %v1310_v17 = vsel %vm6334_vm1, %v4642_v37, 0.0  ;;  %v4661_v38 = vpop.eup %3805 }
 0x2d1   : > { %v4664_v15 = vpop.eup %3807 }
 0x2d2   : > { %v4687_v27 = vpop.eup %3809 }
 0x312   : > { %v4603_v45 = vpop.f32.mrf.mxu3 }
 0x313   : > { %6332 = vst [vmem:[#allocation37_spill] sm:$0xff] %v4603_v45 }
 0x31a   : > { %v928_v47 = vpop.f32.mrf.mxu3 }
 0x31b   : > { %v952_v49 = vmul.f32 0.17677669, %v928_v47 }
 0x31d   : > { %v4613_v54 = vsel %vm6247_vm4, %v952_v49, -inf  ;;  %v1177_v49 = vmul.f32 %v4268_v32, %v4212_v5  ;;  %v1175_v5 = vmul.f32 %v4268_v32, %v4222_v9  ;;  %v1173_v9 = vmul.f32 %v4268_v32, %v4232_v13 }
 0x31e   : > { %v968_v57 = vsel %vm6333_vm12, %v4613_v54, -inf  ;;  %vm6338_vm12 = vmmov %vm6335_vm3 }
 0x31f   : > { %969 = vmax.xlane.f32.xlu0 %v968_v57  ;;  %1641 = vmatpush.xpose.msra.mxu1 %v1177_v49 }
 0x322   : > { %v931_v62 = vpop.f32.mrf.mxu3 }
 0x323   : > { %v953_v16 = vmul.f32 0.17677669, %v931_v62 }
 0x325   : > { %v4626_v26 = vsel %vm6246_vm8, %v953_v16, -inf  ;;  %vm550_vm8 = vcmp.ge.s32.totalorder %v4255_v23, %v3678_v19 }
 0x326   : > { %v971_v6 = vsel %vm6335_vm3, %v4626_v26, -inf  ;;  %vm534_vm3 = vcmp.le.s32.totalorder %v4255_v23, %v4445_v21 }
 0x327   : > { %1308 = vadd.xlane.f32.xlu0 %v1307_v25  ;;  %972 = vmax.xlane.f32.xlu2 %v971_v6  ;;  %vm4657_vm2 = vmand %vm534_vm3, %vm549_vm0  ;;  %vm535_vm0 = vcmp.le.s32.totalorder %v4255_v23, %v4497_v48  ;;  %v3679_v48 = vadd.s32 4294967280, %v4448_v24 }
 0x328   : > { %v6340_v31 = vsel %vm4657_vm2, 4294967295, %v6339_v31 }
 0x32a   : > { %v934_v14 = vpop.f32.mrf.mxu3 }
 0x32b   : > { %v954_v3 = vmul.f32 0.17677669, %v934_v14 }
 0x32d   : > { %v4648_v35 = vsel %vm4638_vm11, %v954_v3, -inf  ;;  %v6353_v3 = vld [vmem:[#allocation9_spill] sm:$0xff] }
 0x32e   : > { %v974_v42 = vsel %vm6338_vm12, %v4648_v35, -inf  ;;  %vm6341_vm12 = vmmov %vm6334_vm1  ;;  %vm6342_vm1 = vcmask 523264   ;;  %v2040_v56 = vmul.f32 %v4299_v43, %v6353_v3 }
 0x32f   : > { %975 = vmax.xlane.f32.xlu1 %v974_v42  ;;  %1311 = vadd.xlane.f32.xlu2 %v1310_v17  ;;  %v1313_v21 = vsel %vm6341_vm12, %v4661_v38, 0.0  ;;  %vm6343_vm3 = vmmov %vm6341_vm12 }
 0x330   : > { %v1319_v18 = vsel %vm6343_vm3, %v4664_v15, 0.0  ;;  %vm4683_vm12 = vmand %vm535_vm0, %vm550_vm8  ;;  %vm551_vm0 = vcmp.ge.s32.totalorder %v4255_v23, %v3679_v48 }
 0x331   : > { %v6345_v59 = vsel %vm4683_vm12, 4294967295, %v6344_v59  ;;  %vm6346_vm8 = vmmov %vm6343_vm3  ;;  %vm536_vm3 = vcmp.le.s32.totalorder %v4255_v23, %v4448_v24  ;;  %v1176_v24 = vmul.f32 %v4268_v32, %v4217_v7  ;;  %v3681_v7 = vadd.s32 4294967280, %v4430_v46 }
 0x332   : > { %v937_v8 = vpop.f32.mrf.mxu3  ;;  %v1316_v47 = vsel %vm6346_vm8, %v4687_v27, 0.0  ;;  %vm4705_vm4 = vmand %vm536_vm3, %vm551_vm0  ;;  %vm537_vm8 = vcmp.le.s32.totalorder %v4255_v23, %v4516_v33  ;;  %vm552_vm3 = vcmp.ge.s32.totalorder %v4255_v23, %v3680_v60  ;;  %v1174_v33 = vmul.f32 %v4268_v32, %v4227_v11 }
 0x333   : > { %v955_v39 = vmul.f32 0.17677669, %v937_v8  ;;  %v6348_v2 = vsel %vm4705_vm4, 4294967295, %v6347_v2  ;;  %1642 = vmatpush.xpose.msra.mxu1 %v1176_v24  ;;  %vm4723_vm0 = vmand %vm537_vm8, %vm552_vm3  ;;  %vm538_vm8 = vcmp.le.s32.totalorder %v4255_v23, %v4430_v46  ;;  %vm553_vm3 = vcmp.ge.s32.totalorder %v4255_v23, %v3681_v7 }
 0x334   : > { %v6350_v22 = vsel %vm4723_vm0, 4294967295, %v6349_v22  ;;  %vm4741_vm7 = vmand %vm538_vm8, %vm553_vm3  ;;  %v2041_v11 = vmul.f32 %v4299_v43, %v4262_v29 }
 0x335   : > { %v4668_v53 = vsel %vm4657_vm2, %v955_v39, -inf  ;;  %v6352_v4 = vsel %vm4741_vm7, 4294967295, %v6351_v4  ;;  %vm6354_vm8 = vmmov %vm6342_vm1 }
 0x336   : > { %v977_v44 = vsel %vm6342_vm1, %v4668_v53, -inf  ;;  %vm6355_vm3 = vmmov %vm6342_vm1 }
 0x337   : > { %1314 = vadd.xlane.f32.xlu1 %v1313_v21  ;;  %978 = vmax.xlane.f32.xlu0 %v977_v44 }
 0x338   : > { %1320 = vadd.xlane.f32.xlu2 %v1319_v18  ;;  %1643 = vmatpush.xpose.msra.mxu1 %v1175_v5 }
 0x33a   : > { %v940_v61 = vpop.f32.mrf.mxu3 }
 0x33b   : > { %v956_v41 = vmul.f32 0.17677669, %v940_v61 }
 0x33c   : > { %1644 = vmatpush.xpose.msra.mxu1 %v1174_v33 }
 0x33d   : > { %v4692_v55 = vsel %vm4683_vm12, %v956_v41, -inf }
 0x33e   : > { %v980_v1 = vsel %vm6342_vm1, %v4692_v55, -inf }
 0x33f   : > { %981 = vmax.xlane.f32.xlu0 %v980_v1  ;;  %1317 = vadd.xlane.f32.xlu1 %v1316_v47 }
 0x340   : > { %1645 = vmatpush.xpose.msra.mxu1 %v1173_v9 }
 0x342   : > { %v943_v51 = vpop.f32.mrf.mxu3 }
 0x343   : > { %v957_v57 = vmul.f32 0.17677669, %v943_v51 }
 0x344   : > { %2329 = vmatpush.msrb.mxu1 %v2041_v11 }
 0x345   : > { %v4712_v62 = vsel %vm4705_vm4, %v957_v57, -inf }
 0x346   : > { %v983_v16 = vsel %vm6342_vm1, %v4712_v62, -inf  ;;  %2330 = vmatpush.msrb.mxu1 %v2040_v56 }
 0x347   : > { %984 = vmax.xlane.f32.xlu2 %v983_v16 }
 0x34a   : > { %v946_v34 = vpop.f32.mrf.mxu3 }
 0x34b   : > { %v958_v25 = vmul.f32 0.17677669, %v946_v34 }
 0x34d   : > { %v4730_v6 = vsel %vm4723_vm0, %v958_v25, -inf  ;;  %vm6359_vm0 = vcmask 130048  }
 0x34e   : > { %v986_v30 = vsel %vm6342_vm1, %v4730_v6, -inf }
 0x34f   : > { %987 = vmax.xlane.f32.xlu0 %v986_v30 }
 0x352   : > { %v949_v28 = vpop.f32.mrf.mxu3 }
 0x353   : > { %v959_v14 = vmul.f32 0.17677669, %v949_v28 }
 0x355   : > { %v4751_v10 = vsel %vm4741_vm7, %v959_v14, -inf }
 0x356   : > { %v989_v13 = vsel %vm6342_vm1, %v4751_v10, -inf }
 0x357   : > { %990 = vmax.xlane.f32.xlu2 %v989_v13 }
 0x392   : > { %v970_v42 = vpop.xlane.xlu0 %969 }
 0x393   : > { %v992_v17 = vsub.f32 %v4613_v54, %v970_v42 }
 0x395   : > { %v1000_v36 = vmul.f32 1.442695, %v992_v17 }
 0x397   : > { %3811 = vpow2.f32 %v1000_v36 }
 0x39a   : > { %v973_v8 = vpop.xlane.xlu2 %972  ;;  %v1309_v39 = vpop.xlane.xlu0 %1308 }
 0x39b   : > { %v993_v19 = vsub.f32 %v4626_v26, %v973_v8  ;;  %3813 = vrcp.f32 %v1309_v39  ;;  %v1378_v49 = vand.u32 2147483648, %v1309_v39  ;;  %v1376_v57 = vand.u32 2147483647, %v1309_v39 }
 0x39d   : > { %v4757_v21 = vpop.eup %3811  ;;  %v1002_v44 = vmul.f32 1.442695, %v993_v19  ;;  %v1379_v25 = vor.u32 1.1754944e-38, %v1378_v49 }
 0x39e   : > { %v1016_v18 = vsel %vm6354_vm8, %v4757_v21, 0.0  ;;  %vm1372_vm8 = vweird.f32 %v1309_v39 }
 0x39f   : > { %3815 = vpow2.f32 %v1002_v44  ;;  %1017 = vadd.xlane.f32.xlu1 %v1016_v18 }
 0x3a1   : > { %v3814_v40 = vpop.eup %3813 }
 0x3a2   : > { %v1368_v52 = vmul.f32 %v3814_v40, %v1309_v39  ;;  %v976_v61 = vpop.xlane.xlu1 %975  ;;  %v1312_v41 = vpop.xlane.xlu2 %1311  ;;  %vm1373_vm1 = vweird.f32 %v3814_v40 }
 0x3a3   : > { %v994_v54 = vsub.f32 %v4648_v35, %v976_v61  ;;  %3817 = vrcp.f32 %v1312_v41  ;;  %vm4766_vm7 = vmor %vm1372_vm8, %vm1373_vm1  ;;  %v1393_v28 = vand.u32 2147483648, %v1312_v41  ;;  %v1391_v17 = vand.u32 2147483647, %v1312_v41 }
 0x3a4   : > { %v1369_v48 = vsub.f32 1.0, %v1368_v52  ;;  %vm1387_vm8 = vweird.f32 %v1312_v41 }
 0x3a5   : > { %v4762_v0 = vpop.eup %3815  ;;  %v1004_v26 = vmul.f32 1.442695, %v994_v54  ;;  %v1394_v39 = vor.u32 1.1754944e-38, %v1393_v28 }
 0x3a6   : > { %v1370_v1 = vmul.f32 %v3814_v40, %v1369_v48  ;;  %v1019_v47 = vsel %vm6355_vm3, %v4762_v0, 0.0  ;;  %vm1377_vm3 = vcmp.eq.f32.partialorder %v1376_v57, 8.507059e+37 }
 0x3a7   : > { %3819 = vpow2.f32 %v1004_v26  ;;  %1020 = vadd.xlane.f32.xlu0 %v1019_v47 }
 0x3a8   : > { %v1371_v51 = vadd.f32 %v3814_v40, %v1370_v1 }
 0x3a9   : > { %v3818_v60 = vpop.eup %3817 }
 0x3aa   : > { %v1383_v35 = vmul.f32 %v3818_v60, %v1312_v41  ;;  %v4770_v16 = vpop.xlane.xlu1 %1314  ;;  %v979_v5 = vpop.xlane.xlu0 %978  ;;  %v1375_v34 = vsel %vm4766_vm7, %v3814_v40, %v1371_v51  ;;  %vm6358_vm7 = vcmask 523264   ;;  %vm1388_vm1 = vweird.f32 %v3818_v60 }
 0x3ab   : > { %3821 = vrcp.f32 %v4770_v16  ;;  %v4775_v7 = vpop.xlane.xlu2 %1320  ;;  %v995_v33 = vsub.f32 %v4668_v53, %v979_v5  ;;  %v1380_v14 = vsel %vm1377_vm3, %v1379_v25, %v1375_v34  ;;  %vm1389_vm4 = vmor %vm1387_vm8, %vm1388_vm1  ;;  %vm1392_vm3 = vcmp.eq.f32.partialorder %v1391_v17, 8.507059e+37 }
 0x3ac   : > { %v1384_v30 = vsub.f32 1.0, %v1383_v35  ;;  %3823 = vrcp.f32 %v4775_v7  ;;  %v1381_v13 = vmul.f32 %v4619_v50, %v1380_v14  ;;  %v1408_v61 = vand.u32 2147483648, %v4770_v16 }
 0x3ad   : > { %v4779_v9 = vpop.eup %3819  ;;  %v1006_v11 = vmul.f32 1.442695, %v995_v33  ;;  %v1438_v1 = vand.u32 2147483648, %v4775_v7  ;;  %v1406_v49 = vand.u32 2147483647, %v4770_v16  ;;  %vm1402_vm1 = vweird.f32 %v4770_v16 }
 0x3ae   : > { %v1385_v56 = vmul.f32 %v3818_v60, %v1384_v30  ;;  %v1022_v42 = vsel %vm6358_vm7, %v4779_v9, 0.0  ;;  %3689 = vmatmul.msk.f32.gmra.mxu1 %vm6359_vm0, %v1381_v13  ;;  %vm6361_vm8 = vcmask 130048   ;;  %v1409_v5 = vor.u32 1.1754944e-38, %v1408_v61 }
 0x3af   : > { %3825 = vpow2.f32 %v1006_v11  ;;  %1023 = vadd.xlane.f32.xlu1 %v1022_v42  ;;  %v1439_v25 = vor.u32 1.1754944e-38, %v1438_v1 }
 0x3b0   : > { %v1386_v53 = vadd.f32 %v3818_v60, %v1385_v56 }
 0x3b1   : > { %v3822_v36 = vpop.eup %3821 }
 0x3b2   : > { %v3824_v8 = vpop.eup %3823  ;;  %v1398_v19 = vmul.f32 %v3822_v36, %v4770_v16  ;;  %v4786_v44 = vpop.xlane.xlu1 %1317  ;;  %v1390_v18 = vsel %vm1389_vm4, %v3818_v60, %v1386_v53  ;;  %vm6360_vm4 = vmmov %vm6358_vm7  ;;  %vm1403_vm0 = vweird.f32 %v3822_v36 }
 0x3b3   : > { %v982_v50 = vpop.xlane.xlu0 %981  ;;  %v1428_v40 = vmul.f32 %v3824_v8, %v4775_v7  ;;  %3827 = vrcp.f32 %v4786_v44  ;;  %v1395_v54 = vsel %vm1392_vm3, %v1394_v39, %v1390_v18  ;;  %vm1433_vm7 = vweird.f32 %v3824_v8  ;;  %vm1404_vm12 = vmor %vm1402_vm1, %vm1403_vm0 }
 0x3b4   : > { %v1399_v52 = vsub.f32 1.0, %v1398_v19  ;;  %v996_v41 = vsub.f32 %v4692_v55, %v982_v50  ;;  %v1396_v47 = vmul.f32 %v4642_v37, %v1395_v54  ;;  %v1436_v55 = vand.u32 2147483647, %v4775_v7 }
 0x3b5   : > { %v4792_v48 = vpop.eup %3825  ;;  %v1429_v26 = vsub.f32 1.0, %v1428_v40  ;;  %vm1432_vm3 = vweird.f32 %v4775_v7  ;;  %v1423_v7 = vand.u32 2147483648, %v4786_v44 }
 0x3b6   : > { %v1400_v51 = vmul.f32 %v3822_v36, %v1399_v52  ;;  %v1008_v57 = vmul.f32 1.442695, %v996_v41  ;;  %v1025_v60 = vsel %vm6360_vm4, %v4792_v48, 0.0  ;;  %3690 = vmatmul.msk.f32.gmra.mxu1 %vm6361_vm8, %v1396_v47  ;;  %vm1434_vm2 = vmor %vm1432_vm3, %vm1433_vm7  ;;  %vm1407_vm4 = vcmp.eq.f32.partialorder %v1406_v49, 8.507059e+37 }
 0x3b7   : > { %v1430_v24 = vmul.f32 %v3824_v8, %v1429_v26  ;;  %1026 = vadd.xlane.f32.xlu2 %v1025_v60  ;;  %vm1437_vm11 = vcmp.eq.f32.partialorder %v1436_v55, 8.507059e+37  ;;  %vm6364_vm7 = vmmov %vm6361_vm8  ;;  %v1424_v50 = vor.u32 1.1754944e-38, %v1423_v7 }
 0x3b8   : > { %3829 = vpow2.f32 %v1008_v57  ;;  %v1401_v35 = vadd.f32 %v3822_v36, %v1400_v51  ;;  %vm6365_vm1 = vmmov %vm6364_vm7  ;;  %v6367_v51 = vld [vmem:[#allocation14_spill] sm:$0xff] }
 0x3b9   : > { %v3828_v37 = vpop.eup %3827  ;;  %v1431_v34 = vadd.f32 %v3824_v8, %v1430_v24  ;;  %v636_v57 = vmul.f32 0.17677669, %v6367_v51  ;;  %v6391_v51 = vld [vmem:[#allocation25_spill] sm:$0xff] }
 0x3ba   : > { %v1413_v33 = vmul.f32 %v3828_v37, %v4786_v44  ;;  %v985_v30 = vpop.xlane.xlu2 %984  ;;  %v1405_v28 = vsel %vm1404_vm12, %v3822_v36, %v1401_v35  ;;  %vm1418_vm0 = vweird.f32 %v3828_v37  ;;  %v1421_v36 = vand.u32 2147483647, %v4786_v44 }
 0x3bb   : > { %v1435_v11 = vsel %vm1434_vm2, %v3824_v8, %v1431_v34  ;;  %v997_v16 = vsub.f32 %v4712_v62, %v985_v30  ;;  %v1410_v14 = vsel %vm1407_vm4, %v1409_v5, %v1405_v28  ;;  %vm6362_vm2 = vcmask 523264   ;;  %v6373_v30 = vld [vmem:[#allocation19_spill] sm:$0xff] }
 0x3bc   : > { %v1440_v56 = vsel %vm1437_vm11, %v1439_v25, %v1435_v11  ;;  %v1414_v13 = vsub.f32 1.0, %v1413_v33  ;;  %v1411_v42 = vmul.f32 %v4661_v38, %v1410_v14  ;;  %vm6363_vm11 = vcmp.eq.s32.totalorder %v4430_v46, 63  ;;  %vm6366_vm4 = vmmov %vm6362_vm2 }
 0x3bd   : > { %v1441_v17 = vmul.f32 %v4664_v15, %v1440_v56  ;;  %v1010_v53 = vmul.f32 1.442695, %v997_v16  ;;  %vm1417_vm12 = vweird.f32 %v4786_v44  ;;  %vm1422_vm3 = vcmp.eq.f32.partialorder %v1421_v36, 8.507059e+37  ;;  %v6451_v56 = vld [vmem:[#allocation8_spill] sm:$0xff] }
 0x3be   : > { %v4808_v39 = vpop.eup %3829  ;;  %v1415_v19 = vmul.f32 %v3828_v37, %v1414_v13  ;;  %3691 = vmatmul.msk.f32.gmra.mxu1 %vm6364_vm7, %v1411_v42  ;;  %vm1419_vm8 = vmor %vm1417_vm12, %vm1418_vm0  ;;  %v639_v28 = vmul.f32 0.17677669, %v6373_v30  ;;  %v4041_v30 = vld [vmem:[%s4196_s21 + $0x38] sm:$0xff] }
 0x3bf   : > { %3831 = vpow2.f32 %v1010_v53  ;;  %v1028_v62 = vsel %vm6362_vm2, %v4808_v39, 0.0  ;;  %v1579_v8 = vsel %vm6363_vm11, %v1441_v17, 0.0  ;;  %vm6368_vm0 = vmmov %vm6365_vm1 }
 0x3c0   : > { %1029 = vadd.xlane.f32.xlu0 %v1028_v62  ;;  %v1416_v38 = vadd.f32 %v3828_v37, %v1415_v19  ;;  %v1593_v15 = vsel %vm6365_vm1, %v1579_v8, 0.0  ;;  %vm6370_vm2 = vmmov %vm6368_vm0  ;;  %v4843_v14 = vsel %vm4456_vm5, %v639_v28, -inf  ;;  %v6380_v19 = vld [vmem:[#allocation17_spill] sm:$0xff]  ;;  %v6381_v62 = vld [vmem:[#allocation28_spill] sm:$0xff] }
 0x3c1   : > { %v1595_v18 = vrot.slane %v1593_v15, 4  ;;  %vm6371_vm11 = vmmov %vm6368_vm0  ;;  %v638_v36 = vmul.f32 0.17677669, %v6380_v19  ;;  %v6399_v28 = vld [vmem:[#allocation7_spill] sm:$0xff] }
 0x3c2   : > { %v988_v40 = vpop.xlane.xlu0 %987  ;;  %v1420_v52 = vsel %vm1419_vm8, %v3828_v37, %v1416_v38  ;;  %v4829_v37 = vsel %vm4381_vm10, %v636_v57, -inf  ;;  %vm6372_vm12 = vmmov %vm6366_vm4  ;;  %v6383_v38 = vld [vmem:[#allocation22_spill] sm:$0xff]  ;;  %v641_v57 = vmul.f32 0.17677669, %v6391_v51  ;;  %v6401_v51 = vld [vmem:[#allocation23_spill] sm:$0xff] }
 0x3c3   : > { %v998_v61 = vsub.f32 %v4730_v6, %v988_v40  ;;  %v1425_v41 = vsel %vm1422_vm3, %v1424_v50, %v1420_v52  ;;  %v1596_v54 = vadd.f32 %v1595_v18, %v1593_v15  ;;  %v653_v25 = vsel %vm6371_vm11, %v4829_v37, -inf  ;;  %vm6375_vm7 = vmmov %vm6368_vm0  ;;  %v6384_v50 = vld [vmem:[#allocation11_spill] sm:$0xff] }
 0x3c4   : > { %v1426_v26 = vmul.f32 %v4687_v27, %v1425_v41  ;;  %vm6378_vm1 = vmmov %vm6368_vm0  ;;  %v640_v15 = vmul.f32 0.17677669, %v6383_v38  ;;  %v6385_v18 = vld [vmem:[#allocation35_spill] sm:$0xff]  ;;  %v4868_v41 = vsel %vm4421_vm15, %v638_v36, -inf  ;;  %v4044_v36 = vld [vmem:[%s4196_s21 + $0x20] sm:$0xff] }
 0x3c5   : > { %v4820_v1 = vpop.eup %3831  ;;  %v1012_v44 = vmul.f32 1.442695, %v998_v61  ;;  %v1597_v47 = vrot.slane %v1596_v54, 2  ;;  %v662_v7 = vsel %vm6378_vm1, %v4843_v14, -inf  ;;  %vm6379_vm8 = vmmov %vm6366_vm4 }
 0x3c6   : > { %v1031_v49 = vsel %vm6366_vm4, %v4820_v1, 0.0  ;;  %3692 = vmatmul.msk.f32.gmra.mxu1 %vm6368_vm0, %v1426_v26  ;;  %vm6382_vm3 = vmmov %vm6368_vm0 }
 0x3c7   : > { %3833 = vpow2.f32 %v1012_v44  ;;  %1032 = vadd.xlane.f32.xlu1 %v1031_v49  ;;  %v1598_v60 = vadd.f32 %v1597_v47, %v1596_v54  ;;  %v6388_v54 = vld [vmem:[#allocation36_spill] sm:$0xff]  ;;  %v4873_v44 = vsel %vm4507_vm9, %v640_v15, -inf  ;;  %vm6390_vm4 = vmmov %vm6368_vm0  ;;  %v659_v49 = vsel %vm6368_vm0, %v4868_v41, -inf  ;;  %v4046_v15 = vld [vmem:[%s4196_s21 + $0x10] sm:$0xff] }
 0x3c8   : > { %vm6395_vm11 = vmmov %vm6368_vm0 }
 0x3c9   : > { %v1599_v24 = vrot.slane %v1598_v60, 1 }
 0x3ca   : > { %v991_v6 = vpop.xlane.xlu2 %990 }
 0x3cb   : > { %v999_v55 = vsub.f32 %v4751_v10, %v991_v6  ;;  %v1600_v35 = vadd.f32 %v1599_v24, %v1598_v60  ;;  %v6374_v10 = vld [vmem:[#allocation15_spill] sm:$0xff]  ;;  %v6393_v24 = vld [vmem:[#allocation12_spill] sm:$0xff] }
 0x3cc   : > { %v637_v11 = vmul.f32 0.17677669, %v6374_v10  ;;  %v590_v10 = vmul.f32 %v4041_v30, %v6399_v28 }
 0x3cd   : > { %v4831_v5 = vpop.eup %3833  ;;  %v1014_v34 = vmul.f32 1.442695, %v999_v55  ;;  %3702 = vmatmul.msk.f32.vlgmr.msrb.gmra.mxu0 %vm6370_vm2, %v1600_v35  ;;  %vm6392_vm2 = vmmov %vm6368_vm0  ;;  %v4885_v55 = vsel %vm4468_vm6, %v641_v57, -inf  ;;  %v6402_v57 = vld [vmem:[#allocation26_spill] sm:$0xff] }
 0x3ce   : > { %v1034_v33 = vsel %vm6372_vm12, %v4831_v5, 0.0  ;;  %3693 = vmatmul.msk.f32.gmra.mxu1 %vm6375_vm7, %v1441_v17  ;;  %v4847_v13 = vsel %vm4401_vm13, %v637_v11, -inf  ;;  %v642_v17 = vmul.f32 0.17677669, %v6381_v62  ;;  %v665_v60 = vsel %vm6392_vm2, %v4873_v44, -inf  ;;  %1976 = vmatpush.msra.mxu0 %v590_v10  ;;  %v4042_v11 = vld [vmem:[%s4196_s21 + $0x30] sm:$0xff] }
 0x3cf   : > { %3835 = vpow2.f32 %v1014_v34  ;;  %654 = vmax.xlane.f32.xlu1 %v653_v25  ;;  %1035 = vadd.xlane.f32.xlu2 %v1034_v33  ;;  %v656_v8 = vsel %vm6382_vm3, %v4847_v13, -inf  ;;  %v668_v35 = vsel %vm6395_vm11, %v4885_v55, -inf  ;;  %v6396_v34 = vld [vmem:[#allocation13_spill] sm:$0xff]  ;;  %v6397_v25 = vld [vmem:[#allocation16_spill] sm:$0xff]  ;;  %v6398_v33 = vld [vmem:[#allocation18_spill] sm:$0xff]  ;;  %v587_v62 = vmul.f32 %v4044_v36, %v6399_v28 }
 0x3d0   : > { %v4864_v52 = vsel %vm4524_vm14, %v642_v17, -inf  ;;  %v6400_v17 = vld [vmem:[#allocation20_spill] sm:$0xff]  ;;  %vm6406_vm3 = vcmask 523264   ;;  %vm2744_vm14 = vcmp.ge.s32.totalorder %v4255_v23, 96 }
 0x3d1   : > { %v671_v47 = vsel %vm6390_vm4, %v4864_v52, -inf }
 0x3d5   : > { %v4849_v42 = vpop.eup %3835 }
 0x3d6   : > { %v1037_v53 = vsel %vm6379_vm8, %v4849_v42, 0.0  ;;  %1646 = vmatmul.f32.vlgmr.msra.gmra.mxu1 %v6384_v50  ;;  %v585_v50 = vmul.f32 %v4046_v15, %v6399_v28 }
 0x3d7   : > { %663 = vmax.xlane.f32.xlu1 %v662_v7  ;;  %1038 = vadd.xlane.f32.xlu0 %v1037_v53  ;;  %v589_v7 = vmul.f32 %v4042_v11, %v6399_v28  ;;  %v4043_v53 = vld [vmem:[%s4196_s21 + $0x28] sm:$0xff] }
 0x3d8   : > { %657 = vmax.xlane.f32.xlu2 %v656_v8  ;;  %2410 = vmatpush.msra.mxu1 %v6385_v18  ;;  %v588_v19 = vmul.f32 %v4043_v53, %v6399_v28  ;;  %v4045_v8 = vld [vmem:[%s4196_s21 + $0x18] sm:$0xff]  ;;  %v4047_v18 = vld [vmem:[%s4196_s21 + $0x8] sm:$0xff] }
 0x3d9   : > { %1977 = vmatpush.msra.mxu0 %v589_v7  ;;  %v586_v38 = vmul.f32 %v4045_v8, %v6399_v28 }
 0x3da   : > { %2411 = vmatpush.msra.mxu1 %v6388_v54  ;;  %v584_v54 = vmul.f32 %v4047_v18, %v6399_v28 }
 0x3db   : > { %1978 = vmatpush.msra.mxu0 %v588_v19  ;;  %v4050_v19 = vld [vmem:[%s4190_s18 + $0x30] sm:$0xff] }
 0x3dc   : > { %v2028_v36 = vmul.f32 %v4050_v19, %v4299_v43 }
 0x3dd   : > { %1979 = vmatpush.msra.mxu0 %v587_v62 }
 0x3de   : > { %1649 = vmatmul.f32.gmra.mxu1 %v6393_v24 }
 0x3df   : > { %672 = vmax.xlane.f32.xlu1 %v671_v47  ;;  %660 = vmax.xlane.f32.xlu0 %v659_v49  ;;  %v4048_v47 = vld [vmem:[%s4196_s21] sm:$0xff] }
 0x3e0   : > { %666 = vmax.xlane.f32.xlu2 %v665_v60  ;;  %1980 = vmatpush.msra.mxu0 %v586_v38  ;;  %v583_v49 = vmul.f32 %v4048_v47, %v6399_v28  ;;  %v4911_v60 = vpop.f32.mrf.mxu1 }
 0x3e1   : > { %6403 = vst [vmem:[#allocation14_spill] sm:$0xff] %v4911_v60 }
 0x3e2   : > { %1981 = vmatpush.msra.mxu0 %v585_v50 }
 0x3e4   : > { %1982 = vmatpush.msra.mxu0 %v584_v54 }
 0x3e6   : > { %1652 = vmatmul.f32.gmra.mxu1 %v6396_v34  ;;  %1983 = vmatpush.msra.mxu0 %v583_v49 }
 0x3e7   : > { %669 = vmax.xlane.f32.xlu0 %v668_v35  ;;  %v4049_v35 = vld [vmem:[%s4190_s18 + $0x38] sm:$0xff] }
 0x3e8   : > { %v2029_v34 = vmul.f32 %v4049_v35, %v4299_v43  ;;  %v4915_v10 = vpop.f32.mrf.mxu1  ;;  %v4051_v35 = vld [vmem:[%s4190_s18 + $0x28] sm:$0xff] }
 0x3e9   : > { %6404 = vst [vmem:[#allocation19_spill] sm:$0xff] %v4915_v10 }
 0x3ea   : > { %2430 = vmatpush.xpose.msrb.mxu0 %v2029_v34  ;;  %v2027_v34 = vmul.f32 %v4051_v35, %v4299_v43 }
 0x3ee   : > { %1655 = vmatmul.f32.gmra.mxu1 %v6397_v25  ;;  %2431 = vmatpush.xpose.msrb.mxu0 %v2028_v36 }
 0x3f0   : > { %v4920_v49 = vpop.f32.mrf.mxu1 }
 0x3f1   : > { %6405 = vst [vmem:[#allocation15_spill] sm:$0xff] %v4920_v49 }
 0x3f2   : > { %2432 = vmatpush.xpose.msrb.mxu0 %v2027_v34 }
 0x3f6   : > { %1658 = vmatmul.f32.gmra.mxu1 %v6398_v33 }
 0x3fe   : > { %1661 = vmatmul.f32.gmra.mxu1 %v6400_v17 }
 0x406   : > { %1664 = vmatmul.f32.gmra.mxu1 %v6401_v51 }
 0x40e   : > { %1667 = vmatmul.f32.gmra.mxu1 %v6402_v57 }
 0x412   : > { %v1018_v24 = vpop.xlane.xlu1 %1017 }
 0x413   : > { %3837 = vrcp.f32 %v1018_v24  ;;  %v1051_v11 = vand.u32 2147483648, %v1018_v24  ;;  %v1049_v53 = vand.u32 2147483647, %v1018_v24  ;;  %vm1045_vm7 = vweird.f32 %v1018_v24 }
 0x415   : > { %v1052_v8 = vor.u32 1.1754944e-38, %v1051_v11  ;;  %vm1050_vm8 = vcmp.eq.f32.partialorder %v1049_v53, 8.507059e+37 }
 0x419   : > { %v3838_v25 = vpop.eup %3837 }
 0x41a   : > { %v1041_v33 = vmul.f32 %v3838_v25, %v1018_v24  ;;  %v1021_v30 = vpop.xlane.xlu0 %1020  ;;  %vm1046_vm12 = vweird.f32 %v3838_v25 }
 0x41b   : > { %3839 = vrcp.f32 %v1021_v30  ;;  %vm1047_vm1 = vmor %vm1045_vm7, %vm1046_vm12  ;;  %v1066_v51 = vand.u32 2147483648, %v1021_v30  ;;  %v1064_v24 = vand.u32 2147483647, %v1021_v30  ;;  %vm1060_vm0 = vweird.f32 %v1021_v30 }
 0x41c   : > { %v1042_v28 = vsub.f32 1.0, %v1041_v33  ;;  %vm6408_vm12 = vmmov %vm6406_vm3 }
 0x41d   : > { %vm1065_vm11 = vcmp.eq.f32.partialorder %v1064_v24, 8.507059e+37 }
 0x41e   : > { %v1043_v7 = vmul.f32 %v3838_v25, %v1042_v28  ;;  %v1067_v28 = vor.u32 1.1754944e-38, %v1066_v51 }
 0x420   : > { %v1044_v62 = vadd.f32 %v3838_v25, %v1043_v7 }
 0x421   : > { %v3840_v17 = vpop.eup %3839 }
 0x422   : > { %v1048_v38 = vsel %vm1047_vm1, %v3838_v25, %v1044_v62  ;;  %v1056_v15 = vmul.f32 %v3840_v17, %v1021_v30  ;;  %v1024_v50 = vpop.xlane.xlu1 %1023  ;;  %vm1061_vm4 = vweird.f32 %v3840_v17 }
 0x423   : > { %v1053_v18 = vsel %vm1050_vm8, %v1052_v8, %v1048_v38  ;;  %3841 = vrcp.f32 %v1024_v50  ;;  %vm1062_vm2 = vmor %vm1060_vm0, %vm1061_vm4  ;;  %v1081_v62 = vand.u32 2147483648, %v1024_v50  ;;  %v1079_v30 = vand.u32 2147483647, %v1024_v50 }
 0x424   : > { %v1057_v54 = vsub.f32 1.0, %v1056_v15  ;;  %v1054_v47 = vmul.f32 %v4757_v21, %v1053_v18  ;;  %v4052_v15 = vld [vmem:[%s4190_s18 + $0x20] sm:$0xff]  ;;  %vm1075_vm1 = vweird.f32 %v1024_v50  ;;  %vm6410_vm0 = vmmov %vm6408_vm12 }
 0x425   : > { %v2026_v18 = vmul.f32 %v4052_v15, %v4299_v43 }
 0x426   : > { %v1058_v57 = vmul.f32 %v3840_v17, %v1057_v54  ;;  %3712 = vmatmul.msk.f32.vlgmr.msra.gmra.mxu0 %vm6406_vm3, %v1054_v47  ;;  %v1082_v47 = vor.u32 1.1754944e-38, %v1081_v62  ;;  %vm1080_vm3 = vcmp.eq.f32.partialorder %v1079_v30, 8.507059e+37 }
 0x427   : > { %2433 = vmatpush.xpose.msrb.mxu0 %v2026_v18 }
 0x428   : > { %v1059_v25 = vadd.f32 %v3840_v17, %v1058_v57 }
 0x429   : > { %v3842_v33 = vpop.eup %3841 }
 0x42a   : > { %v1071_v11 = vmul.f32 %v3842_v33, %v1024_v50  ;;  %v1027_v21 = vpop.xlane.xlu2 %1026  ;;  %v1063_v7 = vsel %vm1062_vm2, %v3840_v17, %v1059_v25  ;;  %vm1076_vm7 = vweird.f32 %v3842_v33 }
 0x42b   : > { %3843 = vrcp.f32 %v1027_v21  ;;  %v1068_v53 = vsel %vm1065_vm11, %v1067_v28, %v1063_v7  ;;  %v4926_v8 = vpop.f32.mrf.mxu1  ;;  %vm1077_vm8 = vmor %vm1075_vm1, %vm1076_vm7  ;;  %v1096_v50 = vand.u32 2147483648, %v1027_v21  ;;  %v4053_v7 = vld [vmem:[%s4190_s18 + $0x18] sm:$0xff]  ;;  %vm1090_vm2 = vweird.f32 %v1027_v21 }
 0x42c   : > { %v1072_v19 = vsub.f32 1.0, %v1071_v11  ;;  %v1069_v36 = vmul.f32 %v4762_v0, %v1068_v53  ;;  %6407 = vst [vmem:[#allocation17_spill] sm:$0xff] %v4926_v8  ;;  %v1094_v11 = vand.u32 2147483647, %v1027_v21  ;;  %v2025_v53 = vmul.f32 %v4053_v7, %v4299_v43  ;;  %vm6412_vm7 = vmmov %vm6410_vm0 }
 0x42e   : > { %v1073_v38 = vmul.f32 %v3842_v33, %v1072_v19  ;;  %3713 = vmatmul.msk.f32.gmra.mxu0 %vm6408_vm12, %v1069_v36  ;;  %v4054_v19 = vld [vmem:[%s4190_s18 + $0x10] sm:$0xff]  ;;  %vm1095_vm12 = vcmp.eq.f32.partialorder %v1094_v11, 8.507059e+37 }
 0x42f   : > { %2434 = vmatpush.xpose.msrb.mxu0 %v2025_v53  ;;  %v2024_v36 = vmul.f32 %v4054_v19, %v4299_v43 }
 0x430   : > { %v1074_v54 = vadd.f32 %v3842_v33, %v1073_v38  ;;  %v1097_v38 = vor.u32 1.1754944e-38, %v1096_v50 }
 0x431   : > { %v3844_v17 = vpop.eup %3843 }
 0x432   : > { %v1086_v51 = vmul.f32 %v3844_v17, %v1027_v21  ;;  %v1078_v0 = vsel %vm1077_vm8, %v3842_v33, %v1074_v54  ;;  %vm1091_vm4 = vweird.f32 %v3844_v17 }
 0x433   : > { %v1030_v57 = vpop.xlane.xlu0 %1029  ;;  %v1083_v24 = vsel %vm1080_vm3, %v1082_v47, %v1078_v0  ;;  %v4931_v34 = vpop.f32.mrf.mxu1  ;;  %vm1092_vm11 = vmor %vm1090_vm2, %vm1091_vm4  ;;  %2435 = vmatpush.xpose.msrb.mxu0 %v2024_v36 }
 0x434   : > { %v1087_v35 = vsub.f32 1.0, %v1086_v51  ;;  %3845 = vrcp.f32 %v1030_v57  ;;  %6409 = vst [vmem:[#allocation28_spill] sm:$0xff] %v4931_v34  ;;  %v1084_v25 = vmul.f32 %v4779_v9, %v1083_v24  ;;  %v1111_v0 = vand.u32 2147483648, %v1030_v57 }
 0x435   : > { %v1109_v24 = vand.u32 2147483647, %v1030_v57  ;;  %vm1105_vm8 = vweird.f32 %v1030_v57 }
 0x436   : > { %v1088_v28 = vmul.f32 %v3844_v17, %v1087_v35  ;;  %3714 = vmatmul.msk.f32.gmra.mxu0 %vm6410_vm0, %v1084_v25  ;;  %v4055_v35 = vld [vmem:[%s4190_s18 + $0x8] sm:$0xff] }
 0x437   : > { %v2023_v25 = vmul.f32 %v4055_v35, %v4299_v43  ;;  %vm1110_vm4 = vcmp.eq.f32.partialorder %v1109_v24, 8.507059e+37  ;;  %v4057_v24 = vld [vmem:[%s6203_s5 + $0x8] sm:$0xff] }
 0x438   : > { %v1089_v33 = vadd.f32 %v3844_v17, %v1088_v28 }
 0x439   : > { %2436 = vmatpush.xpose.msrb.mxu0 %v2023_v25 }
 0x43a   : > { %v3846_v62 = vpop.eup %3845  ;;  %v1033_v9 = vpop.xlane.xlu1 %1032  ;;  %v1093_v30 = vsel %vm1092_vm11, %v3844_v17, %v1089_v33  ;;  %vm6414_vm11 = vmmov %vm6412_vm7 }
 0x43b   : > { %v1101_v15 = vmul.f32 %v3846_v62, %v1030_v57  ;;  %3847 = vrcp.f32 %v1033_v9  ;;  %v1098_v18 = vsel %vm1095_vm12, %v1097_v38, %v1093_v30  ;;  %v4939_v47 = vpop.f32.mrf.mxu1  ;;  %vm1106_vm1 = vweird.f32 %v3846_v62 }
 0x43c   : > { %6411 = vst [vmem:[#allocation22_spill] sm:$0xff] %v4939_v47  ;;  %v1099_v21 = vmul.f32 %v4792_v48, %v1098_v18  ;;  %v1112_v48 = vor.u32 1.1754944e-38, %v1111_v0  ;;  %vm1107_vm3 = vmor %vm1105_vm8, %vm1106_vm1  ;;  %v1126_v36 = vand.u32 2147483648, %v1033_v9  ;;  %vm1120_vm2 = vweird.f32 %v1033_v9 }
 0x43d   : > { %v1102_v54 = vsub.f32 1.0, %v1101_v15  ;;  %v4056_v15 = vld [vmem:[%s4190_s18] sm:$0xff]  ;;  %vm6416_vm1 = vcmask 130048  }
 0x43e   : > { %3715 = vmatmul.msk.f32.gmra.mxu0 %vm6412_vm7, %v1099_v21  ;;  %v2022_v18 = vmul.f32 %v4056_v15, %v4299_v43  ;;  %v1127_v0 = vor.u32 1.1754944e-38, %v1126_v36 }
 0x43f   : > { %v1103_v51 = vmul.f32 %v3846_v62, %v1102_v54 }
 0x440   : > { %2437 = vmatpush.xpose.msrb.mxu0 %v2022_v18 }
 0x441   : > { %v3848_v17 = vpop.eup %3847  ;;  %v1104_v28 = vadd.f32 %v3846_v62, %v1103_v51  ;;  %v1124_v51 = vand.u32 2147483647, %v1033_v9 }
 0x442   : > { %v1116_v50 = vmul.f32 %v3848_v17, %v1033_v9  ;;  %v655_v11 = vpop.xlane.xlu1 %654  ;;  %v4945_v7 = vpop.xlane.xlu2 %1035  ;;  %vm1121_vm0 = vweird.f32 %v3848_v17 }
 0x443   : > { %v677_v53 = vsub.f32 %v4829_v37, %v655_v11  ;;  %3849 = vrcp.f32 %v4945_v7  ;;  %v1108_v19 = vsel %vm1107_vm3, %v3846_v62, %v1104_v28  ;;  %v4949_v30 = vpop.f32.mrf.mxu1  ;;  %vm1122_vm12 = vmor %vm1120_vm2, %vm1121_vm0  ;;  %vm1125_vm7 = vcmp.eq.f32.partialorder %v1124_v51, 8.507059e+37 }
 0x444   : > { %v1117_v33 = vsub.f32 1.0, %v1116_v50  ;;  %6413 = vst [vmem:[#allocation11_spill] sm:$0xff] %v4949_v30  ;;  %v1113_v57 = vsel %vm1110_vm4, %v1112_v48, %v1108_v19  ;;  %3145 = vmatpush.msra.mxu0 %v4057_v24  ;;  %v4058_v48 = vld [vmem:[%s6203_s5] sm:$0xff]  ;;  %v1141_v36 = vand.u32 2147483648, %v4945_v7  ;;  %vm1135_vm3 = vweird.f32 %v4945_v7  ;;  %vm6417_vm4 = vmmov %vm6414_vm11 }
 0x445   : > { %v685_v38 = vmul.f32 1.442695, %v677_v53  ;;  %v1114_v21 = vmul.f32 %v4808_v39, %v1113_v57  ;;  %v1139_v57 = vand.u32 2147483647, %v4945_v7 }
 0x446   : > { %v1118_v54 = vmul.f32 %v3848_v17, %v1117_v33  ;;  %3146 = vmatpush.msra.mxu0 %v4058_v48 }
 0x447   : > { %3851 = vpow2.f32 %v685_v38  ;;  %3716 = vmatmul.msk.f32.gmra.mxu0 %vm6414_vm11, %v1114_v21  ;;  %v1142_v21 = vor.u32 1.1754944e-38, %v1141_v36  ;;  %vm1140_vm2 = vcmp.eq.f32.partialorder %v1139_v57, 8.507059e+37 }
 0x448   : > { %v1119_v37 = vadd.f32 %v3848_v17, %v1118_v54 }
 0x449   : > { %v3850_v62 = vpop.eup %3849 }
 0x44a   : > { %v1131_v35 = vmul.f32 %v3850_v62, %v4945_v7  ;;  %v664_v25 = vpop.xlane.xlu1 %663  ;;  %v1123_v39 = vsel %vm1122_vm12, %v3848_v17, %v1119_v37  ;;  %v1039_v9 = vpop.xlane.xlu0 %1038  ;;  %vm1136_vm8 = vweird.f32 %v3850_v62  ;;  %vm6418_vm12 = vmmov %vm6416_vm1 }
 0x44b   : > { %v680_v28 = vsub.f32 %v4843_v14, %v664_v25  ;;  %v658_v50 = vpop.xlane.xlu2 %657  ;;  %v1128_v11 = vsel %vm1125_vm7, %v1127_v0, %v1123_v39  ;;  %3853 = vrcp.f32 %v1039_v9  ;;  %v4967_v38 = vpop.f32.mrf.mxu1  ;;  %vm1137_vm0 = vmor %vm1135_vm3, %vm1136_vm8  ;;  %vm1150_vm8 = vweird.f32 %v1039_v9 }
 0x44c   : > { %v1132_v53 = vsub.f32 1.0, %v1131_v35  ;;  %v678_v33 = vsub.f32 %v4847_v13, %v658_v50  ;;  %6415 = vst [vmem:[#allocation35_spill] sm:$0xff] %v4967_v38  ;;  %v1129_v14 = vmul.f32 %v4820_v1, %v1128_v11  ;;  %v1156_v11 = vand.u32 2147483648, %v1039_v9  ;;  %vm6419_vm7 = vmmov %vm6416_vm1 }
 0x44d   : > { %v4964_v19 = vpop.eup %3851  ;;  %v691_v17 = vmul.f32 1.442695, %v680_v28 }
 0x44e   : > { %v1133_v15 = vmul.f32 %v3850_v62, %v1132_v53  ;;  %v687_v18 = vmul.f32 1.442695, %v678_v33  ;;  %v701_v54 = vsel %vm6416_vm1, %v4964_v19, 0.0  ;;  %v1154_v53 = vand.u32 2147483647, %v1039_v9  ;;  %vm6420_vm1 = vmmov %vm6417_vm4 }
 0x44f   : > { %3855 = vpow2.f32 %v691_v17  ;;  %702 = vadd.xlane.f32.xlu2 %v701_v54  ;;  %3717 = vmatmul.msk.f32.gmra.mxu0 %vm6417_vm4, %v1129_v14 }
 0x450   : > { %3857 = vpow2.f32 %v687_v18  ;;  %v1134_v13 = vadd.f32 %v3850_v62, %v1133_v15  ;;  %vm1155_vm4 = vcmp.eq.f32.partialorder %v1154_v53, 8.507059e+37 }
 0x451   : > { %v3854_v51 = vpop.eup %3853 }
 0x452   : > { %v673_v1 = vpop.xlane.xlu1 %672  ;;  %v1138_v37 = vsel %vm1137_vm0, %v3850_v62, %v1134_v13  ;;  %v1146_v0 = vmul.f32 %v3854_v51, %v1039_v9  ;;  %v661_v35 = vpop.xlane.xlu0 %660  ;;  %vm1151_vm11 = vweird.f32 %v3854_v51  ;;  %vm6421_vm0 = vcmp.le.s32.totalorder %v4255_v23, %v4370_v12 }
 0x453   : > { %v667_v24 = vpop.xlane.xlu2 %666  ;;  %v1143_v25 = vsel %vm1140_vm2, %v1142_v21, %v1138_v37  ;;  %v679_v39 = vsub.f32 %v4868_v41, %v661_v35  ;;  %v1647_v48 = vpop.f32.mrf.mxu1  ;;  %v683_v36 = vsub.f32 %v4864_v52, %v673_v1  ;;  %v1157_v52 = vor.u32 1.1754944e-38, %v1156_v11  ;;  %vm1152_vm3 = vmor %vm1150_vm8, %vm1151_vm11 }
 0x454   : > { %v1144_v28 = vmul.f32 %v4831_v5, %v1143_v25  ;;  %v1147_v7 = vsub.f32 1.0, %v1146_v0  ;;  %v681_v62 = vsub.f32 %v4873_v44, %v667_v24  ;;  %v1671_v57 = vmul.f32 0.17677669, %v1647_v48  ;;  %vm6422_vm2 = vmmov %vm6420_vm1 }
 0x455   : > { %v4977_v50 = vpop.eup %3855  ;;  %v689_v17 = vmul.f32 1.442695, %v679_v39  ;;  %v697_v18 = vmul.f32 1.442695, %v683_v36  ;;  %vm6423_vm11 = vmmov %vm6420_vm1 }
 0x456   : > { %v4979_v33 = vpop.eup %3857  ;;  %v1148_v14 = vmul.f32 %v3854_v51, %v1147_v7  ;;  %v710_v41 = vsel %vm6418_vm12, %v4977_v50, 0.0  ;;  %v693_v44 = vmul.f32 1.442695, %v681_v62  ;;  %v4991_v21 = vsel %vm6421_vm0, %v1671_v57, -inf  ;;  %vm6424_vm12 = vmmov %vm6419_vm7  ;;  %v5012_v7 = vld [vmem:[%s4274_s16] sm:$0xff] }
 0x457   : > { %v704_v5 = vsel %vm6419_vm7, %v4979_v33, 0.0  ;;  %3718 = vmatmul.msk.f32.gmra.mxu0 %vm6420_vm1, %v1144_v28  ;;  %711 = vadd.xlane.f32.xlu2 %v710_v41  ;;  %3859 = vpow2.f32 %v689_v17  ;;  %v1687_v25 = vsel %vm6422_vm2, %v4991_v21, -inf  ;;  %vm6425_vm7 = vcmp.le.s32.totalorder %v4255_v23, %v4390_v20  ;;  %vm6426_vm8 = vmmov %vm6424_vm12 }
 0x458   : > { %705 = vadd.xlane.f32.xlu0 %v704_v5  ;;  %v1149_v15 = vadd.f32 %v3854_v51, %v1148_v14  ;;  %3861 = vpow2.f32 %v697_v18  ;;  %v5016_v11 = vmul.f32 %v5012_v7, %v4299_v43  ;;  %vm6429_vm0 = vnez %v6337_v58  ;;  %v5034_v5 = vld [vmem:[%s4274_s16 + $0x8] sm:$0xff]  ;;  %vm6430_vm2 = vmmov %vm6420_vm1 }
 0x459   : > { %3863 = vpow2.f32 %v693_v44 }
 0x45a   : > { %v670_v54 = vpop.xlane.xlu0 %669  ;;  %v1153_v13 = vsel %vm1152_vm3, %v3854_v51, %v1149_v15  ;;  %vm6427_vm3 = vmmov %vm6426_vm8  ;;  %v5038_v15 = vmul.f32 %v5034_v5, %v4299_v43 }
 0x45b   : > { %v682_v1 = vsub.f32 %v4885_v55, %v670_v54  ;;  %v1158_v37 = vsel %vm1155_vm4, %v1157_v52, %v1153_v13  ;;  %v1650_v0 = vpop.f32.mrf.mxu1  ;;  %vm6428_vm4 = vmmov %vm6427_vm3 }
 0x45c   : > { %v1159_v9 = vmul.f32 %v4849_v42, %v1158_v37  ;;  %v1672_v35 = vmul.f32 0.17677669, %v1650_v0 }
 0x45d   : > { %v695_v24 = vmul.f32 1.442695, %v682_v1  ;;  %v4997_v51 = vpop.eup %3859  ;;  %v5050_v1 = vld [vmem:[%s4274_s16 + $0x10] sm:$0xff] }
 0x45e   : > { %v707_v55 = vsel %vm6424_vm12, %v4997_v51, 0.0  ;;  %v5005_v42 = vsel %vm6425_vm7, %v1672_v35, -inf  ;;  %v5009_v28 = vpop.eup %3861  ;;  %vm6432_vm12 = vmmov %vm6420_vm1  ;;  %v5054_v37 = vmul.f32 %v5050_v1, %v4299_v43  ;;  %vm6433_vm7 = vnez %v6345_v59 }
 0x45f   : > { %3865 = vpow2.f32 %v695_v24  ;;  %3719 = vmatmul.msk.f32.gmra.mxu0 %vm6423_vm11, %v1159_v9  ;;  %708 = vadd.xlane.f32.xlu1 %v707_v55  ;;  %v1690_v39 = vsel %vm6420_vm1, %v5005_v42, -inf  ;;  %v5018_v48 = vpop.eup %3863  ;;  %v719_v57 = vsel %vm6428_vm4, %v5009_v28, 0.0  ;;  %vm6431_vm11 = vnez %v6340_v31 }
 0x460   : > { %1688 = vmax.xlane.f32.xlu0 %v1687_v25  ;;  %1691 = vmax.xlane.f32.xlu2 %v1690_v39  ;;  %v713_v14 = vsel %vm6427_vm3, %v5018_v48, 0.0  ;;  %v5064_v25 = vld [vmem:[%s4274_s16 + $0x18] sm:$0xff]  ;;  %vm6435_vm3 = vmmov %vm6420_vm1  ;;  %vm6436_vm4 = vnez %v6350_v22 }
 0x461   : > { %v5068_v55 = vmul.f32 %v5064_v25, %v4299_v43 }
 0x463   : > { %v1653_v53 = vpop.f32.mrf.mxu1 }
 0x464   : > { %v1673_v62 = vmul.f32 0.17677669, %v1653_v53 }
 0x465   : > { %v5020_v36 = vpop.eup %3865 }
 0x466   : > { %v716_v17 = vsel %vm6426_vm8, %v5020_v36, 0.0  ;;  %v5031_v41 = vsel %vm6429_vm0, %v1673_v62, -inf  ;;  %vm6434_vm8 = vnez %v6348_v2 }
 0x467   : > { %2438 = vmatmul.f32.vlgmr.msrb.gmra.mxu0 %v5016_v11  ;;  %714 = vadd.xlane.f32.xlu1 %v713_v14  ;;  %v1693_v44 = vsel %vm6430_vm2, %v5031_v41, -inf  ;;  %v5078_v14 = vld [vmem:[%s4274_s16 + $0x20] sm:$0xff]  ;;  %vm6437_vm2 = vmmov %vm6420_vm1 }
 0x468   : > { %717 = vadd.xlane.f32.xlu0 %v716_v17  ;;  %720 = vadd.xlane.f32.xlu2 %v719_v57  ;;  %v5082_v57 = vmul.f32 %v5078_v14, %v4299_v43 }
 0x46b   : > { %v1656_v52 = vpop.f32.mrf.mxu1 }
 0x46c   : > { %v1674_v18 = vmul.f32 0.17677669, %v1656_v52 }
 0x46e   : > { %v5045_v54 = vsel %vm6431_vm11, %v1674_v18, -inf }
 0x46f   : > { %2441 = vmatmul.f32.gmra.mxu0 %v5038_v15  ;;  %1694 = vmax.xlane.f32.xlu1 %v1693_v44  ;;  %v1696_v13 = vsel %vm6432_vm12, %v5045_v54, -inf  ;;  %vm6438_vm12 = vnez %v6352_v4 }
 0x470   : > { %1697 = vmax.xlane.f32.xlu0 %v1696_v13 }
 0x473   : > { %v1659_v0 = vpop.f32.mrf.mxu1 }
 0x474   : > { %v1675_v9 = vmul.f32 0.17677669, %v1659_v0  ;;  %v5092_v0 = vld [vmem:[%s4274_s16 + $0x28] sm:$0xff] }
 0x476   : > { %v5059_v24 = vsel %vm6433_vm7, %v1675_v9, -inf  ;;  %v5096_v9 = vmul.f32 %v5092_v0, %v4299_v43 }
 0x477   : > { %2444 = vmatmul.f32.gmra.mxu0 %v5054_v37  ;;  %v1699_v35 = vsel %vm6420_vm1, %v5059_v24, -inf }
 0x478   : > { %1700 = vmax.xlane.f32.xlu1 %v1699_v35 }
 0x47b   : > { %v1662_v39 = vpop.f32.mrf.mxu1 }
 0x47c   : > { %v1676_v53 = vmul.f32 0.17677669, %v1662_v39 }
 0x47e   : > { %v5073_v62 = vsel %vm6434_vm8, %v1676_v53, -inf }
 0x47f   : > { %2447 = vmatmul.f32.gmra.mxu0 %v5068_v55  ;;  %v1702_v17 = vsel %vm6435_vm3, %v5073_v62, -inf }
 0x480   : > { %1703 = vmax.xlane.f32.xlu2 %v1702_v17 }
 0x483   : > { %v1665_v52 = vpop.f32.mrf.mxu1 }
 0x484   : > { %v1677_v18 = vmul.f32 0.17677669, %v1665_v52  ;;  %v5106_v52 = vld [vmem:[%s4274_s16 + $0x30] sm:$0xff] }
 0x486   : > { %v5087_v44 = vsel %vm6436_vm4, %v1677_v18, -inf  ;;  %v5110_v18 = vmul.f32 %v5106_v52, %v4299_v43 }
 0x487   : > { %2450 = vmatmul.f32.gmra.mxu0 %v5082_v57  ;;  %v1705_v13 = vsel %vm6437_vm2, %v5087_v44, -inf }
 0x488   : > { %1706 = vmax.xlane.f32.xlu0 %v1705_v13  ;;  %v5113_v13 = vpop.f32.mrf.mxu0 }
 0x489   : > { %6439 = vst [vmem:[#allocation36_spill] sm:$0xff] %v5113_v13 }
 0x48b   : > { %v1668_v35 = vpop.f32.mrf.mxu1 }
 0x48c   : > { %v1678_v39 = vmul.f32 0.17677669, %v1668_v35  ;;  %v5116_v35 = vld [vmem:[%s4274_s16 + $0x38] sm:$0xff] }
 0x48d   : > { %6440 = vst [vmem:[#allocation25_spill] sm:$0xff] %v5116_v35 }
 0x48e   : > { %v5101_v53 = vsel %vm6438_vm12, %v1678_v39, -inf  ;;  %v5120_v39 = vmul.f32 %v5116_v35, %v4299_v43 }
 0x48f   : > { %2453 = vmatmul.f32.gmra.mxu0 %v5096_v9  ;;  %v1708_v17 = vsel %vm6420_vm1, %v5101_v53, -inf }
 0x490   : > { %1709 = vmax.xlane.f32.xlu2 %v1708_v17 }
 0x497   : > { %2456 = vmatmul.f32.gmra.mxu0 %v5110_v18 }
 0x49f   : > { %2459 = vmatmul.f32.gmra.mxu0 %v5120_v39 }
 0x4a3   : > { %v5123_v45 = vpop.f32.mrf.mxu0 }
 0x4a4   : > { %6441 = vst [vmem:[#allocation12_spill] sm:$0xff] %v5123_v45 }
 0x4ab   : > { %v5125_v17 = vpop.f32.mrf.mxu0 }
 0x4ac   : > { %6442 = vst [vmem:[#allocation13_spill] sm:$0xff] %v5125_v17 }
 0x4b3   : > { %v5127_v38 = vpop.f32.mrf.mxu0 }
 0x4b4   : > { %6443 = vst [vmem:[#allocation16_spill] sm:$0xff] %v5127_v38 }
 0x4bb   : > { %v5129_v30 = vpop.f32.mrf.mxu0 }
 0x4bc   : > { %6444 = vst [vmem:[#allocation18_spill] sm:$0xff] %v5129_v30 }
 0x4c2   : > { %v703_v47 = vpop.xlane.xlu2 %702 }
 0x4c3   : > { %3867 = vrcp.f32 %v703_v47  ;;  %v736_v46 = vand.u32 2147483648, %v703_v47  ;;  %v734_v17 = vand.u32 2147483647, %v703_v47  ;;  %vm730_vm2 = vweird.f32 %v703_v47 }
 0x4c4   : > { %v5131_v34 = vpop.f32.mrf.mxu0 }
 0x4c5   : > { %6445 = vst [vmem:[#allocation7_spill] sm:$0xff] %v5131_v34  ;;  %v737_v30 = vor.u32 1.1754944e-38, %v736_v46  ;;  %vm735_vm6 = vcmp.eq.f32.partialorder %v734_v17, 8.507059e+37  ;;  %v6449_v46 = vld [vmem:[#allocation5_spill] sm:$0xff] }
 0x4c9   : > { %v3868_v13 = vpop.eup %3867 }
 0x4ca   : > { %v726_v8 = vmul.f32 %v3868_v13, %v703_v47  ;;  %v5133_v49 = vpop.xlane.xlu2 %711  ;;  %vm731_vm3 = vweird.f32 %v3868_v13 }
 0x4cb   : > { %v706_v60 = vpop.xlane.xlu0 %705  ;;  %vm732_vm1 = vmor %vm730_vm2, %vm731_vm3 }
 0x4cc   : > { %v727_v10 = vsub.f32 1.0, %v726_v8  ;;  %3869 = vrcp.f32 %v706_v60  ;;  %v5135_v3 = vpop.f32.mrf.mxu0  ;;  %v751_v61 = vand.u32 2147483648, %v706_v60  ;;  %vm745_vm3 = vweird.f32 %v706_v60 }
 0x4cd   : > { %6446 = vst [vmem:[#allocation20_spill] sm:$0xff] %v5135_v3  ;;  %3871 = vrcp.f32 %v5133_v49  ;;  %v6447_v3 = vmov 0.0  }
 0x4ce   : > { %v728_v29 = vmul.f32 %v3868_v13, %v727_v10  ;;  %v5143_v16 = vsel %vm2744_vm14, 1.0, %v6447_v3 }
 0x4d0   : > { %v729_v38 = vadd.f32 %v3868_v13, %v728_v29 }
 0x4d2   : > { %v733_v34 = vsel %vm732_vm1, %v3868_v13, %v729_v38  ;;  %v3870_v45 = vpop.eup %3869  ;;  %v5139_v6 = vpop.xlane.xlu1 %708  ;;  %v2774_v38 = vmul.f32 %v5143_v16, %v6449_v46  ;;  %v2773_v46 = vmul.f32 %v5143_v16, %v6451_v56 }
 0x4d3   : > { %v738_v8 = vsel %vm735_vm6, %v737_v30, %v733_v34  ;;  %v741_v40 = vmul.f32 %v3870_v45, %v706_v60  ;;  %v1689_v26 = vpop.xlane.xlu0 %1688  ;;  %3873 = vrcp.f32 %v5139_v6  ;;  %v1692_v29 = vpop.xlane.xlu2 %1691  ;;  %vm6450_vm6 = vcmask 130048  }
 0x4d4   : > { %v739_v10 = vmul.f32 %v4964_v19, %v738_v8  ;;  %v5146_v47 = vpop.f32.mrf.mxu0  ;;  %v5150_v13 = vpop.eup %3871  ;;  %v1711_v30 = vsub.f32 %v4991_v21, %v1689_v26  ;;  %v1712_v17 = vsub.f32 %v5005_v42, %v1692_v29  ;;  %vm746_vm14 = vweird.f32 %v3870_v45 }
 0x4d5   : > { %6448 = vst [vmem:[#allocation23_spill] sm:$0xff] %v5146_v47  ;;  %v742_v34 = vsub.f32 1.0, %v741_v40  ;;  %v771_v47 = vmul.f32 %v5150_v13, %v5133_v49  ;;  %v749_v26 = vand.u32 2147483647, %v706_v60  ;;  %vm747_vm2 = vmor %vm745_vm3, %vm746_vm14  ;;  %v766_v60 = vand.u32 2147483648, %v5139_v6 }
 0x4d6   : > { %3694 = vmatmul.msk.f32.vlgmr.msra.gmra.mxu2 %vm6450_vm6, %v739_v10  ;;  %v1719_v8 = vmul.f32 1.442695, %v1711_v30  ;;  %v1721_v3 = vmul.f32 1.442695, %v1712_v17  ;;  %v752_v30 = vor.u32 1.1754944e-38, %v751_v61  ;;  %vm6453_vm14 = vcmask 523264  }
 0x4d7   : > { %2791 = vmatpush.xpose.msra.mxu2 %v2774_v38  ;;  %v743_v19 = vmul.f32 %v3870_v45, %v742_v34  ;;  %v772_v34 = vsub.f32 1.0, %v771_v47  ;;  %vm750_vm1 = vcmp.eq.f32.partialorder %v749_v26, 8.507059e+37  ;;  %v764_v27 = vand.u32 2147483647, %v5139_v6 }
 0x4d8   : > { %3875 = vpow2.f32 %v1719_v8  ;;  %vm760_vm3 = vweird.f32 %v5139_v6 }
 0x4d9   : > { %v744_v40 = vadd.f32 %v3870_v45, %v743_v19  ;;  %v3874_v21 = vpop.eup %3873  ;;  %3877 = vpow2.f32 %v1721_v3  ;;  %v773_v61 = vmul.f32 %v5150_v13, %v772_v34 }
 0x4da   : > { %v756_v42 = vmul.f32 %v3874_v21, %v5139_v6  ;;  %v5160_v10 = vpop.xlane.xlu1 %714  ;;  %vm761_vm6 = vweird.f32 %v3874_v21 }
 0x4db   : > { %2792 = vmatpush.xpose.msra.mxu2 %v2773_v46  ;;  %v5162_v29 = vpop.xlane.xlu0 %717  ;;  %v748_v38 = vsel %vm747_vm2, %v3870_v45, %v744_v40  ;;  %3879 = vrcp.f32 %v5160_v10  ;;  %vm6454_vm2 = vcmask 130048   ;;  %vm762_vm9 = vmor %vm760_vm3, %vm761_vm6  ;;  %v5186_v34 = vpop.xlane.xlu2 %720  ;;  %vm6456_vm6 = vcmp.le.s32.totalorder %v4255_v23, %v4370_v12 }
 0x4dc   : > { %v5165_v56 = vpop.f32.mrf.mxu0  ;;  %v757_v17 = vsub.f32 1.0, %v756_v42  ;;  %v753_v3 = vsel %vm750_vm1, %v752_v30, %v748_v38  ;;  %3881 = vrcp.f32 %v5162_v29  ;;  %vm6455_vm1 = vmmov %vm6453_vm14  ;;  %v767_v42 = vor.u32 1.1754944e-38, %v766_v60 }
 0x4dd   : > { %6452 = vst [vmem:[#allocation26_spill] sm:$0xff] %v5165_v56  ;;  %v754_v46 = vmul.f32 %v4979_v33, %v753_v3  ;;  %v781_v60 = vand.u32 2147483648, %v5133_v49  ;;  %3883 = vrcp.f32 %v5186_v34 }
 0x4de   : > { %v5168_v19 = vpop.eup %3875  ;;  %v758_v8 = vmul.f32 %v3874_v21, %v757_v17 }
 0x4df   : > { %v5172_v45 = vpop.eup %3877  ;;  %v1735_v47 = vsel %vm6453_vm14, %v5168_v19, 0.0  ;;  %3695 = vmatmul.msk.f32.gmra.mxu2 %vm6454_vm2, %v754_v46  ;;  %vm765_vm14 = vcmp.eq.f32.partialorder %v764_v27, 8.507059e+37  ;;  %vm776_vm2 = vweird.f32 %v5150_v13 }
 0x4e0   : > { %1736 = vadd.xlane.f32.xlu1 %v1735_v47  ;;  %v1738_v33 = vsel %vm6455_vm1, %v5172_v45, 0.0  ;;  %v759_v40 = vadd.f32 %v3874_v21, %v758_v8  ;;  %v774_v8 = vadd.f32 %v5150_v13, %v773_v61 }
 0x4e1   : > { %v5182_v26 = vpop.eup %3879  ;;  %1739 = vadd.xlane.f32.xlu0 %v1738_v33 }
 0x4e2   : > { %v786_v38 = vmul.f32 %v5182_v26, %v5160_v10  ;;  %v1695_v30 = vpop.xlane.xlu1 %1694  ;;  %v763_v17 = vsel %vm762_vm9, %v3874_v21, %v759_v40  ;;  %v5193_v35 = vpop.eup %3881  ;;  %vm775_vm9 = vweird.f32 %v5133_v49  ;;  %v779_v21 = vand.u32 2147483647, %v5133_v49 }
 0x4e3   : > { %v1713_v6 = vsub.f32 %v5031_v41, %v1695_v30  ;;  %v1698_v46 = vpop.xlane.xlu0 %1697  ;;  %v768_v47 = vsel %vm765_vm14, %v767_v42, %v763_v17  ;;  %vm777_vm3 = vmor %vm775_vm9, %vm776_vm2  ;;  %v801_v49 = vmul.f32 %v5193_v35, %v5162_v29  ;;  %vm6457_vm14 = vcmask 130048   ;;  %v5212_v17 = vpop.eup %3883 }
 0x4e4   : > { %v2439_v3 = vpop.f32.mrf.mxu0  ;;  %v787_v33 = vsub.f32 1.0, %v786_v38  ;;  %v1714_v43 = vsub.f32 %v5045_v54, %v1698_v46  ;;  %v769_v41 = vmul.f32 %v4997_v51, %v768_v47  ;;  %v778_v42 = vsel %vm777_vm3, %v5150_v13, %v774_v8  ;;  %vm6460_vm3 = vmmov %vm6455_vm1 }
 0x4e5   : > { %v2463_v56 = vmul.f32 0.17677669, %v2439_v3  ;;  %v1723_v27 = vmul.f32 1.442695, %v1713_v6  ;;  %v782_v38 = vor.u32 1.1754944e-38, %v781_v60  ;;  %vm780_vm5 = vcmp.eq.f32.partialorder %v779_v21, 8.507059e+37 }
 0x4e6   : > { %v1725_v61 = vmul.f32 1.442695, %v1714_v43  ;;  %v788_v51 = vmul.f32 %v5182_v26, %v787_v33  ;;  %vm791_vm2 = vweird.f32 %v5182_v26  ;;  %v802_v6 = vsub.f32 1.0, %v801_v49 }
 0x4e7   : > { %v5202_v40 = vsel %vm6456_vm6, %v2463_v56, -inf  ;;  %3885 = vpow2.f32 %v1723_v27  ;;  %3696 = vmatmul.msk.f32.gmra.mxu2 %vm6457_vm14, %v769_v41  ;;  %v783_v43 = vsel %vm780_vm5, %v782_v38, %v778_v42  ;;  %vm790_vm9 = vweird.f32 %v5160_v10  ;;  %vm6458_vm5 = vmmov %vm6455_vm1 }
 0x4e8   : > { %v2479_v54 = vsel %vm6455_vm1, %v5202_v40, -inf  ;;  %3887 = vpow2.f32 %v1725_v61  ;;  %v789_v46 = vadd.f32 %v5182_v26, %v788_v51  ;;  %v796_v8 = vand.u32 2147483648, %v5160_v10  ;;  %vm792_vm14 = vmor %vm790_vm9, %vm791_vm2 }
 0x4e9   : > { %2480 = vmax.xlane.f32.xlu1 %v2479_v54  ;;  %v784_v60 = vmul.f32 %v4977_v50, %v783_v43  ;;  %vm6459_vm6 = vcmp.le.s32.totalorder %v4255_v23, %v4390_v20  ;;  %v794_v21 = vand.u32 2147483647, %v5160_v10  ;;  %v803_v54 = vmul.f32 %v5193_v35, %v802_v6  ;;  %vm6462_vm9 = vmmov %vm6455_vm1 }
 0x4ea   : > { %v816_v42 = vmul.f32 %v5212_v17, %v5186_v34  ;;  %v793_v10 = vsel %vm792_vm14, %v5182_v26, %v789_v46  ;;  %v797_v38 = vor.u32 1.1754944e-38, %v796_v8  ;;  %vm805_vm2 = vweird.f32 %v5162_v29 }
 0x4eb   : > { %v1701_v30 = vpop.xlane.xlu1 %1700 }
 0x4ec   : > { %v2442_v56 = vpop.f32.mrf.mxu0  ;;  %v1715_v3 = vsub.f32 %v5059_v24, %v1701_v30 }
 0x4ed   : > { %v2464_v13 = vmul.f32 0.17677669, %v2442_v56  ;;  %v5216_v47 = vpop.eup %3885  ;;  %v817_v56 = vsub.f32 1.0, %v816_v42 }
 0x4ee   : > { %v5221_v33 = vpop.eup %3887  ;;  %v1727_v27 = vmul.f32 1.442695, %v1715_v3  ;;  %v1741_v41 = vsel %vm6458_vm5, %v5216_v47, 0.0  ;;  %vm6461_vm5 = vcmask 130048   ;;  %v811_v3 = vand.u32 2147483648, %v5162_v29 }
 0x4ef   : > { %v5228_v24 = vsel %vm6459_vm6, %v2464_v13, -inf  ;;  %1742 = vadd.xlane.f32.xlu2 %v1741_v41  ;;  %v1744_v50 = vsel %vm6455_vm1, %v5221_v33, 0.0  ;;  %3697 = vmatmul.msk.f32.gmra.mxu2 %vm6461_vm5, %v784_v60  ;;  %vm795_vm6 = vcmp.eq.f32.partialorder %v794_v21, 8.507059e+37  ;;  %v804_v13 = vadd.f32 %v5193_v35, %v803_v54 }
 0x4f0   : > { %v2482_v61 = vsel %vm6460_vm3, %v5228_v24, -inf  ;;  %3889 = vpow2.f32 %v1727_v27  ;;  %v798_v43 = vsel %vm795_vm6, %v797_v38, %v793_v10  ;;  %vm806_vm3 = vweird.f32 %v5193_v35 }
 0x4f1   : > { %2483 = vmax.xlane.f32.xlu0 %v2482_v61  ;;  %1745 = vadd.xlane.f32.xlu1 %v1744_v50  ;;  %v799_v46 = vmul.f32 %v5018_v48, %v798_v43  ;;  %v809_v27 = vand.u32 2147483647, %v5162_v29  ;;  %vm807_vm14 = vmor %vm805_vm2, %vm806_vm3  ;;  %v818_v21 = vmul.f32 %v5212_v17, %v817_v56  ;;  %v812_v61 = vor.u32 1.1754944e-38, %v811_v3 }
 0x4f2   : > { %v808_v48 = vsel %vm807_vm14, %v5193_v35, %v804_v13  ;;  %vm821_vm3 = vweird.f32 %v5212_v17  ;;  %vm820_vm2 = vweird.f32 %v5186_v34 }
 0x4f3   : > { %v1704_v51 = vpop.xlane.xlu2 %1703  ;;  %vm810_vm6 = vcmp.eq.f32.partialorder %v809_v27, 8.507059e+37  ;;  %v819_v38 = vadd.f32 %v5212_v17, %v818_v21  ;;  %vm822_vm14 = vmor %vm820_vm2, %vm821_vm3 }
 0x4f4   : > { %v2445_v49 = vpop.f32.mrf.mxu0  ;;  %v1716_v30 = vsub.f32 %v5073_v62, %v1704_v51  ;;  %v813_v54 = vsel %vm810_vm6, %v812_v61, %v808_v48  ;;  %v826_v51 = vand.u32 2147483648, %v5186_v34  ;;  %vm6464_vm3 = vmmov %vm6455_vm1 }
 0x4f5   : > { %v2465_v6 = vmul.f32 0.17677669, %v2445_v49  ;;  %v814_v43 = vmul.f32 %v5020_v36, %v813_v54  ;;  %v823_v13 = vsel %vm822_vm14, %v5212_v17, %v819_v38  ;;  %vm6465_vm2 = vmmov %vm6455_vm1 }
 0x4f6   : > { %v5247_v60 = vpop.eup %3889  ;;  %v1729_v26 = vmul.f32 1.442695, %v1716_v30  ;;  %v824_v30 = vand.u32 2147483647, %v5186_v34  ;;  %v827_v36 = vor.u32 1.1754944e-38, %v826_v51  ;;  %vm6467_vm14 = vmmov %vm6455_vm1 }
 0x4f7   : > { %v5252_v8 = vsel %vm6429_vm0, %v2465_v6, -inf  ;;  %v1747_v41 = vsel %vm6455_vm1, %v5247_v60, 0.0  ;;  %3698 = vmatmul.msk.f32.gmra.mxu2 %vm6461_vm5, %v799_v46 }
 0x4f8   : > { %v2485_v62 = vsel %vm6462_vm9, %v5252_v8, -inf  ;;  %3891 = vpow2.f32 %v1729_v26  ;;  %vm6463_vm9 = vmmov %vm6455_vm1  ;;  %vm825_vm6 = vcmp.eq.f32.partialorder %v824_v30, 8.507059e+37 }
 0x4f9   : > { %2486 = vmax.xlane.f32.xlu2 %v2485_v62  ;;  %1748 = vadd.xlane.f32.xlu0 %v1747_v41  ;;  %v828_v46 = vsel %vm825_vm6, %v827_v36, %v823_v13  ;;  %vm6468_vm6 = vmmov %vm6455_vm1  ;;  %v5329_v13 = vld [vmem:[%s4196_s21 + $0x30] sm:$0xff] }
 0x4fa   : > { %v829_v21 = vmul.f32 %v5009_v28, %v828_v46  ;;  %v5350_v46 = vld [vmem:[%s4196_s21 + $0x10] sm:$0xff] }
 0x4fb   : > { %v1707_v29 = vpop.xlane.xlu0 %1706 }
 0x4fc   : > { %v2448_v50 = vpop.f32.mrf.mxu0  ;;  %v1717_v10 = vsub.f32 %v5087_v44, %v1707_v29 }
 0x4fd   : > { %v2466_v42 = vmul.f32 0.17677669, %v2448_v50 }
 0x4fe   : > { %v5267_v49 = vpop.eup %3891  ;;  %v1731_v35 = vmul.f32 1.442695, %v1717_v10 }
 0x4ff   : > { %v5272_v56 = vsel %vm6431_vm11, %v2466_v42, -inf  ;;  %v1750_v44 = vsel %vm6463_vm9, %v5267_v49, 0.0  ;;  %3699 = vmatmul.msk.f32.gmra.mxu2 %vm6461_vm5, %v814_v43  ;;  %vm6466_vm9 = vmmov %vm6461_vm5 }
 0x500   : > { %v2488_v6 = vsel %vm6455_vm1, %v5272_v56, -inf  ;;  %3893 = vpow2.f32 %v1731_v35 }
 0x501   : > { %1751 = vadd.xlane.f32.xlu2 %v1750_v44  ;;  %2489 = vmax.xlane.f32.xlu1 %v2488_v6 }
 0x503   : > { %v1710_v3 = vpop.xlane.xlu2 %1709 }
 0x504   : > { %v2451_v26 = vpop.f32.mrf.mxu0  ;;  %v1718_v34 = vsub.f32 %v5101_v53, %v1710_v3  ;;  %v5345_v3 = vld [vmem:[%s4196_s21 + $0x18] sm:$0xff] }
 0x505   : > { %v2467_v27 = vmul.f32 0.17677669, %v2451_v26  ;;  %v1184_v26 = vmul.f32 %v5345_v3, %v4268_v32 }
 0x506   : > { %v5282_v62 = vpop.eup %3893  ;;  %v1733_v41 = vmul.f32 1.442695, %v1718_v34  ;;  %v1183_v34 = vmul.f32 %v5350_v46, %v4268_v32 }
 0x507   : > { %v5287_v48 = vsel %vm6433_vm7, %v2467_v27, -inf  ;;  %v1753_v61 = vsel %vm6465_vm2, %v5282_v62, 0.0  ;;  %3700 = vmatmul.msk.f32.gmra.mxu2 %vm6466_vm9, %v829_v21  ;;  %v5355_v27 = vld [vmem:[%s4196_s21 + $0x8] sm:$0xff] }
 0x508   : > { %v2491_v17 = vsel %vm6464_vm3, %v5287_v48, -inf  ;;  %3895 = vpow2.f32 %v1733_v41  ;;  %vm6469_vm3 = vmmov %vm6455_vm1  ;;  %v1182_v41 = vmul.f32 %v5355_v27, %v4268_v32 }
 0x509   : > { %2492 = vmax.xlane.f32.xlu0 %v2491_v17  ;;  %1754 = vadd.xlane.f32.xlu1 %v1753_v61 }
 0x50c   : > { %v2454_v53 = vpop.f32.mrf.mxu0 }
 0x50d   : > { %v2468_v50 = vmul.f32 0.17677669, %v2454_v53  ;;  %v5368_v53 = vmul.f32 %v5012_v7, %v5143_v16 }
 0x50e   : > { %v5294_v29 = vpop.eup %3895 }
 0x50f   : > { %v5298_v28 = vsel %vm6434_vm8, %v2468_v50, -inf  ;;  %v1756_v42 = vsel %vm6467_vm14, %v5294_v29, 0.0  ;;  %3701 = vmatmul.msk.f32.gmra.mxu2 %vm6461_vm5, %v4586_v63  ;;  %vm6514_vm8 = vcmask 523264  }
 0x510   : > { %v2494_v54 = vsel %vm6455_vm1, %v5298_v28, -inf }
 0x511   : > { %2495 = vmax.xlane.f32.xlu2 %v2494_v54  ;;  %1757 = vadd.xlane.f32.xlu0 %v1756_v42 }
 0x514   : > { %v2457_v10 = vpop.f32.mrf.mxu0 }
 0x515   : > { %v2469_v38 = vmul.f32 0.17677669, %v2457_v10 }
 0x517   : > { %v5308_v51 = vsel %vm6436_vm4, %v2469_v38, -inf  ;;  %2058 = vmatmul.f32.vlgmr.msrb.gmra.mxu2 %v5016_v11  ;;  %v5324_v11 = vld [vmem:[%s4196_s21 + $0x38] sm:$0xff] }
 0x518   : > { %v2497_v35 = vsel %vm6468_vm6, %v5308_v51, -inf  ;;  %v1188_v6 = vmul.f32 %v5324_v11, %v4268_v32 }
 0x519   : > { %2498 = vmax.xlane.f32.xlu1 %v2497_v35 }
 0x51a   : > { %1911 = vmatpush.msra.mxu3 %v1188_v6 }
 0x51c   : > { %v2460_v43 = vpop.f32.mrf.mxu0 }
 0x51d   : > { %v2470_v30 = vmul.f32 0.17677669, %v2460_v43 }
 0x51f   : > { %v5315_v63 = vsel %vm6438_vm12, %v2470_v30, -inf  ;;  %2061 = vmatmul.f32.gmra.mxu2 %v5038_v15  ;;  %v1187_v15 = vmul.f32 %v5329_v13, %v4268_v32 }
 0x520   : > { %v2500_v44 = vsel %vm6469_vm3, %v5315_v63, -inf }
 0x521   : > { %2501 = vmax.xlane.f32.xlu0 %v2500_v44  ;;  %1912 = vmatpush.msra.mxu3 %v1187_v15 }
 0x527   : > { %2064 = vmatmul.f32.gmra.mxu2 %v5054_v37  ;;  %v5334_v37 = vld [vmem:[%s4196_s21 + $0x28] sm:$0xff] }
 0x52f   : > { %2067 = vmatmul.f32.gmra.mxu2 %v5068_v55  ;;  %v1186_v55 = vmul.f32 %v5334_v37, %v4268_v32 }
 0x531   : > { %1913 = vmatpush.msra.mxu3 %v1186_v55 }
 0x537   : > { %2070 = vmatmul.f32.gmra.mxu2 %v5082_v57  ;;  %v5339_v57 = vld [vmem:[%s4196_s21 + $0x20] sm:$0xff] }
 0x538   : > { %v1185_v36 = vmul.f32 %v5339_v57, %v4268_v32 }
 0x53a   : > { %1914 = vmatpush.msra.mxu3 %v1185_v36 }
 0x53c   : > { %1915 = vmatpush.msra.mxu3 %v1184_v26 }
 0x53e   : > { %1916 = vmatpush.msra.mxu3 %v1183_v34 }
 0x53f   : > { %2073 = vmatmul.f32.gmra.mxu2 %v5096_v9  ;;  %v5360_v9 = vld [vmem:[%s4196_s21] sm:$0xff] }
 0x540   : > { %1917 = vmatpush.msra.mxu3 %v1182_v41  ;;  %v1181_v21 = vmul.f32 %v5360_v9, %v4268_v32 }
 0x542   : > { %1918 = vmatpush.msra.mxu3 %v1181_v21 }
 0x547   : > { %2076 = vmatmul.f32.gmra.mxu2 %v5110_v18 }
 0x54f   : > { %2079 = vmatmul.f32.gmra.mxu2 %v5120_v39  ;;  %v5376_v39 = vmul.f32 %v5034_v5, %v5143_v16 }
 0x553   : > { %v1737_v17 = vpop.xlane.xlu1 %1736 }
 0x554   : > { %3897 = vrcp.f32 %v1737_v17  ;;  %v1740_v61 = vpop.xlane.xlu0 %1739  ;;  %v1768_v43 = vand.u32 2147483647, %v1737_v17  ;;  %v1770_v7 = vand.u32 2147483648, %v1737_v17  ;;  %vm1764_vm9 = vweird.f32 %v1737_v17 }
 0x555   : > { %3899 = vrcp.f32 %v1740_v61  ;;  %vm1779_vm6 = vweird.f32 %v1740_v61 }
 0x556   : > { %vm1769_vm14 = vcmp.eq.f32.partialorder %v1768_v43, 8.507059e+37 }
 0x557   : > { %2793 = vmatmul.f32.vlgmr.msra.gmra.mxu2 %v5368_v53 }
 0x559   : > { %v5371_v50 = vpop.f32.mrf.mxu2 }
 0x55a   : > { %6470 = vst [vmem:[#allocation5_spill] sm:$0xff] %v5371_v50  ;;  %v3898_v54 = vpop.eup %3897 }
 0x55b   : > { %v3900_v42 = vpop.eup %3899  ;;  %v1760_v32 = vmul.f32 %v3898_v54, %v1737_v17  ;;  %vm1765_vm2 = vweird.f32 %v3898_v54  ;;  %v5386_v17 = vmul.f32 %v5050_v1, %v5143_v16 }
 0x55c   : > { %v2481_v10 = vpop.xlane.xlu1 %2480  ;;  %v1775_v18 = vmul.f32 %v3900_v42, %v1740_v61  ;;  %vm1766_vm1 = vmor %vm1764_vm9, %vm1765_vm2  ;;  %vm1780_vm5 = vweird.f32 %v3900_v42  ;;  %vm6472_vm2 = vcmask 523264  }
 0x55d   : > { %v2503_v38 = vsub.f32 %v5202_v40, %v2481_v10  ;;  %v1761_v35 = vsub.f32 1.0, %v1760_v32  ;;  %v1771_v40 = vor.u32 1.1754944e-38, %v1770_v7  ;;  %v1785_v32 = vand.u32 2147483648, %v1740_v61  ;;  %vm1781_vm3 = vmor %vm1779_vm6, %vm1780_vm5 }
 0x55e   : > { %v1776_v30 = vsub.f32 1.0, %v1775_v18  ;;  %vm6473_vm9 = vmmov %vm6472_vm2 }
 0x55f   : > { %v2511_v44 = vmul.f32 1.442695, %v2503_v38  ;;  %v1762_v6 = vmul.f32 %v3898_v54, %v1761_v35  ;;  %2796 = vmatmul.f32.gmra.mxu2 %v5376_v39  ;;  %vm6475_vm5 = vmmov %vm6472_vm2 }
 0x560   : > { %v1777_v15 = vmul.f32 %v3900_v42, %v1776_v30 }
 0x561   : > { %3901 = vpow2.f32 %v2511_v44  ;;  %v1763_v55 = vadd.f32 %v3898_v54, %v1762_v6  ;;  %v1786_v44 = vor.u32 1.1754944e-38, %v1785_v32 }
 0x562   : > { %v1743_v36 = vpop.xlane.xlu2 %1742  ;;  %v5379_v5 = vpop.f32.mrf.mxu2  ;;  %v1778_v41 = vadd.f32 %v3900_v42, %v1777_v15 }
 0x563   : > { %v1767_v26 = vsel %vm1766_vm1, %v3898_v54, %v1763_v55  ;;  %6471 = vst [vmem:[#allocation8_spill] sm:$0xff] %v5379_v5  ;;  %3903 = vrcp.f32 %v1743_v36  ;;  %v1783_v54 = vand.u32 2147483647, %v1740_v61  ;;  %v1798_v32 = vand.u32 2147483647, %v1743_v36 }
 0x564   : > { %v2484_v34 = vpop.xlane.xlu0 %2483  ;;  %v1772_v21 = vsel %vm1769_vm14, %v1771_v40, %v1767_v26  ;;  %v5381_v10 = vpop.xlane.xlu1 %1745  ;;  %v1782_v30 = vsel %vm1781_vm3, %v3900_v42, %v1778_v41  ;;  %v1800_v41 = vand.u32 2147483648, %v1743_v36  ;;  %vm1794_vm6 = vweird.f32 %v1743_v36  ;;  %vm6476_vm3 = vmmov %vm6472_vm2 }
 0x565   : > { %v2504_v18 = vsub.f32 %v5228_v24, %v2484_v34  ;;  %3905 = vrcp.f32 %v5381_v10  ;;  %v1773_v43 = vmul.f32 %v5168_v19, %v1772_v21  ;;  %vm1784_vm1 = vcmp.eq.f32.partialorder %v1783_v54, 8.507059e+37 }
 0x566   : > { %v1787_v61 = vsel %vm1784_vm1, %v1786_v44, %v1782_v30  ;;  %v5407_v34 = vmul.f32 %v5064_v25, %v5143_v16 }
 0x567   : > { %v5389_v38 = vpop.eup %3901  ;;  %v2513_v35 = vmul.f32 1.442695, %v2504_v18  ;;  %3704 = vmatmul.msk.f32.vlgmr.msra.gmra.mxu3 %vm6473_vm9, %v1773_v43  ;;  %2799 = vmatmul.f32.gmra.mxu2 %v5386_v17  ;;  %v1788_v21 = vmul.f32 %v5172_v45, %v1787_v61  ;;  %v1801_v45 = vor.u32 1.1754944e-38, %v1800_v41  ;;  %vm1799_vm9 = vcmp.eq.f32.partialorder %v1798_v32, 8.507059e+37 }
 0x568   : > { %v2527_v7 = vsel %vm6472_vm2, %v5389_v38, 0.0 }
 0x569   : > { %3907 = vpow2.f32 %v2513_v35  ;;  %v3904_v1 = vpop.eup %3903  ;;  %2528 = vadd.xlane.f32.xlu2 %v2527_v7 }
 0x56a   : > { %v1790_v24 = vmul.f32 %v3904_v1, %v1743_v36  ;;  %v5398_v15 = vpop.f32.mrf.mxu2  ;;  %vm1795_vm14 = vweird.f32 %v3904_v1  ;;  %v5424_v36 = vmul.f32 %v5078_v14, %v5143_v16 }
 0x56b   : > { %v5396_v6 = vpop.eup %3905  ;;  %6474 = vst [vmem:[#allocation38_spill] sm:$0xff] %v5398_v15  ;;  %vm1796_vm2 = vmor %vm1794_vm6, %vm1795_vm14  ;;  %vm1809_vm14 = vweird.f32 %v5381_v10 }
 0x56c   : > { %v2487_v19 = vpop.xlane.xlu2 %2486  ;;  %v1791_v55 = vsub.f32 1.0, %v1790_v24  ;;  %v1805_v42 = vmul.f32 %v5396_v6, %v5381_v10  ;;  %v5403_v26 = vpop.xlane.xlu0 %1748  ;;  %vm1810_vm1 = vweird.f32 %v5396_v6 }
 0x56d   : > { %v2505_v40 = vsub.f32 %v5252_v8, %v2487_v19  ;;  %3909 = vrcp.f32 %v5403_v26  ;;  %vm1811_vm6 = vmor %vm1809_vm14, %vm1810_vm1  ;;  %vm1824_vm1 = vweird.f32 %v5403_v26 }
 0x56e   : > { %v1792_v54 = vmul.f32 %v3904_v1, %v1791_v55  ;;  %v1806_v35 = vsub.f32 1.0, %v1805_v42 }
 0x56f   : > { %v5411_v18 = vpop.eup %3907  ;;  %v2515_v43 = vmul.f32 1.442695, %v2505_v40  ;;  %3705 = vmatmul.msk.f32.gmra.mxu3 %vm6476_vm3, %v1788_v21  ;;  %2802 = vmatmul.f32.gmra.mxu2 %v5407_v34 }
 0x570   : > { %v2530_v8 = vsel %vm6475_vm5, %v5411_v18, 0.0  ;;  %v1807_v7 = vmul.f32 %v5396_v6, %v1806_v35  ;;  %v1793_v25 = vadd.f32 %v3904_v1, %v1792_v54  ;;  %v1813_v54 = vand.u32 2147483647, %v5381_v10  ;;  %vm6478_vm5 = vmmov %vm6476_vm3 }
 0x571   : > { %3911 = vpow2.f32 %v2515_v43  ;;  %2531 = vadd.xlane.f32.xlu1 %v2530_v8 }
 0x572   : > { %v1797_v30 = vsel %vm1796_vm2, %v3904_v1, %v1793_v25  ;;  %v5418_v24 = vpop.f32.mrf.mxu2  ;;  %v1808_v40 = vadd.f32 %v5396_v6, %v1807_v7  ;;  %v1815_v1 = vand.u32 2147483648, %v5381_v10  ;;  %vm1814_vm2 = vcmp.eq.f32.partialorder %v1813_v54, 8.507059e+37 }
 0x573   : > { %v3910_v44 = vpop.eup %3909  ;;  %6477 = vst [vmem:[#allocation39_spill] sm:$0xff] %v5418_v24  ;;  %v1802_v19 = vsel %vm1799_vm9, %v1801_v45, %v1797_v30 }
 0x574   : > { %v5420_v61 = vpop.xlane.xlu2 %1751  ;;  %v1820_v55 = vmul.f32 %v3910_v44, %v5403_v26  ;;  %v2490_v42 = vpop.xlane.xlu1 %2489  ;;  %v1803_v21 = vmul.f32 %v5216_v47, %v1802_v19  ;;  %v1816_v47 = vor.u32 1.1754944e-38, %v1815_v1  ;;  %vm1825_vm9 = vweird.f32 %v3910_v44 }
 0x575   : > { %3913 = vrcp.f32 %v5420_v61  ;;  %v2506_v41 = vsub.f32 %v5272_v56, %v2490_v42  ;;  %v1812_v56 = vsel %vm1811_vm6, %v5396_v6, %v1808_v40  ;;  %v5450_v42 = vmul.f32 %v5092_v0, %v5143_v16  ;;  %vm1826_vm14 = vmor %vm1824_vm1, %vm1825_vm9 }
 0x576   : > { %v1821_v14 = vsub.f32 1.0, %v1820_v55  ;;  %v1817_v30 = vsel %vm1814_vm2, %v1816_v47, %v1812_v56  ;;  %v1830_v40 = vand.u32 2147483648, %v5403_v26  ;;  %vm6481_vm6 = vmmov %vm6476_vm3  ;;  %v5467_v47 = vmul.f32 %v5106_v52, %v5143_v16 }
 0x577   : > { %v5433_v32 = vpop.eup %3911  ;;  %v2517_v35 = vmul.f32 1.442695, %v2506_v41  ;;  %3706 = vmatmul.msk.f32.gmra.mxu3 %vm6476_vm3, %v1803_v21  ;;  %2805 = vmatmul.f32.gmra.mxu2 %v5424_v36  ;;  %v1818_v21 = vmul.f32 %v5221_v33, %v1817_v30  ;;  %vm1839_vm9 = vweird.f32 %v5420_v61 }
 0x578   : > { %v2533_v43 = vsel %vm6478_vm5, %v5433_v32, 0.0  ;;  %v1822_v8 = vmul.f32 %v3910_v44, %v1821_v14  ;;  %v1828_v14 = vand.u32 2147483647, %v5403_v26  ;;  %vm6480_vm5 = vmmov %vm6476_vm3 }
 0x579   : > { %3915 = vpow2.f32 %v2517_v35  ;;  %2534 = vadd.xlane.f32.xlu2 %v2533_v43  ;;  %v1831_v43 = vor.u32 1.1754944e-38, %v1830_v40  ;;  %vm6483_vm1 = vmmov %vm6480_vm5 }
 0x57a   : > { %v5443_v10 = vpop.f32.mrf.mxu2  ;;  %v1823_v6 = vadd.f32 %v3910_v44, %v1822_v8  ;;  %vm1829_vm3 = vcmp.eq.f32.partialorder %v1828_v14, 8.507059e+37 }
 0x57b   : > { %v3914_v7 = vpop.eup %3913  ;;  %6479 = vst [vmem:[#allocation40_spill] sm:$0xff] %v5443_v10 }
 0x57c   : > { %v1835_v25 = vmul.f32 %v3914_v7, %v5420_v61  ;;  %v2493_v45 = vpop.xlane.xlu0 %2492  ;;  %v5445_v19 = vpop.xlane.xlu1 %1754  ;;  %v1827_v35 = vsel %vm1826_vm14, %v3910_v44, %v1823_v6  ;;  %vm1840_vm2 = vweird.f32 %v3914_v7  ;;  %v1845_v44 = vand.u32 2147483648, %v5420_v61 }
 0x57d   : > { %v2507_v55 = vsub.f32 %v5287_v48, %v2493_v45  ;;  %3917 = vrcp.f32 %v5445_v19  ;;  %v1832_v56 = vsel %vm1829_vm3, %v1831_v43, %v1827_v35  ;;  %vm1841_vm14 = vmor %vm1839_vm9, %vm1840_vm2  ;;  %vm1854_vm2 = vweird.f32 %v5445_v19 }
 0x57e   : > { %v1836_v1 = vsub.f32 1.0, %v1835_v25  ;;  %v1833_v52 = vmul.f32 %v5247_v60, %v1832_v56  ;;  %vm6487_vm9 = vmmov %vm6483_vm1 }
 0x57f   : > { %v2519_v41 = vmul.f32 1.442695, %v2507_v55  ;;  %v5457_v54 = vpop.eup %3915  ;;  %3707 = vmatmul.msk.f32.gmra.mxu3 %vm6480_vm5, %v1818_v21  ;;  %2808 = vmatmul.f32.gmra.mxu2 %v5450_v42  ;;  %vm6484_vm5 = vmmov %vm6483_vm1 }
 0x580   : > { %v1837_v48 = vmul.f32 %v3914_v7, %v1836_v1  ;;  %v2536_v0 = vsel %vm6481_vm6, %v5457_v54, 0.0 }
 0x581   : > { %3919 = vpow2.f32 %v2519_v41  ;;  %2537 = vadd.xlane.f32.xlu0 %v2536_v0  ;;  %v1843_v41 = vand.u32 2147483647, %v5420_v61  ;;  %v6486_v61 = vld [vmem:[#allocation25_spill] sm:$0xff] }
 0x582   : > { %v5463_v33 = vpop.f32.mrf.mxu2  ;;  %v1838_v55 = vadd.f32 %v3914_v7, %v1837_v48  ;;  %v1846_v48 = vor.u32 1.1754944e-38, %v1845_v44 }
 0x583   : > { %v3918_v8 = vpop.eup %3917  ;;  %6482 = vst [vmem:[#allocation41_spill] sm:$0xff] %v5463_v33  ;;  %vm1844_vm6 = vcmp.eq.f32.partialorder %v1843_v41, 8.507059e+37 }
 0x584   : > { %v2496_v26 = vpop.xlane.xlu2 %2495  ;;  %v1850_v25 = vmul.f32 %v3918_v8, %v5445_v19  ;;  %v5471_v30 = vpop.xlane.xlu0 %1757  ;;  %v1842_v14 = vsel %vm1841_vm14, %v3914_v7, %v1838_v55  ;;  %vm1855_vm3 = vweird.f32 %v3918_v8  ;;  %v1860_v7 = vand.u32 2147483648, %v5445_v19  ;;  %vm6488_vm14 = vmmov %vm6484_vm5 }
 0x585   : > { %v2508_v45 = vsub.f32 %v5298_v28, %v2496_v26  ;;  %3921 = vrcp.f32 %v5471_v30  ;;  %v1847_v43 = vsel %vm1844_vm6, %v1846_v48, %v1842_v14  ;;  %v5488_v26 = vmul.f32 %v6486_v61, %v5143_v16 }
 0x586   : > { %v1851_v40 = vsub.f32 1.0, %v1850_v25 }
 0x587   : > { %v5476_v6 = vpop.eup %3919  ;;  %v2521_v1 = vmul.f32 1.442695, %v2508_v45  ;;  %3708 = vmatmul.msk.f32.gmra.mxu3 %vm6484_vm5, %v1833_v52  ;;  %2811 = vmatmul.f32.gmra.mxu2 %v5467_v47  ;;  %v1858_v52 = vand.u32 2147483647, %v5445_v19 }
 0x588   : > { %v2539_v28 = vsel %vm6483_vm1, %v5476_v6, 0.0  ;;  %v1852_v21 = vmul.f32 %v3918_v8, %v1851_v40  ;;  %vm1856_vm1 = vmor %vm1854_vm2, %vm1855_vm3  ;;  %vm1869_vm3 = vweird.f32 %v5471_v30 }
 0x589   : > { %3923 = vpow2.f32 %v2521_v1  ;;  %2540 = vadd.xlane.f32.xlu1 %v2539_v28  ;;  %v1848_v1 = vmul.f32 %v5267_v49, %v1847_v43  ;;  %vm1859_vm5 = vcmp.eq.f32.partialorder %v1858_v52, 8.507059e+37  ;;  %v1875_v43 = vand.u32 2147483648, %v5471_v30  ;;  %vm6490_vm2 = vmmov %vm6487_vm9 }
 0x58a   : > { %v5484_v35 = vpop.f32.mrf.mxu2  ;;  %v1853_v45 = vadd.f32 %v3918_v8, %v1852_v21  ;;  %v1861_v21 = vor.u32 1.1754944e-38, %v1860_v7  ;;  %v6492_v7 = vld [vmem:[#allocation10_spill] sm:$0xff] }
 0x58b   : > { %v3922_v0 = vpop.eup %3921  ;;  %6485 = vst [vmem:[#allocation42_spill] sm:$0xff] %v5484_v35 }
 0x58c   : > { %v2499_v60 = vpop.xlane.xlu1 %2498  ;;  %v1865_v56 = vmul.f32 %v3922_v0, %v5471_v30  ;;  %vm1870_vm6 = vweird.f32 %v3922_v0 }
 0x58d   : > { %v2509_v25 = vsub.f32 %v5308_v51, %v2499_v60  ;;  %v1857_v51 = vsel %vm1856_vm1, %v3918_v8, %v1853_v45  ;;  %vm6491_vm1 = vmmov %vm6490_vm2 }
 0x58e   : > { %v1866_v44 = vsub.f32 1.0, %v1865_v56  ;;  %v1862_v49 = vsel %vm1859_vm5, %v1861_v21, %v1857_v51  ;;  %vm6494_vm5 = vcmask 130048   ;;  %v2036_v21 = vmul.f32 %v5329_v13, %v6492_v7 }
 0x58f   : > { %v5494_v55 = vpop.eup %3923  ;;  %v2523_v40 = vmul.f32 1.442695, %v2509_v25  ;;  %3709 = vmatmul.msk.f32.gmra.mxu3 %vm6488_vm14, %v1848_v1  ;;  %2814 = vmatmul.f32.gmra.mxu2 %v5488_v26  ;;  %v1863_v8 = vmul.f32 %v5282_v62, %v1862_v49  ;;  %v1873_v25 = vand.u32 2147483647, %v5471_v30 }
 0x590   : > { %v2542_v41 = vsel %vm6487_vm9, %v5494_v55, 0.0  ;;  %v1867_v28 = vmul.f32 %v3922_v0, %v1866_v44  ;;  %vm1871_vm9 = vmor %vm1869_vm3, %vm1870_vm6  ;;  %v2037_v44 = vmul.f32 %v5324_v11, %v6492_v7 }
 0x591   : > { %3925 = vpow2.f32 %v2523_v40  ;;  %2543 = vadd.xlane.f32.xlu2 %v2542_v41  ;;  %v1876_v40 = vor.u32 1.1754944e-38, %v1875_v43  ;;  %vm1874_vm14 = vcmp.eq.f32.partialorder %v1873_v25, 8.507059e+37  ;;  %vm6495_vm6 = vmmov %vm6491_vm1  ;;  %v2035_v43 = vmul.f32 %v5334_v37, %v6492_v7 }
 0x592   : > { %v5502_v14 = vpop.f32.mrf.mxu2  ;;  %v1868_v60 = vadd.f32 %v3922_v0, %v1867_v28  ;;  %2703 = vmatpush.msrb.mxu3 %v2037_v44  ;;  %vm6496_vm3 = vmmov %vm6491_vm1 }
 0x593   : > { %6489 = vst [vmem:[#allocation25_spill] sm:$0xff] %v5502_v14 }
 0x594   : > { %v2502_v48 = vpop.xlane.xlu0 %2501  ;;  %2704 = vmatpush.msrb.mxu3 %v2036_v21 }
 0x595   : > { %v2510_v19 = vsub.f32 %v5315_v63, %v2502_v48  ;;  %v1872_v63 = vsel %vm1871_vm9, %v3922_v0, %v1868_v60 }
 0x596   : > { %v1877_v52 = vsel %vm1874_vm14, %v1876_v40, %v1872_v63  ;;  %2705 = vmatpush.msrb.mxu3 %v2035_v43  ;;  %v2034_v63 = vmul.f32 %v5339_v57, %v6492_v7 }
 0x597   : > { %v5506_v61 = vpop.eup %3925  ;;  %v2525_v56 = vmul.f32 1.442695, %v2510_v19  ;;  %3710 = vmatmul.msk.f32.gmra.mxu3 %vm6491_vm1, %v1863_v8  ;;  %v1878_v51 = vmul.f32 %v5294_v29, %v1877_v52 }
 0x598   : > { %v2545_v45 = vsel %vm6490_vm2, %v5506_v61, 0.0  ;;  %vm6498_vm2 = vmmov %vm6494_vm5  ;;  %2706 = vmatpush.msrb.mxu3 %v2034_v63  ;;  %v6509_v63 = vld [vmem:[#allocation34_spill] sm:$0xff] }
 0x599   : > { %3927 = vpow2.f32 %v2525_v56  ;;  %2546 = vadd.xlane.f32.xlu0 %v2545_v45  ;;  %vm6500_vm9 = vmmov %vm6498_vm2 }
 0x59a   : > { %v2059_v1 = vpop.f32.mrf.mxu2  ;;  %vm6503_vm14 = vmmov %vm6498_vm2 }
 0x59b   : > { %v2083_v62 = vmul.f32 0.17677669, %v2059_v1  ;;  %v6501_v1 = vld [vmem:[#allocation31_spill] sm:$0xff] }
 0x59c   : > { %vm6502_vm1 = vnez %v6501_v1 }
 0x59d   : > { %v5520_v28 = vsel %vm4381_vm10, %v2083_v62, -inf  ;;  %v2033_v62 = vmul.f32 %v5345_v3, %v6492_v7 }
 0x59e   : > { %v2099_v0 = vsel %vm6494_vm5, %v5520_v28, -inf }
 0x59f   : > { %v5516_v41 = vpop.eup %3927  ;;  %2100 = vmax.xlane.f32.xlu2 %v2099_v0  ;;  %3711 = vmatmul.msk.f32.gmra.mxu3 %vm6496_vm3, %v1878_v51 }
 0x5a0   : > { %v2548_v11 = vsel %vm6495_vm6, %v5516_v41, 0.0  ;;  %2707 = vmatpush.msrb.mxu3 %v2033_v62  ;;  %vm6506_vm6 = vmmov %vm6498_vm2  ;;  %v2030_v62 = vmul.f32 %v5360_v9, %v6492_v7 }
 0x5a1   : > { %2549 = vadd.xlane.f32.xlu1 %v2548_v11  ;;  %v6504_v11 = vld [vmem:[#allocation33_spill] sm:$0xff] }
 0x5a2   : > { %v2062_v48 = vpop.f32.mrf.mxu2  ;;  %vm6505_vm5 = vnez %v6504_v11  ;;  %v6535_v11 = vld [vmem:[#allocation12_spill] sm:$0xff] }
 0x5a3   : > { %v2084_v49 = vmul.f32 0.17677669, %v2062_v48 }
 0x5a5   : > { %v5532_v60 = vsel %vm4401_vm13, %v2084_v49, -inf }
 0x5a6   : > { %v2102_v29 = vsel %vm6498_vm2, %v5532_v60, -inf }
 0x5a7   : > { %2103 = vmax.xlane.f32.xlu0 %v2102_v29  ;;  %v6507_v29 = vld [vmem:[#allocation32_spill] sm:$0xff] }
 0x5a8   : > { %vm6508_vm3 = vnez %v6507_v29 }
 0x5aa   : > { %v2065_v56 = vpop.f32.mrf.mxu2 }
 0x5ab   : > { %v2085_v8 = vmul.f32 0.17677669, %v2065_v56 }
 0x5ad   : > { %v5540_v13 = vsel %vm4421_vm15, %v2085_v8, -inf }
 0x5ae   : > { %v2105_v45 = vsel %vm6500_vm9, %v5540_v13, -inf  ;;  %vm6510_vm9 = vnez %v6509_v63 }
 0x5af   : > { %2106 = vmax.xlane.f32.xlu1 %v2105_v45  ;;  %v2032_v45 = vmul.f32 %v5350_v46, %v6492_v7 }
 0x5b1   : > { %2708 = vmatpush.msrb.mxu3 %v2032_v45 }
 0x5b2   : > { %v2068_v44 = vpop.f32.mrf.mxu2 }
 0x5b3   : > { %v2086_v40 = vmul.f32 0.17677669, %v2068_v44 }
 0x5b5   : > { %v5548_v37 = vsel %vm6502_vm1, %v2086_v40, -inf  ;;  %v2031_v40 = vmul.f32 %v5355_v27, %v6492_v7 }
 0x5b6   : > { %v2108_v52 = vsel %vm6503_vm14, %v5548_v37, -inf  ;;  %vm6511_vm14 = vmmov %vm6498_vm2 }
 0x5b7   : > { %2109 = vmax.xlane.f32.xlu2 %v2108_v52  ;;  %2709 = vmatpush.msrb.mxu3 %v2031_v40 }
 0x5b9   : > { %2710 = vmatpush.msrb.mxu3 %v2030_v62 }
 0x5ba   : > { %v2071_v51 = vpop.f32.mrf.mxu2 }
 0x5bb   : > { %v2087_v0 = vmul.f32 0.17677669, %v2071_v51 }
 0x5bd   : > { %v5556_v57 = vsel %vm6505_vm5, %v2087_v0, -inf  ;;  %v6512_v0 = vld [vmem:[#allocation30_spill] sm:$0xff] }
 0x5be   : > { %v2111_v21 = vsel %vm6506_vm6, %v5556_v57, -inf  ;;  %vm6513_vm6 = vnez %v6512_v0 }
 0x5bf   : > { %2112 = vmax.xlane.f32.xlu0 %v2111_v21 }
 0x5c2   : > { %v2074_v48 = vpop.f32.mrf.mxu2 }
 0x5c3   : > { %v2088_v49 = vmul.f32 0.17677669, %v2074_v48 }
 0x5c5   : > { %v5562_v43 = vsel %vm6508_vm3, %v2088_v49, -inf }
 0x5c6   : > { %v2114_v3 = vsel %vm6498_vm2, %v5562_v43, -inf }
 0x5c7   : > { %2115 = vmax.xlane.f32.xlu1 %v2114_v3  ;;  %v4075_v3 = vld [vmem:[%s4190_s18 + $0x38] sm:$0xff] }
 0x5ca   : > { %v2077_v56 = vpop.f32.mrf.mxu2 }
 0x5cb   : > { %v2089_v8 = vmul.f32 0.17677669, %v2077_v56  ;;  %v2764_v56 = vmul.f32 %v4075_v3, %v5143_v16 }
 0x5cd   : > { %v5570_v44 = vsel %vm6510_vm9, %v2089_v8, -inf  ;;  %3165 = vmatpush.xpose.msra.mxu3 %v2764_v56 }
 0x5ce   : > { %v2117_v52 = vsel %vm6511_vm14, %v5570_v44, -inf }
 0x5cf   : > { %2118 = vmax.xlane.f32.xlu2 %v2117_v52 }
 0x5d2   : > { %v2080_v51 = vpop.f32.mrf.mxu2 }
 0x5d3   : > { %v2090_v46 = vmul.f32 0.17677669, %v2080_v51 }
 0x5d5   : > { %v5580_v21 = vsel %vm6513_vm6, %v2090_v46, -inf  ;;  %v4076_v46 = vld [vmem:[%s4190_s18 + $0x30] sm:$0xff] }
 0x5d6   : > { %v2120_v48 = vsel %vm6498_vm2, %v5580_v21, -inf }
 0x5d7   : > { %2121 = vmax.xlane.f32.xlu0 %v2120_v48  ;;  %v2763_v48 = vmul.f32 %v4076_v46, %v5143_v16 }
 0x5d9   : > { %3166 = vmatpush.xpose.msra.mxu3 %v2763_v48 }
 0x5da   : > { %v5584_v27 = vpop.f32.mrf.mxu2 }
 0x5dc   : > { %v2529_v49 = vpop.xlane.xlu2 %2528 }
 0x5dd   : > { %3929 = vrcp.f32 %v2529_v49  ;;  %v2562_v52 = vand.u32 2147483648, %v2529_v49  ;;  %v2560_v51 = vand.u32 2147483647, %v2529_v49  ;;  %vm2556_vm2 = vweird.f32 %v2529_v49 }
 0x5df   : > { %v2563_v3 = vor.u32 1.1754944e-38, %v2562_v52  ;;  %vm2561_vm4 = vcmp.eq.f32.partialorder %v2560_v51, 8.507059e+37 }
 0x5e2   : > { %v5588_v7 = vpop.f32.mrf.mxu2 }
 0x5e3   : > { %v3930_v9 = vpop.eup %3929 }
 0x5e4   : > { %v2552_v8 = vmul.f32 %v3930_v9, %v2529_v49  ;;  %v2532_v45 = vpop.xlane.xlu1 %2531  ;;  %vm2557_vm14 = vweird.f32 %v3930_v9 }
 0x5e5   : > { %3931 = vrcp.f32 %v2532_v45  ;;  %vm2558_vm12 = vmor %vm2556_vm2, %vm2557_vm14  ;;  %v2577_v5 = vand.u32 2147483648, %v2532_v45  ;;  %v2575_v49 = vand.u32 2147483647, %v2532_v45  ;;  %vm2571_vm14 = vweird.f32 %v2532_v45 }
 0x5e6   : > { %v2553_v40 = vsub.f32 1.0, %v2552_v8 }
 0x5e8   : > { %v2554_v62 = vmul.f32 %v3930_v9, %v2553_v40 }
 0x5ea   : > { %v2555_v14 = vadd.f32 %v3930_v9, %v2554_v62  ;;  %v5592_v56 = vpop.f32.mrf.mxu2  ;;  %v4077_v62 = vld [vmem:[%s4190_s18 + $0x28] sm:$0xff] }
 0x5eb   : > { %v3932_v35 = vpop.eup %3931  ;;  %v2762_v52 = vmul.f32 %v4077_v62, %v5143_v16 }
 0x5ec   : > { %v2559_v33 = vsel %vm2558_vm12, %v3930_v9, %v2555_v14  ;;  %v2567_v10 = vmul.f32 %v3932_v35, %v2532_v45  ;;  %v2535_v8 = vpop.xlane.xlu2 %2534  ;;  %vm2572_vm9 = vweird.f32 %v3932_v35  ;;  %v2578_v9 = vor.u32 1.1754944e-38, %v2577_v5  ;;  %v4078_v5 = vld [vmem:[%s4190_s18 + $0x20] sm:$0xff] }
 0x5ed   : > { %v2564_v24 = vsel %vm2561_vm4, %v2563_v3, %v2559_v33  ;;  %3933 = vrcp.f32 %v2535_v8  ;;  %3167 = vmatpush.xpose.msra.mxu3 %v2762_v52  ;;  %vm2573_vm4 = vmor %vm2571_vm14, %vm2572_vm9  ;;  %vm2576_vm12 = vcmp.eq.f32.partialorder %v2575_v49, 8.507059e+37  ;;  %v2590_v45 = vand.u32 2147483647, %v2535_v8 }
 0x5ee   : > { %v2568_v40 = vsub.f32 1.0, %v2567_v10  ;;  %v2565_v15 = vmul.f32 %v5389_v38, %v2564_v24  ;;  %vm2586_vm3 = vweird.f32 %v2535_v8 }
 0x5ef   : > { %vm2591_vm14 = vcmp.eq.f32.partialorder %v2590_v45, 8.507059e+37 }
 0x5f0   : > { %v2569_v46 = vmul.f32 %v3932_v35, %v2568_v40  ;;  %3731 = vmatmul.msk.f32.vlgmr.msrb.gmra.mxu3 %vm6514_vm8, %v2565_v15  ;;  %v2592_v40 = vand.u32 2147483648, %v2535_v8 }
 0x5f2   : > { %v2570_v48 = vadd.f32 %v3932_v35, %v2569_v46  ;;  %v5598_v33 = vpop.f32.mrf.mxu2  ;;  %v2761_v46 = vmul.f32 %v4078_v5, %v5143_v16 }
 0x5f3   : > { %v3934_v14 = vpop.eup %3933 }
 0x5f4   : > { %v2582_v10 = vmul.f32 %v3934_v14, %v2535_v8  ;;  %v2538_v38 = vpop.xlane.xlu0 %2537  ;;  %v2574_v24 = vsel %vm2573_vm4, %v3932_v35, %v2570_v48  ;;  %vm2587_vm2 = vweird.f32 %v3934_v14  ;;  %3168 = vmatpush.xpose.msra.mxu3 %v2761_v46  ;;  %v2593_v35 = vor.u32 1.1754944e-38, %v2592_v40  ;;  %vm6515_vm4 = vmmov %vm6514_vm8 }
 0x5f5   : > { %3935 = vrcp.f32 %v2538_v38  ;;  %v2579_v15 = vsel %vm2576_vm12, %v2578_v9, %v2574_v24  ;;  %vm2588_vm9 = vmor %vm2586_vm3, %vm2587_vm2  ;;  %v2605_v8 = vand.u32 2147483647, %v2538_v38 }
 0x5f6   : > { %v2583_v51 = vsub.f32 1.0, %v2582_v10  ;;  %v2580_v3 = vmul.f32 %v5411_v18, %v2579_v15 }
 0x5f7   : > { %vm2606_vm2 = vcmp.eq.f32.partialorder %v2605_v8, 8.507059e+37 }
 0x5f8   : > { %v2584_v62 = vmul.f32 %v3934_v14, %v2583_v51  ;;  %3732 = vmatmul.msk.f32.gmra.mxu3 %vm6514_vm8, %v2580_v3  ;;  %v2607_v51 = vand.u32 2147483648, %v2538_v38  ;;  %vm2601_vm8 = vweird.f32 %v2538_v38 }
 0x5fa   : > { %v2585_v52 = vadd.f32 %v3934_v14, %v2584_v62  ;;  %v5604_v49 = vpop.f32.mrf.mxu2  ;;  %v4079_v62 = vld [vmem:[%s4190_s18 + $0x18] sm:$0xff] }
 0x5fb   : > { %v3936_v50 = vpop.eup %3935  ;;  %v2760_v5 = vmul.f32 %v4079_v62, %v5143_v16  ;;  %v4081_v62 = vld [vmem:[%s4190_s18 + $0x8] sm:$0xff] }
 0x5fc   : > { %v2597_v48 = vmul.f32 %v3936_v50, %v2538_v38  ;;  %v2541_v18 = vpop.xlane.xlu1 %2540  ;;  %v2589_v9 = vsel %vm2588_vm9, %v3934_v14, %v2585_v52  ;;  %vm2602_vm12 = vweird.f32 %v3936_v50  ;;  %v2608_v14 = vor.u32 1.1754944e-38, %v2607_v51  ;;  %vm6516_vm9 = vmmov %vm6515_vm4 }
 0x5fd   : > { %3937 = vrcp.f32 %v2541_v18  ;;  %v2594_v10 = vsel %vm2591_vm14, %v2593_v35, %v2589_v9  ;;  %vm2603_vm3 = vmor %vm2601_vm8, %vm2602_vm12  ;;  %3169 = vmatpush.xpose.msra.mxu3 %v2760_v5  ;;  %v4080_v9 = vld [vmem:[%s4190_s18 + $0x10] sm:$0xff]  ;;  %v2620_v51 = vand.u32 2147483647, %v2541_v18 }
 0x5fe   : > { %v2598_v24 = vsub.f32 1.0, %v2597_v48  ;;  %v2595_v15 = vmul.f32 %v5433_v32, %v2594_v10  ;;  %v2759_v38 = vmul.f32 %v4080_v9, %v5143_v16 }
 0x5ff   : > { %vm2621_vm8 = vcmp.eq.f32.partialorder %v2620_v51, 8.507059e+37 }
 0x600   : > { %v2599_v3 = vmul.f32 %v3936_v50, %v2598_v24  ;;  %3733 = vmatmul.msk.f32.gmra.mxu3 %vm6515_vm4, %v2595_v15  ;;  %v2622_v15 = vand.u32 2147483648, %v2541_v18  ;;  %vm2616_vm4 = vweird.f32 %v2541_v18 }
 0x601   : > { %3170 = vmatpush.xpose.msra.mxu3 %v2759_v38 }
 0x602   : > { %v2600_v40 = vadd.f32 %v3936_v50, %v2599_v3  ;;  %v5610_v45 = vpop.f32.mrf.mxu2  ;;  %v2623_v5 = vor.u32 1.1754944e-38, %v2622_v15 }
 0x603   : > { %v3938_v46 = vpop.eup %3937 }
 0x604   : > { %v2612_v52 = vmul.f32 %v3938_v46, %v2541_v18  ;;  %v2544_v35 = vpop.xlane.xlu2 %2543  ;;  %v2604_v32 = vsel %vm2603_vm3, %v3936_v50, %v2600_v40  ;;  %vm2617_vm14 = vweird.f32 %v3938_v46  ;;  %v2758_v50 = vmul.f32 %v4081_v62, %v5143_v16  ;;  %vm6517_vm3 = vmmov %vm6516_vm9 }
 0x605   : > { %3939 = vrcp.f32 %v2544_v35  ;;  %v2609_v48 = vsel %vm2606_vm2, %v2608_v14, %v2604_v32  ;;  %vm2618_vm12 = vmor %vm2616_vm4, %vm2617_vm14  ;;  %v2635_v15 = vand.u32 2147483647, %v2544_v35 }
 0x606   : > { %v2613_v10 = vsub.f32 1.0, %v2612_v52  ;;  %v2610_v24 = vmul.f32 %v5457_v54, %v2609_v48  ;;  %3171 = vmatpush.xpose.msra.mxu3 %v2758_v50 }
 0x607   : > { %vm2636_vm4 = vcmp.eq.f32.partialorder %v2635_v15, 8.507059e+37 }
 0x608   : > { %v2614_v3 = vmul.f32 %v3938_v46, %v2613_v10  ;;  %3734 = vmatmul.msk.f32.gmra.mxu3 %vm6516_vm9, %v2610_v24  ;;  %v4082_v10 = vld [vmem:[%s4190_s18] sm:$0xff]  ;;  %vm2631_vm9 = vweird.f32 %v2544_v35  ;;  %s3669_s18 = sshll.u32 %s6637_s10, 2 }
 0x609   : > { %v2757_v24 = vmul.f32 %v4082_v10, %v5143_v16  ;;  %s409_s11 = scalar_lea.vmem %s6207_s9, %s3669_s18 }
 0x60a   : > { %v2615_v8 = vadd.f32 %v3938_v46, %v2614_v3  ;;  %v5618_v14 = vpop.f32.mrf.mxu2  ;;  %v2637_v3 = vand.u32 2147483648, %v2544_v35 }
 0x60b   : > { %v3940_v40 = vpop.eup %3939  ;;  %3172 = vmatpush.xpose.msra.mxu3 %v2757_v24 }
 0x60c   : > { %v2627_v52 = vmul.f32 %v3940_v40, %v2544_v35  ;;  %v2547_v54 = vpop.xlane.xlu0 %2546  ;;  %v2619_v32 = vsel %vm2618_vm12, %v3938_v46, %v2615_v8  ;;  %vm2632_vm2 = vweird.f32 %v3940_v40  ;;  %v2638_v8 = vor.u32 1.1754944e-38, %v2637_v3 }
 0x60d   : > { %3941 = vrcp.f32 %v2547_v54  ;;  %v2624_v48 = vsel %vm2621_vm8, %v2623_v5, %v2619_v32  ;;  %vm2633_vm14 = vmor %vm2631_vm9, %vm2632_vm2  ;;  %v2652_v3 = vand.u32 2147483648, %v2547_v54  ;;  %vm6518_vm12 = vcmask 130048  }
 0x60e   : > { %v2628_v9 = vsub.f32 1.0, %v2627_v52  ;;  %v2625_v38 = vmul.f32 %v5476_v6, %v2624_v48  ;;  %vm6519_vm8 = vmmov %vm6517_vm3  ;;  %vm2646_vm2 = vweird.f32 %v2547_v54 }
 0x60f   : > { %v2653_v0 = vor.u32 1.1754944e-38, %v2652_v3 }
 0x610   : > { %v2629_v18 = vmul.f32 %v3940_v40, %v2628_v9  ;;  %3735 = vmatmul.msk.f32.gmra.mxu3 %vm6517_vm3, %v2625_v38 }
 0x612   : > { %v2630_v62 = vadd.f32 %v3940_v40, %v2629_v18  ;;  %v2101_v51 = vpop.xlane.xlu2 %2100  ;;  %v2815_v6 = vpop.f32.mrf.mxu2 }
 0x613   : > { %v3942_v46 = vpop.eup %3941  ;;  %v2123_v5 = vsub.f32 %v5520_v28, %v2101_v51  ;;  %v2825_v48 = vmul.f32 0.17677669, %v2815_v6 }
 0x614   : > { %v2642_v50 = vmul.f32 %v3942_v46, %v2547_v54  ;;  %v2550_v52 = vpop.xlane.xlu1 %2549  ;;  %v2634_v32 = vsel %vm2633_vm14, %v3940_v40, %v2630_v62  ;;  %vm2647_vm3 = vweird.f32 %v3942_v46  ;;  %v2650_v40 = vand.u32 2147483647, %v2547_v54  ;;  %vm6520_vm14 = vmmov %vm6518_vm12 }
 0x615   : > { %3943 = vrcp.f32 %v2550_v52  ;;  %v2131_v38 = vmul.f32 1.442695, %v2123_v5  ;;  %v2639_v10 = vsel %vm2636_vm4, %v2638_v8, %v2634_v32  ;;  %v5627_v35 = vsel %vm6513_vm6, %v2825_v48, -inf  ;;  %vm2648_vm6 = vmor %vm2646_vm2, %vm2647_vm3 }
 0x616   : > { %v2643_v9 = vsub.f32 1.0, %v2642_v50  ;;  %v2640_v24 = vmul.f32 %v5494_v55, %v2639_v10  ;;  %v2855_v28 = vsel %vm6518_vm12, %v5627_v35, -inf  ;;  %vm2651_vm9 = vcmp.eq.f32.partialorder %v2650_v40, 8.507059e+37  ;;  %vm6521_vm12 = vmmov %vm6519_vm8  ;;  %v5646_v40 = vpop.f32.mrf.mxu3 }
 0x617   : > { %3945 = vpow2.f32 %v2131_v38  ;;  %2856 = vmax.xlane.f32.xlu1 %v2855_v28  ;;  %v2667_v38 = vand.u32 2147483648, %v2550_v52 }
 0x618   : > { %v2644_v18 = vmul.f32 %v3942_v46, %v2643_v9  ;;  %3736 = vmatmul.msk.f32.gmra.mxu3 %vm6519_vm8, %v2640_v24  ;;  %v2818_v9 = vmul.f32 0.17677669, %v5584_v27  ;;  %vm2661_vm8 = vweird.f32 %v2550_v52 }
 0x61a   : > { %v2645_v15 = vadd.f32 %v3942_v46, %v2644_v18  ;;  %v2104_v51 = vpop.xlane.xlu0 %2103  ;;  %v2665_v18 = vand.u32 2147483647, %v2550_v52  ;;  %v5644_v28 = vsel %vm4381_vm10, %v2818_v9, -inf  ;;  %vm6524_vm10 = vmmov %vm6521_vm12  ;;  %v2820_v9 = vmul.f32 0.17677669, %v5592_v56 }
 0x61b   : > { %v3944_v62 = vpop.eup %3943  ;;  %v2124_v50 = vsub.f32 %v5532_v60, %v2104_v51 }
 0x61c   : > { %v2657_v8 = vmul.f32 %v3944_v62, %v2550_v52  ;;  %v2649_v55 = vsel %vm2648_vm6, %v3942_v46, %v2645_v15  ;;  %vm2662_vm4 = vweird.f32 %v3944_v62  ;;  %v2668_v46 = vor.u32 1.1754944e-38, %v2667_v38  ;;  %vm6522_vm6 = vmmov %vm6520_vm14 }
 0x61d   : > { %v5634_v5 = vpop.eup %3945  ;;  %v2133_v32 = vmul.f32 1.442695, %v2124_v50  ;;  %v2654_v48 = vsel %vm2651_vm9, %v2653_v0, %v2649_v55  ;;  %vm2663_vm3 = vmor %vm2661_vm8, %vm2662_vm4  ;;  %vm2666_vm2 = vcmp.eq.f32.partialorder %v2665_v18, 8.507059e+37  ;;  %v2834_v52 = vsel %vm6522_vm6, %v5644_v28, -inf }
 0x61e   : > { %v2658_v6 = vsub.f32 1.0, %v2657_v8  ;;  %v2147_v10 = vsel %vm6520_vm14, %v5634_v5, 0.0  ;;  %v2655_v54 = vmul.f32 %v5506_v61, %v2654_v48  ;;  %vm6523_vm9 = vmmov %vm6522_vm6  ;;  %v5675_v38 = vsel %vm4421_vm15, %v2820_v9, -inf }
 0x61f   : > { %3947 = vpow2.f32 %v2133_v32  ;;  %2148 = vadd.xlane.f32.xlu2 %v2147_v10  ;;  %v5664_v32 = vpop.f32.mrf.mxu3  ;;  %vm6525_vm14 = vmmov %vm6522_vm6  ;;  %v2821_v18 = vmul.f32 0.17677669, %v5598_v33 }
 0x620   : > { %v2659_v24 = vmul.f32 %v3944_v62, %v2658_v6  ;;  %3737 = vmatmul.msk.f32.gmra.mxu3 %vm6521_vm12, %v2655_v54  ;;  %vm6526_vm4 = vmmov %vm6522_vm6 }
 0x621   : > { %vm6528_vm12 = vmmov %vm6526_vm4 }
 0x622   : > { %v2660_v60 = vadd.f32 %v3944_v62, %v2659_v24  ;;  %v2107_v3 = vpop.xlane.xlu1 %2106  ;;  %vm6529_vm15 = vmmov %vm6526_vm4 }
 0x623   : > { %v2125_v27 = vsub.f32 %v5540_v13, %v2107_v3  ;;  %v2819_v13 = vmul.f32 0.17677669, %v5588_v7  ;;  %vm6530_vm8 = vmmov %vm6526_vm4 }
 0x624   : > { %v2664_v61 = vsel %vm2663_vm3, %v3944_v62, %v2660_v60  ;;  %v5688_v60 = vsel %vm6502_vm1, %v2821_v18, -inf  ;;  %vm6531_vm1 = vmmov %vm6526_vm4 }
 0x625   : > { %v2669_v15 = vsel %vm2666_vm2, %v2668_v46, %v2664_v61  ;;  %v5648_v51 = vpop.eup %3947  ;;  %v2135_v0 = vmul.f32 1.442695, %v2125_v27  ;;  %v5660_v55 = vsel %vm4401_vm13, %v2819_v13, -inf  ;;  %vm6527_vm13 = vmmov %vm6526_vm4  ;;  %v2843_v27 = vsel %vm6529_vm15, %v5688_v60, -inf }
 0x626   : > { %v2670_v8 = vmul.f32 %v5516_v41, %v2669_v15  ;;  %v2150_v50 = vsel %vm6523_vm9, %v5648_v51, 0.0  ;;  %v2837_v7 = vsel %vm6525_vm14, %v5660_v55, -inf  ;;  %v2840_v24 = vsel %vm6527_vm13, %v5675_v38, -inf  ;;  %vm6532_vm3 = vmmov %vm6531_vm1 }
 0x627   : > { %3949 = vpow2.f32 %v2135_v0  ;;  %2835 = vmax.xlane.f32.xlu2 %v2834_v52  ;;  %2151 = vadd.xlane.f32.xlu0 %v2150_v50  ;;  %vm6533_vm2 = vmmov %vm6531_vm1 }
 0x628   : > { %3738 = vmatmul.msk.f32.gmra.mxu3 %vm6524_vm10, %v2670_v8  ;;  %vm6534_vm6 = vmmov %vm6531_vm1 }
 0x62a   : > { %v2110_v30 = vpop.xlane.xlu2 %2109 }
 0x62b   : > { %v2126_v62 = vsub.f32 %v5548_v37, %v2110_v30  ;;  %v2822_v30 = vmul.f32 0.17677669, %v5604_v49 }
 0x62d   : > { %v5662_v41 = vpop.eup %3949  ;;  %v2137_v6 = vmul.f32 1.442695, %v2126_v62  ;;  %v5712_v62 = vsel %vm6505_vm5, %v2822_v30, -inf }
 0x62e   : > { %v2153_v48 = vsel %vm6526_vm4, %v5662_v41, 0.0  ;;  %vm6543_vm4 = vmmov %vm6531_vm1 }
 0x62f   : > { %3951 = vpow2.f32 %v2137_v6  ;;  %2838 = vmax.xlane.f32.xlu2 %v2837_v7  ;;  %2154 = vadd.xlane.f32.xlu1 %v2153_v48  ;;  %v2846_v6 = vsel %vm6533_vm2, %v5712_v62, -inf  ;;  %v1986_v48 = vadd.f32 %v6535_v11, %v5646_v40  ;;  %v6539_v40 = vld [vmem:[#allocation7_spill] sm:$0xff] }
 0x630   : > { %3173 = vmatmul.f32.vlgmr.msra.gmra.mxu3 %v5368_v53  ;;  %v1926_v53 = vpop.f32.mrf.mxu3 }
 0x632   : > { %v2113_v19 = vpop.xlane.xlu0 %2112 }
 0x633   : > { %v2127_v37 = vsub.f32 %v5556_v57, %v2113_v19 }
 0x635   : > { %v5677_v10 = vpop.eup %3951  ;;  %v2139_v54 = vmul.f32 1.442695, %v2127_v37  ;;  %v6536_v37 = vld [vmem:[#allocation13_spill] sm:$0xff] }
 0x636   : > { %v2156_v56 = vsel %vm6528_vm12, %v5677_v10, 0.0 }
 0x637   : > { %3953 = vpow2.f32 %v2139_v54  ;;  %2841 = vmax.xlane.f32.xlu2 %v2840_v24  ;;  %2157 = vadd.xlane.f32.xlu1 %v2156_v56  ;;  %v1989_v54 = vadd.f32 %v6536_v37, %v5664_v32  ;;  %v6541_v37 = vld [vmem:[#allocation23_spill] sm:$0xff] }
 0x638   : > { %3176 = vmatmul.f32.gmra.mxu3 %v5376_v39  ;;  %v1929_v39 = vpop.f32.mrf.mxu3 }
 0x63a   : > { %v2116_v25 = vpop.xlane.xlu1 %2115 }
 0x63b   : > { %v2128_v57 = vsub.f32 %v5562_v43, %v2116_v25 }
 0x63d   : > { %v5690_v46 = vpop.eup %3953  ;;  %v2141_v3 = vmul.f32 1.442695, %v2128_v57 }
 0x63e   : > { %v2159_v33 = vsel %vm6530_vm8, %v5690_v46, 0.0 }
 0x63f   : > { %3955 = vpow2.f32 %v2141_v3  ;;  %2844 = vmax.xlane.f32.xlu2 %v2843_v27  ;;  %2160 = vadd.xlane.f32.xlu1 %v2159_v33 }
 0x640   : > { %3179 = vmatmul.f32.gmra.mxu3 %v5386_v17  ;;  %v1932_v50 = vpop.f32.mrf.mxu3 }
 0x641   : > { %v1998_v33 = vadd.f32 %v6539_v40, %v1932_v50 }
 0x642   : > { %v2119_v43 = vpop.xlane.xlu2 %2118 }
 0x643   : > { %v2129_v1 = vsub.f32 %v5570_v44, %v2119_v43 }
 0x645   : > { %v5698_v61 = vpop.eup %3955  ;;  %v2143_v15 = vmul.f32 1.442695, %v2129_v1 }
 0x646   : > { %v2162_v0 = vsel %vm6531_vm1, %v5698_v61, 0.0 }
 0x647   : > { %3957 = vpow2.f32 %v2143_v15  ;;  %2163 = vadd.xlane.f32.xlu1 %v2162_v0  ;;  %v6540_v0 = vld [vmem:[#allocation20_spill] sm:$0xff] }
 0x648   : > { %3182 = vmatmul.f32.gmra.mxu3 %v5407_v34 }
 0x64a   : > { %v2122_v8 = vpop.xlane.xlu0 %2121 }
 0x64b   : > { %v2130_v52 = vsub.f32 %v5580_v21, %v2122_v8  ;;  %v1935_v21 = vpop.f32.mrf.mxu3 }
 0x64c   : > { %v2001_v8 = vadd.f32 %v6540_v0, %v1935_v21 }
 0x64d   : > { %v5704_v13 = vpop.eup %3957  ;;  %v2145_v17 = vmul.f32 1.442695, %v2130_v52 }
 0x64e   : > { %v2165_v44 = vsel %vm6532_vm3, %v5704_v13, 0.0  ;;  %vm6545_vm3 = vmmov %vm6533_vm2 }
 0x64f   : > { %3959 = vpow2.f32 %v2145_v17  ;;  %2166 = vadd.xlane.f32.xlu1 %v2165_v44 }
 0x650   : > { %3185 = vmatmul.f32.gmra.mxu3 %v5424_v36 }
 0x653   : > { %v1938_v49 = vpop.f32.mrf.mxu3 }
 0x654   : > { %v2004_v21 = vadd.f32 %v6541_v37, %v1938_v49  ;;  %v6544_v49 = vld [vmem:[#allocation9_spill] sm:$0xff] }
 0x655   : > { %v5714_v34 = vpop.eup %3959 }
 0x656   : > { %v2168_v7 = vsel %vm6534_vm6, %v5714_v34, 0.0 }
 0x657   : > { %2847 = vmax.xlane.f32.xlu1 %v2846_v6  ;;  %2169 = vadd.xlane.f32.xlu2 %v2168_v7 }
 0x658   : > { %3188 = vmatmul.f32.gmra.mxu3 %v5450_v42  ;;  %v6537_v42 = vld [vmem:[#allocation16_spill] sm:$0xff] }
 0x659   : > { %v1992_v18 = vadd.f32 %v6537_v42, %v1926_v53 }
 0x65b   : > { %v5723_v36 = vpop.f32.mrf.mxu3 }
 0x660   : > { %3191 = vmatmul.f32.gmra.mxu3 %v5467_v47 }
 0x668   : > { %3194 = vmatmul.f32.gmra.mxu3 %v5488_v26  ;;  %v6538_v26 = vld [vmem:[#allocation18_spill] sm:$0xff] }
 0x669   : > { %v1995_v57 = vadd.f32 %v6538_v26, %v1929_v39 }
 0x673   : > { %v2712_v9 = vpop.f32.mrf.mxu3 }
 0x674   : > { %v5727_v19 = vadd.f32 %v2712_v9, %v1986_v48 }
 0x67b   : > { %v2715_v24 = vpop.f32.mrf.mxu3 }
 0x67c   : > { %v5731_v56 = vadd.f32 %v2715_v24, %v1989_v54 }
 0x683   : > { %v2718_v25 = vpop.f32.mrf.mxu3 }
 0x684   : > { %v5734_v47 = vadd.f32 %v2718_v25, %v1992_v18 }
 0x68a   : > { %v5743_v52 = vpop.xlane.xlu1 %2856 }
 0x68b   : > { %v2721_v3 = vpop.f32.mrf.mxu3 }
 0x68c   : > { %v5737_v27 = vadd.f32 %v2721_v3, %v1995_v57 }
 0x692   : > { %v2149_v43 = vpop.xlane.xlu2 %2148 }
 0x693   : > { %v2724_v1 = vpop.f32.mrf.mxu3  ;;  %3961 = vrcp.f32 %v2149_v43  ;;  %v2182_v6 = vand.u32 2147483648, %v2149_v43  ;;  %v2180_v50 = vand.u32 2147483647, %v2149_v43  ;;  %vm2176_vm9 = vweird.f32 %v2149_v43 }
 0x694   : > { %v5740_v15 = vadd.f32 %v2724_v1, %v1998_v33  ;;  %v6542_v33 = vld [vmem:[#allocation6_spill] sm:$0xff] }
 0x695   : > { %v2183_v9 = vor.u32 1.1754944e-38, %v2182_v6  ;;  %vm2181_vm14 = vcmp.eq.f32.partialorder %v2180_v50, 8.507059e+37 }
 0x699   : > { %v3962_v32 = vpop.eup %3961 }
 0x69a   : > { %v2172_v53 = vmul.f32 %v3962_v32, %v2149_v43  ;;  %v2152_v17 = vpop.xlane.xlu0 %2151  ;;  %vm2177_vm5 = vweird.f32 %v3962_v32  ;;  %v5748_v26 = vpop.xlane.xlu2 %2835  ;;  %v2776_v43 = vmul.f32 %v5143_v16, %v6542_v33 }
 0x69b   : > { %3963 = vrcp.f32 %v2152_v17  ;;  %v2727_v44 = vpop.f32.mrf.mxu3  ;;  %vm2178_vm10 = vmor %vm2176_vm9, %vm2177_vm5  ;;  %v2197_v0 = vand.u32 2147483648, %v2152_v17  ;;  %vm2191_vm12 = vweird.f32 %v2152_v17  ;;  %vm6546_vm9 = vcmp.le.s32.totalorder %v4255_v23, %v4370_v12 }
 0x69c   : > { %v2173_v39 = vsub.f32 1.0, %v2172_v53  ;;  %v5745_v30 = vadd.f32 %v2727_v44, %v2001_v8  ;;  %v2195_v8 = vand.u32 2147483647, %v2152_v17 }
 0x69e   : > { %v2174_v7 = vmul.f32 %v3962_v32, %v2173_v39  ;;  %v2198_v39 = vor.u32 1.1754944e-38, %v2197_v0  ;;  %vm2196_vm8 = vcmp.eq.f32.partialorder %v2195_v8, 8.507059e+37 }
 0x6a0   : > { %v2175_v11 = vadd.f32 %v3962_v32, %v2174_v7 }
 0x6a1   : > { %v3964_v48 = vpop.eup %3963 }
 0x6a2   : > { %v2179_v54 = vsel %vm2178_vm10, %v3962_v32, %v2175_v11  ;;  %v2187_v24 = vmul.f32 %v3964_v48, %v2152_v17  ;;  %v2155_v42 = vpop.xlane.xlu1 %2154  ;;  %vm2192_vm13 = vweird.f32 %v3964_v48  ;;  %v2775_v32 = vmul.f32 %v5143_v16, %v6544_v49 }
 0x6a3   : > { %v2184_v18 = vsel %vm2181_vm14, %v2183_v9, %v2179_v54  ;;  %3965 = vrcp.f32 %v2155_v42  ;;  %v2730_v25 = vpop.f32.mrf.mxu3  ;;  %vm2193_vm15 = vmor %vm2191_vm12, %vm2192_vm13  ;;  %v2212_v17 = vand.u32 2147483648, %v2155_v42  ;;  %vm2206_vm2 = vweird.f32 %v2155_v42 }
 0x6a4   : > { %v2188_v57 = vsub.f32 1.0, %v2187_v24  ;;  %v5750_v3 = vadd.f32 %v2730_v25, %v2004_v21  ;;  %v2185_v40 = vmul.f32 %v5634_v5, %v2184_v18  ;;  %v5761_v21 = vpop.xlane.xlu2 %2838  ;;  %v2210_v24 = vand.u32 2147483647, %v2155_v42  ;;  %vm6547_vm14 = vmmov %vm6545_vm3 }
 0x6a6   : > { %v2189_v1 = vmul.f32 %v3964_v48, %v2188_v57  ;;  %3721 = vmatmul.msk.f32.vlgmr.msrb.gmra.mxu1 %vm6543_vm4, %v2185_v40  ;;  %vm2211_vm5 = vcmp.eq.f32.partialorder %v2210_v24, 8.507059e+37  ;;  %vm6548_vm4 = vcmask 523264  }
 0x6a7   : > { %3064 = vmatpush.msrb.mxu1 %v2776_v43 }
 0x6a8   : > { %v2190_v53 = vadd.f32 %v3964_v48, %v2189_v1 }
 0x6a9   : > { %v3966_v44 = vpop.eup %3965  ;;  %3065 = vmatpush.msrb.mxu1 %v2775_v32 }
 0x6aa   : > { %v2202_v5 = vmul.f32 %v3966_v44, %v2155_v42  ;;  %v2158_v6 = vpop.xlane.xlu1 %2157  ;;  %v2194_v7 = vsel %vm2193_vm15, %v3964_v48, %v2190_v53  ;;  %vm2207_vm1 = vweird.f32 %v3966_v44  ;;  %v2213_v48 = vor.u32 1.1754944e-38, %v2212_v17 }
 0x6ab   : > { %3967 = vrcp.f32 %v2158_v6  ;;  %v5758_v50 = vpop.f32.mrf.mxu3  ;;  %v2199_v9 = vsel %vm2196_vm8, %v2198_v39, %v2194_v7  ;;  %vm2208_vm6 = vmor %vm2206_vm2, %vm2207_vm1  ;;  %v2227_v49 = vand.u32 2147483648, %v2158_v6  ;;  %v2225_v53 = vand.u32 2147483647, %v2158_v6 }
 0x6ac   : > { %v2203_v11 = vsub.f32 1.0, %v2202_v5  ;;  %v2200_v37 = vmul.f32 %v5648_v51, %v2199_v9  ;;  %v5773_v39 = vpop.xlane.xlu2 %2841  ;;  %vm2221_vm13 = vweird.f32 %v2158_v6  ;;  %vm6549_vm8 = vcmp.le.s32.totalorder %v4255_v23, %v4390_v20  ;;  %vm6550_vm2 = vmmov %vm6548_vm4 }
 0x6ad   : > { %vm2226_vm15 = vcmp.eq.f32.partialorder %v2225_v53, 8.507059e+37 }
 0x6ae   : > { %v2204_v54 = vmul.f32 %v3966_v44, %v2203_v11  ;;  %3722 = vmatmul.msk.f32.gmra.mxu1 %vm6545_vm3, %v2200_v37 }
 0x6b0   : > { %v2205_v18 = vadd.f32 %v3966_v44, %v2204_v54 }
 0x6b1   : > { %v3968_v25 = vpop.eup %3967 }
 0x6b2   : > { %v2217_v57 = vmul.f32 %v3968_v25, %v2158_v6  ;;  %v2161_v40 = vpop.xlane.xlu1 %2160  ;;  %v2209_v33 = vsel %vm2208_vm6, %v3966_v44, %v2205_v18  ;;  %vm2222_vm10 = vweird.f32 %v3968_v25 }
 0x6b3   : > { %3969 = vrcp.f32 %v2161_v40  ;;  %v3174_v43 = vpop.f32.mrf.mxu3  ;;  %v2214_v0 = vsel %vm2211_vm5, %v2213_v48, %v2209_v33  ;;  %vm2223_vm12 = vmor %vm2221_vm13, %vm2222_vm10  ;;  %v2242_v33 = vand.u32 2147483648, %v2161_v40  ;;  %vm2236_vm6 = vweird.f32 %v2161_v40 }
 0x6b4   : > { %v2218_v51 = vsub.f32 1.0, %v2217_v57  ;;  %v3198_v1 = vmul.f32 0.17677669, %v3174_v43  ;;  %v2215_v32 = vmul.f32 %v5662_v41, %v2214_v0  ;;  %v2228_v41 = vor.u32 1.1754944e-38, %v2227_v49 }
 0x6b5   : > { %v2240_v43 = vand.u32 2147483647, %v2161_v40  ;;  %v2243_v0 = vor.u32 1.1754944e-38, %v2242_v33 }
 0x6b6   : > { %v2219_v8 = vmul.f32 %v3968_v25, %v2218_v51  ;;  %v5768_v42 = vsel %vm6546_vm9, %v3198_v1, -inf  ;;  %3723 = vmatmul.msk.f32.gmra.mxu1 %vm6547_vm14, %v2215_v32  ;;  %vm6551_vm14 = vmmov %vm6545_vm3 }
 0x6b7   : > { %v3214_v44 = vsel %vm6548_vm4, %v5768_v42, -inf  ;;  %vm2241_vm9 = vcmp.eq.f32.partialorder %v2240_v43, 8.507059e+37  ;;  %vm6552_vm4 = vmmov %vm6550_vm2 }
 0x6b8   : > { %3215 = vmax.xlane.f32.xlu0 %v3214_v44  ;;  %v2220_v5 = vadd.f32 %v3968_v25, %v2219_v8 }
 0x6b9   : > { %v3970_v7 = vpop.eup %3969 }
 0x6ba   : > { %v2232_v11 = vmul.f32 %v3970_v7, %v2161_v40  ;;  %v2164_v9 = vpop.xlane.xlu1 %2163  ;;  %v2224_v37 = vsel %vm2223_vm12, %v3968_v25, %v2220_v5  ;;  %vm2237_vm1 = vweird.f32 %v3970_v7  ;;  %v2865_v5 = vsub.f32 %v5627_v35, %v5743_v52 }
 0x6bb   : > { %3971 = vrcp.f32 %v2164_v9  ;;  %v3177_v54 = vpop.f32.mrf.mxu3  ;;  %v2229_v17 = vsel %vm2226_vm15, %v2228_v41, %v2224_v37  ;;  %vm2238_vm5 = vmor %vm2236_vm6, %vm2237_vm1  ;;  %vm2251_vm13 = vweird.f32 %v2164_v9 }
 0x6bc   : > { %v2233_v24 = vsub.f32 1.0, %v2232_v11  ;;  %v3199_v18 = vmul.f32 0.17677669, %v3177_v54  ;;  %v2230_v48 = vmul.f32 %v5677_v10, %v2229_v17  ;;  %v5784_v10 = vpop.xlane.xlu2 %2844  ;;  %v2257_v11 = vand.u32 2147483648, %v2164_v9  ;;  %vm6554_vm1 = vmmov %vm6550_vm2 }
 0x6bd   : > { %v2255_v54 = vand.u32 2147483647, %v2164_v9  ;;  %v2880_v35 = vmul.f32 1.442695, %v2865_v5 }
 0x6be   : > { %v2234_v57 = vmul.f32 %v3970_v7, %v2233_v24  ;;  %v5779_v6 = vsel %vm6549_vm8, %v3199_v18, -inf  ;;  %3724 = vmatmul.msk.f32.gmra.mxu1 %vm6545_vm3, %v2230_v48  ;;  %vm6553_vm8 = vmmov %vm6545_vm3 }
 0x6bf   : > { %v3217_v25 = vsel %vm6550_vm2, %v5779_v6, -inf }
 0x6c0   : > { %3218 = vmax.xlane.f32.xlu0 %v3217_v25  ;;  %v2235_v51 = vadd.f32 %v3970_v7, %v2234_v57 }
 0x6c1   : > { %v3972_v1 = vpop.eup %3971 }
 0x6c2   : > { %v2247_v49 = vmul.f32 %v3972_v1, %v2164_v9  ;;  %v2167_v32 = vpop.xlane.xlu1 %2166  ;;  %v2239_v23 = vsel %vm2238_vm5, %v3970_v7, %v2235_v51  ;;  %vm2252_vm10 = vweird.f32 %v3972_v1  ;;  %vm6555_vm5 = vmmov %vm6553_vm8 }
 0x6c3   : > { %3973 = vrcp.f32 %v2167_v32  ;;  %v3180_v20 = vpop.f32.mrf.mxu3  ;;  %v2244_v44 = vsel %vm2241_vm9, %v2243_v0, %v2239_v23  ;;  %vm2253_vm12 = vmor %vm2251_vm13, %vm2252_vm10  ;;  %v2272_v43 = vand.u32 2147483648, %v2167_v32  ;;  %v2270_v0 = vand.u32 2147483647, %v2167_v32 }
 0x6c4   : > { %v2248_v8 = vsub.f32 1.0, %v2247_v49  ;;  %v3200_v53 = vmul.f32 0.17677669, %v3180_v20  ;;  %v2245_v40 = vmul.f32 %v5690_v46, %v2244_v44  ;;  %v2258_v46 = vor.u32 1.1754944e-38, %v2257_v11  ;;  %vm6556_vm9 = vmmov %vm6555_vm5 }
 0x6c5   : > { %vm2266_vm3 = vweird.f32 %v2167_v32  ;;  %vm2271_vm6 = vcmp.eq.f32.partialorder %v2270_v0, 8.507059e+37  ;;  %vm6557_vm10 = vmmov %vm6554_vm1  ;;  %vm6558_vm13 = vnez %v6507_v29 }
 0x6c6   : > { %v2249_v41 = vmul.f32 %v3972_v1, %v2248_v8  ;;  %v5791_v37 = vsel %vm6429_vm0, %v3200_v53, -inf  ;;  %3725 = vmatmul.msk.f32.gmra.mxu1 %vm6551_vm14, %v2245_v40  ;;  %vm2256_vm0 = vcmp.eq.f32.partialorder %v2255_v54, 8.507059e+37  ;;  %v2273_v8 = vor.u32 1.1754944e-38, %v2272_v43 }
 0x6c7   : > { %v3220_v7 = vsel %vm6552_vm4, %v5791_v37, -inf }
 0x6c8   : > { %3221 = vmax.xlane.f32.xlu0 %v3220_v7  ;;  %v2250_v17 = vadd.f32 %v3972_v1, %v2249_v41  ;;  %v2858_v7 = vsub.f32 %v5644_v28, %v5748_v26  ;;  %v2824_v28 = vmul.f32 0.17677669, %v5618_v14  ;;  %v2859_v14 = vsub.f32 %v5660_v55, %v5761_v21 }
 0x6c9   : > { %v3974_v24 = vpop.eup %3973 }
 0x6ca   : > { %v2262_v52 = vmul.f32 %v3974_v24, %v2167_v32  ;;  %v2170_v18 = vpop.xlane.xlu2 %2169  ;;  %v2254_v48 = vsel %vm2253_vm12, %v3972_v1, %v2250_v17  ;;  %vm2267_vm15 = vweird.f32 %v3974_v24  ;;  %v2866_v26 = vmul.f32 1.442695, %v2858_v7 }
 0x6cb   : > { %3975 = vrcp.f32 %v2170_v18  ;;  %v3183_v58 = vpop.f32.mrf.mxu3  ;;  %v2259_v25 = vsel %vm2256_vm0, %v2258_v46, %v2254_v48  ;;  %vm2268_vm2 = vmor %vm2266_vm3, %vm2267_vm15  ;;  %v2287_v54 = vand.u32 2147483648, %v2170_v18  ;;  %v2285_v17 = vand.u32 2147483647, %v2170_v18 }
 0x6cc   : > { %v2263_v57 = vsub.f32 1.0, %v2262_v52  ;;  %v3201_v33 = vmul.f32 0.17677669, %v3183_v58  ;;  %3977 = vpow2.f32 %v2880_v35  ;;  %v2260_v51 = vmul.f32 %v5698_v61, %v2259_v25 }
 0x6cd   : > { %vm2281_vm14 = vweird.f32 %v2170_v18  ;;  %v2288_v59 = vor.u32 1.1754944e-38, %v2287_v54  ;;  %vm6559_vm12 = vnez %v6509_v63  ;;  %3979 = vpow2.f32 %v2866_v26  ;;  %v6578_v26 = vld [vmem:[#allocation19_spill] sm:$0xff] }
 0x6ce   : > { %v2264_v9 = vmul.f32 %v3974_v24, %v2263_v57  ;;  %v5799_v49 = vsel %vm6431_vm11, %v3201_v33, -inf  ;;  %3726 = vmatmul.msk.f32.gmra.mxu1 %vm6553_vm8, %v2260_v51  ;;  %vm6562_vm15 = vnez %v6348_v2  ;;  %vm6563_vm8 = vmmov %vm6555_vm5  ;;  %v2868_v2 = vmul.f32 1.442695, %v2859_v14 }
 0x6cf   : > { %v3223_v1 = vsel %vm6554_vm1, %v5799_v49, -inf  ;;  %vm6564_vm1 = vmmov %vm6555_vm5 }
 0x6d0   : > { %v2265_v23 = vadd.f32 %v3974_v24, %v2264_v9  ;;  %3224 = vmax.xlane.f32.xlu0 %v3223_v1  ;;  %vm6565_vm3 = vmmov %vm6564_vm1  ;;  %3981 = vpow2.f32 %v2868_v2 }
 0x6d1   : > { %v3976_v20 = vpop.eup %3975 }
 0x6d2   : > { %v2277_v61 = vmul.f32 %v3976_v20, %v2170_v18  ;;  %v2269_v53 = vsel %vm2268_vm2, %v3974_v24, %v2265_v23  ;;  %v5804_v44 = vpop.eup %3977  ;;  %vm2282_vm11 = vweird.f32 %v3976_v20  ;;  %v6560_v18 = vld [vmem:[#allocation29_spill] sm:$0xff]  ;;  %vm6566_vm2 = vmmov %vm6557_vm10 }
 0x6d3   : > { %v3186_v5 = vpop.f32.mrf.mxu3  ;;  %v2274_v31 = vsel %vm2271_vm6, %v2273_v8, %v2269_v53  ;;  %v2903_v24 = vsel %vm6556_vm9, %v5804_v44, 0.0  ;;  %vm2283_vm4 = vmor %vm2281_vm14, %vm2282_vm11  ;;  %vm6561_vm0 = vcmp.eq.s32.totalorder %v6560_v18, 63  ;;  %v5845_v23 = vpop.eup %3979  ;;  %vm6568_vm11 = vnez %v6350_v22 }
 0x6d4   : > { %v2278_v40 = vsub.f32 1.0, %v2277_v61  ;;  %v3202_v41 = vmul.f32 0.17677669, %v3186_v5  ;;  %v2275_v11 = vmul.f32 %v5704_v13, %v2274_v31  ;;  %v2823_v13 = vmul.f32 0.17677669, %v5610_v45  ;;  %vm6567_vm6 = vmmov %vm6564_vm1 }
 0x6d5   : > { %v5827_v45 = vsel %vm6559_vm12, %v2824_v28, -inf  ;;  %v2860_v61 = vsub.f32 %v5675_v38, %v5773_v39  ;;  %vm6570_vm9 = vmmov %vm6564_vm1  ;;  %vm6572_vm14 = vnez %v6352_v4 }
 0x6d6   : > { %v2279_v32 = vmul.f32 %v3976_v20, %v2278_v40  ;;  %v5811_v35 = vsel %vm6433_vm7, %v3202_v41, -inf  ;;  %3727 = vmatmul.msk.f32.gmra.mxu1 %vm6555_vm5, %v2275_v11  ;;  %vm2286_vm7 = vcmp.eq.f32.partialorder %v2285_v17, 8.507059e+37  ;;  %v5823_v43 = vsel %vm6558_vm13, %v2823_v13, -inf  ;;  %vm6569_vm5 = vmmov %vm6566_vm2  ;;  %v6576_v13 = vld [vmem:[#allocation14_spill] sm:$0xff] }
 0x6d7   : > { %v3226_v46 = vsel %vm6557_vm10, %v5811_v35, -inf  ;;  %v2849_v63 = vsel %vm6565_vm3, %v5823_v43, -inf  ;;  %v2852_v55 = vsel %vm6567_vm6, %v5827_v45, -inf  ;;  %v2882_v40 = vsel %vm6570_vm9, %v5845_v23, 0.0  ;;  %vm6571_vm10 = vmmov %vm6564_vm1 }
 0x6d8   : > { %v2280_v52 = vadd.f32 %v3976_v20, %v2279_v32  ;;  %2904 = vadd.xlane.f32.xlu0 %v2903_v24  ;;  %3227 = vmax.xlane.f32.xlu2 %v3226_v46  ;;  %v2870_v11 = vmul.f32 1.442695, %v2860_v61  ;;  %v5857_v32 = vpop.eup %3981  ;;  %vm6575_vm13 = vmmov %vm6564_vm1 }
 0x6d9   : > { %vm6582_vm12 = vmmov %vm6566_vm2 }
 0x6da   : > { %v2284_v48 = vsel %vm2283_vm4, %v3976_v20, %v2280_v52  ;;  %3983 = vpow2.f32 %v2870_v11  ;;  %vm6573_vm4 = vmmov %vm6566_vm2  ;;  %v6577_v52 = vld [vmem:[#allocation5_spill] sm:$0xff] }
 0x6db   : > { %v3189_v58 = vpop.f32.mrf.mxu3  ;;  %v2289_v57 = vsel %vm2286_vm7, %v2288_v59, %v2284_v48  ;;  %vm6574_vm7 = vmmov %vm6564_vm1  ;;  %v1549_v28 = vadd.f32 %v6577_v52, %v6576_v13  ;;  %v6579_v48 = vld [vmem:[#allocation8_spill] sm:$0xff] }
 0x6dc   : > { %v3203_v33 = vmul.f32 0.17677669, %v3189_v58  ;;  %v2290_v25 = vmul.f32 %v5714_v34, %v2289_v57  ;;  %v2885_v17 = vsel %vm6574_vm7, %v5857_v32, 0.0  ;;  %v1552_v58 = vadd.f32 %v6579_v48, %v6578_v26  ;;  %v6587_v13 = vld [vmem:[#allocation40_spill] sm:$0xff]  ;;  %vm6601_vm7 = vmmov %vm6564_vm1 }
 0x6de   : > { %v2371_v51 = vsel %vm6561_vm0, %v2290_v25, 0.0  ;;  %v5835_v9 = vsel %vm6562_vm15, %v3203_v33, -inf  ;;  %3728 = vmatmul.msk.f32.gmra.mxu1 %vm6563_vm8, %v2290_v25  ;;  %vm6585_vm0 = vmmov %vm6566_vm2 }
 0x6df   : > { %v2385_v29 = vsel %vm6564_vm1, %v2371_v51, 0.0  ;;  %v3229_v34 = vsel %vm6566_vm2, %v5835_v9, -inf  ;;  %vm6588_vm15 = vmmov %vm6564_vm1 }
 0x6e0   : > { %v2387_v0 = vrot.slane %v2385_v29, 4  ;;  %2850 = vmax.xlane.f32.xlu0 %v2849_v63  ;;  %3230 = vmax.xlane.f32.xlu1 %v3229_v34  ;;  %v5868_v24 = vpop.eup %3983  ;;  %v6581_v63 = vld [vmem:[#allocation38_spill] sm:$0xff]  ;;  %vm6589_vm8 = vmmov %vm6585_vm0 }
 0x6e1   : > { %2853 = vmax.xlane.f32.xlu2 %v2852_v55  ;;  %v2888_v46 = vsel %vm6575_vm13, %v5868_v24, 0.0  ;;  %vm6592_vm3 = vmmov %vm6585_vm0 }
 0x6e2   : > { %v2388_v21 = vadd.f32 %v2387_v0, %v2385_v29  ;;  %v6580_v29 = vld [vmem:[#allocation15_spill] sm:$0xff]  ;;  %vm6595_vm6 = vmmov %vm6585_vm0 }
 0x6e3   : > { %v3192_v1 = vpop.f32.mrf.mxu3  ;;  %v1555_v34 = vadd.f32 %v6581_v63, %v6580_v29  ;;  %vm6602_vm13 = vmmov %vm6564_vm1 }
 0x6e4   : > { %v2389_v20 = vrot.slane %v2388_v21, 2  ;;  %v3204_v8 = vmul.f32 0.17677669, %v3192_v1 }
 0x6e6   : > { %v2390_v53 = vadd.f32 %v2389_v20, %v2388_v21  ;;  %v5851_v5 = vsel %vm6568_vm11, %v3204_v8, -inf  ;;  %v2861_v20 = vsub.f32 %v5688_v60, %v5784_v10 }
 0x6e7   : > { %v3232_v31 = vsel %vm6569_vm5, %v5851_v5, -inf }
 0x6e8   : > { %v2391_v41 = vrot.slane %v2390_v53, 1  ;;  %3233 = vmax.xlane.f32.xlu0 %v3232_v31  ;;  %2883 = vadd.xlane.f32.xlu1 %v2882_v40  ;;  %v2872_v61 = vmul.f32 1.442695, %v2861_v20  ;;  %v6584_v31 = vld [vmem:[#allocation39_spill] sm:$0xff] }
 0x6ea   : > { %v2392_v7 = vadd.f32 %v2391_v41, %v2390_v53  ;;  %v6583_v53 = vld [vmem:[#allocation17_spill] sm:$0xff]  ;;  %v2848_v41 = vpop.xlane.xlu1 %2847 }
 0x6eb   : > { %v3195_v54 = vpop.f32.mrf.mxu3  ;;  %v1558_v40 = vadd.f32 %v6584_v31, %v6583_v53  ;;  %v2862_v60 = vsub.f32 %v5712_v62, %v2848_v41  ;;  %v6593_v31 = vld [vmem:[#allocation11_spill] sm:$0xff] }
 0x6ec   : > { %v3205_v38 = vmul.f32 0.17677669, %v3195_v54  ;;  %3729 = vmatmul.msk.f32.vlgmr.msra.gmra.mxu1 %vm6571_vm10, %v2392_v7  ;;  %vm6598_vm10 = vcmp.eq.s32.totalorder %v6560_v18, 63 }
 0x6ee   : > { %v5862_v22 = vsel %vm6572_vm14, %v3205_v38, -inf  ;;  %vm6599_vm14 = vmmov %vm6585_vm0 }
 0x6ef   : > { %v3235_v39 = vsel %vm6573_vm4, %v5862_v22, -inf  ;;  %vm6600_vm4 = vmmov %vm6564_vm1 }
 0x6f0   : > { %3236 = vmax.xlane.f32.xlu0 %v3235_v39  ;;  %2886 = vadd.xlane.f32.xlu1 %v2885_v17  ;;  %v2874_v17 = vmul.f32 1.442695, %v2862_v60 }
 0x6f8   : > { %2889 = vadd.xlane.f32.xlu0 %v2888_v46  ;;  %v6586_v46 = vld [vmem:[#allocation28_spill] sm:$0xff] }
 0x6f9   : > { %v1561_v52 = vadd.f32 %v6587_v13, %v6586_v46 }
 0x723   : > { %v2332_v4 = vpop.f32.mrf.mxu1 }
 0x724   : > { %v5874_v59 = vadd.f32 %v2332_v4, %v1549_v28 }
 0x72b   : > { %v3216_v57 = vpop.xlane.xlu0 %3215  ;;  %v2335_v33 = vpop.f32.mrf.mxu1 }
 0x72c   : > { %v3238_v25 = vsub.f32 %v5768_v42, %v3216_v57  ;;  %v5879_v14 = vadd.f32 %v2335_v33, %v1552_v58 }
 0x72e   : > { %v3246_v51 = vmul.f32 1.442695, %v3238_v25  ;;  %v6590_v25 = vld [vmem:[#allocation22_spill] sm:$0xff] }
 0x730   : > { %3985 = vpow2.f32 %v3246_v51  ;;  %v6591_v51 = vld [vmem:[#allocation41_spill] sm:$0xff] }
 0x731   : > { %v1564_v29 = vadd.f32 %v6591_v51, %v6590_v25  ;;  %v6596_v25 = vld [vmem:[#allocation35_spill] sm:$0xff]  ;;  %v6597_v51 = vld [vmem:[#allocation25_spill] sm:$0xff] }
 0x733   : > { %v3219_v0 = vpop.xlane.xlu0 %3218  ;;  %v2338_v55 = vpop.f32.mrf.mxu1 }
 0x734   : > { %v3239_v2 = vsub.f32 %v5779_v6, %v3219_v0  ;;  %v5884_v21 = vadd.f32 %v2338_v55, %v1555_v34 }
 0x736   : > { %v5886_v1 = vpop.eup %3985  ;;  %v3248_v8 = vmul.f32 1.442695, %v3239_v2 }
 0x737   : > { %v3262_v42 = vsel %vm6582_vm12, %v5886_v1, 0.0 }
 0x738   : > { %3987 = vpow2.f32 %v3248_v8  ;;  %3263 = vadd.xlane.f32.xlu2 %v3262_v42 }
 0x739   : > { %3989 = vpow2.f32 %v2872_v61 }
 0x73b   : > { %v3222_v11 = vpop.xlane.xlu0 %3221  ;;  %v2341_v6 = vpop.f32.mrf.mxu1 }
 0x73c   : > { %v3240_v7 = vsub.f32 %v5791_v37, %v3222_v11  ;;  %v5895_v54 = vadd.f32 %v2341_v6, %v1558_v40  ;;  %v6594_v40 = vld [vmem:[#allocation42_spill] sm:$0xff] }
 0x73e   : > { %v5897_v38 = vpop.eup %3987  ;;  %v3250_v10 = vmul.f32 1.442695, %v3240_v7 }
 0x73f   : > { %v3265_v39 = vsel %vm6585_vm0, %v5897_v38, 0.0  ;;  %v5904_v4 = vpop.eup %3989 }
 0x740   : > { %3991 = vpow2.f32 %v3250_v10  ;;  %3266 = vadd.xlane.f32.xlu2 %v3265_v39  ;;  %v2891_v57 = vsel %vm6588_vm15, %v5904_v4, 0.0 }
 0x741   : > { %3993 = vpow2.f32 %v2874_v17 }
 0x743   : > { %v3225_v28 = vpop.xlane.xlu0 %3224  ;;  %v2344_v37 = vpop.f32.mrf.mxu1 }
 0x744   : > { %v3241_v26 = vsub.f32 %v5799_v49, %v3225_v28  ;;  %v5907_v48 = vadd.f32 %v2344_v37, %v1561_v52 }
 0x746   : > { %v5909_v58 = vpop.eup %3991  ;;  %v3252_v62 = vmul.f32 1.442695, %v3241_v26 }
 0x747   : > { %v3268_v33 = vsel %vm6589_vm8, %v5909_v58, 0.0  ;;  %v5917_v34 = vpop.eup %3993 }
 0x748   : > { %3995 = vpow2.f32 %v3252_v62  ;;  %2892 = vadd.xlane.f32.xlu2 %v2891_v57  ;;  %3269 = vadd.xlane.f32.xlu1 %v3268_v33  ;;  %v2894_v42 = vsel %vm6564_vm1, %v5917_v34, 0.0 }
 0x74b   : > { %v3228_v63 = vpop.xlane.xlu2 %3227  ;;  %v2905_v49 = vpop.xlane.xlu0 %2904 }
 0x74c   : > { %v3242_v0 = vsub.f32 %v5811_v35, %v3228_v63  ;;  %v2347_v55 = vpop.f32.mrf.mxu1  ;;  %3997 = vrcp.f32 %v2905_v49  ;;  %v1567_v35 = vadd.f32 %v6594_v40, %v6593_v31  ;;  %v3020_v46 = vand.u32 2147483647, %v2905_v49 }
 0x74d   : > { %v5920_v2 = vadd.f32 %v2347_v55, %v1564_v29  ;;  %v3022_v37 = vand.u32 2147483648, %v2905_v49  ;;  %vm3016_vm11 = vweird.f32 %v2905_v49  ;;  %v1570_v29 = vadd.f32 %v6597_v51, %v6596_v25 }
 0x74e   : > { %v5922_v20 = vpop.eup %3995  ;;  %v3254_v8 = vmul.f32 1.442695, %v3242_v0  ;;  %vm3021_vm9 = vcmp.eq.f32.partialorder %v3020_v46, 8.507059e+37 }
 0x74f   : > { %v3271_v61 = vsel %vm6592_vm3, %v5922_v20, 0.0  ;;  %vm6603_vm3 = vmmov %vm6600_vm4 }
 0x750   : > { %3999 = vpow2.f32 %v3254_v8  ;;  %2895 = vadd.xlane.f32.xlu1 %v2894_v42  ;;  %3272 = vadd.xlane.f32.xlu0 %v3271_v61 }
 0x752   : > { %v3998_v53 = vpop.eup %3997 }
 0x753   : > { %v3012_v41 = vmul.f32 %v3998_v53, %v2905_v49  ;;  %v3231_v11 = vpop.xlane.xlu1 %3230  ;;  %v2851_v6 = vpop.xlane.xlu0 %2850  ;;  %vm3017_vm2 = vweird.f32 %v3998_v53 }
 0x754   : > { %v3243_v7 = vsub.f32 %v5835_v9, %v3231_v11  ;;  %v2854_v60 = vpop.xlane.xlu2 %2853  ;;  %v2350_v10 = vpop.f32.mrf.mxu1  ;;  %v2863_v39 = vsub.f32 %v5823_v43, %v2851_v6  ;;  %vm3018_vm5 = vmor %vm3016_vm11, %vm3017_vm2 }
 0x755   : > { %v3013_v17 = vsub.f32 1.0, %v3012_v41  ;;  %v2864_v13 = vsub.f32 %v5827_v45, %v2854_v60  ;;  %v5933_v52 = vadd.f32 %v2350_v10, %v1567_v35  ;;  %v3023_v45 = vor.u32 1.1754944e-38, %v3022_v37  ;;  %vm6605_vm11 = vmmov %vm6585_vm0 }
 0x756   : > { %v5935_v28 = vpop.eup %3999  ;;  %v3256_v26 = vmul.f32 1.442695, %v3243_v7  ;;  %v2876_v62 = vmul.f32 1.442695, %v2863_v39 }
 0x757   : > { %v3014_v57 = vmul.f32 %v3998_v53, %v3013_v17  ;;  %v2878_v33 = vmul.f32 1.442695, %v2864_v13  ;;  %v3274_v9 = vsel %vm6595_vm6, %v5935_v28, 0.0  ;;  %vm6604_vm6 = vmmov %vm6603_vm3 }
 0x758   : > { %4001 = vpow2.f32 %v3256_v26  ;;  %3275 = vadd.xlane.f32.xlu2 %v3274_v9 }
 0x759   : > { %v3015_v43 = vadd.f32 %v3998_v53, %v3014_v57  ;;  %4003 = vpow2.f32 %v2878_v33 }
 0x75a   : > { %4005 = vpow2.f32 %v2876_v62 }
 0x75b   : > { %v3019_v63 = vsel %vm3018_vm5, %v3998_v53, %v3015_v43  ;;  %v2884_v0 = vpop.xlane.xlu1 %2883  ;;  %v3234_v55 = vpop.xlane.xlu0 %3233 }
 0x75c   : > { %v3024_v8 = vsel %vm3021_vm9, %v3023_v45, %v3019_v63  ;;  %4007 = vrcp.f32 %v2884_v0  ;;  %v2353_v42 = vpop.f32.mrf.mxu1  ;;  %v3244_v49 = vsub.f32 %v5851_v5, %v3234_v55  ;;  %v2915_v62 = vand.u32 2147483647, %v2884_v0 }
 0x75d   : > { %v5942_v61 = vmul.f32 %v5804_v44, %v3024_v8  ;;  %v5944_v31 = vadd.f32 %v2353_v42, %v1570_v29  ;;  %v2917_v57 = vand.u32 2147483648, %v2884_v0  ;;  %vm2911_vm15 = vweird.f32 %v2884_v0 }
 0x75e   : > { %v5947_v40 = vpop.eup %4001  ;;  %v3258_v41 = vmul.f32 1.442695, %v3244_v49  ;;  %vm2916_vm1 = vcmp.eq.f32.partialorder %v2915_v62, 8.507059e+37 }
 0x75f   : > { %v5949_v35 = vpop.eup %4003  ;;  %v3106_v53 = vsel %vm6598_vm10, %v5942_v61, 0.0  ;;  %v3277_v11 = vsel %vm6599_vm14, %v5947_v40, 0.0  ;;  %v2918_v55 = vor.u32 1.1754944e-38, %v2917_v57 }
 0x760   : > { %v5956_v6 = vpop.eup %4005  ;;  %v3120_v44 = vsel %vm6600_vm4, %v3106_v53, 0.0  ;;  %v2900_v7 = vsel %vm6601_vm7, %v5949_v35, 0.0  ;;  %3278 = vadd.xlane.f32.xlu1 %v3277_v11  ;;  %4009 = vpow2.f32 %v3258_v41  ;;  %vm6606_vm4 = vmmov %vm6603_vm3 }
 0x761   : > { %v3122_v5 = vrot.slane %v3120_v44, 4  ;;  %2901 = vadd.xlane.f32.xlu2 %v2900_v7  ;;  %v2897_v60 = vsel %vm6602_vm13, %v5956_v6, 0.0 }
 0x762   : > { %v4008_v18 = vpop.eup %4007  ;;  %2898 = vadd.xlane.f32.xlu0 %v2897_v60 }
 0x763   : > { %v3123_v10 = vadd.f32 %v3122_v5, %v3120_v44  ;;  %v2907_v39 = vmul.f32 %v4008_v18, %v2884_v0  ;;  %v2887_v17 = vpop.xlane.xlu1 %2886  ;;  %v3237_v46 = vpop.xlane.xlu0 %3236  ;;  %vm2912_vm12 = vweird.f32 %v4008_v18 }
 0x764   : > { %4011 = vrcp.f32 %v2887_v17  ;;  %v3245_v26 = vsub.f32 %v5862_v22, %v3237_v46  ;;  %vm2913_vm8 = vmor %vm2911_vm15, %vm2912_vm12  ;;  %v2932_v44 = vand.u32 2147483648, %v2887_v17  ;;  %v2930_v5 = vand.u32 2147483647, %v2887_v17 }
 0x765   : > { %v3124_v13 = vrot.slane %v3123_v10, 2  ;;  %v2908_v37 = vsub.f32 1.0, %v2907_v39  ;;  %vm2926_vm5 = vweird.f32 %v2887_v17 }
 0x766   : > { %v5964_v33 = vpop.eup %4009  ;;  %v3260_v45 = vmul.f32 1.442695, %v3245_v26  ;;  %vm2931_vm10 = vcmp.eq.f32.partialorder %v2930_v5, 8.507059e+37  ;;  %v4090_v5 = vld [vmem:[%s4196_s21] sm:$0xff] }
 0x767   : > { %v3125_v9 = vadd.f32 %v3124_v13, %v3123_v10  ;;  %v2909_v43 = vmul.f32 %v4008_v18, %v2908_v37  ;;  %v3280_v25 = vsel %vm6585_vm0, %v5964_v33, 0.0  ;;  %vm6607_vm0 = vmmov %vm6603_vm3 }
 0x768   : > { %4013 = vpow2.f32 %v3260_v45 }
 0x769   : > { %v2910_v51 = vadd.f32 %v4008_v18, %v2909_v43  ;;  %v3126_v29 = vrot.slane %v3125_v9, 1 }
 0x76a   : > { %v4012_v63 = vpop.eup %4011  ;;  %3281 = vadd.xlane.f32.xlu0 %v3280_v25 }
 0x76b   : > { %v2914_v22 = vsel %vm2913_vm8, %v4008_v18, %v2910_v51  ;;  %v2922_v8 = vmul.f32 %v4012_v63, %v2887_v17  ;;  %v2890_v42 = vpop.xlane.xlu0 %2889  ;;  %v3127_v49 = vadd.f32 %v3126_v29, %v3125_v9  ;;  %vm2927_vm2 = vweird.f32 %v4012_v63 }
 0x76c   : > { %v2919_v53 = vsel %vm2916_vm1, %v2918_v55, %v2914_v22  ;;  %4015 = vrcp.f32 %v2890_v42  ;;  %vm2928_vm9 = vmor %vm2926_vm5, %vm2927_vm2  ;;  %v2947_v62 = vand.u32 2147483648, %v2890_v42  ;;  %v2945_v9 = vand.u32 2147483647, %v2890_v42  ;;  %v4085_v22 = vld [vmem:[%s4196_s21 + $0x28] sm:$0xff] }
 0x76d   : > { %v2920_v41 = vmul.f32 %v5845_v23, %v2919_v53  ;;  %v2923_v11 = vsub.f32 1.0, %v2922_v8  ;;  %3748 = vmatmul.msk.f32.vlgmr.msra.gmra.mxu0 %vm6603_vm3, %v3127_v49  ;;  %v2933_v23 = vor.u32 1.1754944e-38, %v2932_v44  ;;  %vm2941_vm7 = vweird.f32 %v2890_v42  ;;  %v4087_v49 = vld [vmem:[%s4196_s21 + $0x18] sm:$0xff]  ;;  %v4089_v44 = vld [vmem:[%s4196_s21 + $0x8] sm:$0xff]  ;;  %vm6608_vm2 = vmmov %vm6605_vm11 }
 0x76e   : > { %v5970_v0 = vpop.eup %4013  ;;  %v2948_v43 = vor.u32 1.1754944e-38, %v2947_v62  ;;  %vm2946_vm12 = vcmp.eq.f32.partialorder %v2945_v9, 8.507059e+37  ;;  %v2770_v8 = vmul.f32 %v4085_v22, %v5143_v16  ;;  %v2768_v53 = vmul.f32 %v4087_v49, %v5143_v16 }
 0x76f   : > { %v2924_v7 = vmul.f32 %v4012_v63, %v2923_v11  ;;  %3740 = vmatmul.msk.f32.vlgmr.msrb.gmra.mxu1 %vm6604_vm6, %v2920_v41  ;;  %v3283_v60 = vsel %vm6605_vm11, %v5970_v0, 0.0  ;;  %v4088_v41 = vld [vmem:[%s4196_s21 + $0x10] sm:$0xff] }
 0x770   : > { %3284 = vadd.xlane.f32.xlu1 %v3283_v60  ;;  %v2767_v11 = vmul.f32 %v4088_v41, %v5143_v16  ;;  %v2765_v60 = vmul.f32 %v4090_v5, %v5143_v16 }
 0x771   : > { %v2925_v18 = vadd.f32 %v4012_v63, %v2924_v7  ;;  %v2766_v7 = vmul.f32 %v4089_v44, %v5143_v16 }
 0x772   : > { %v4016_v10 = vpop.eup %4015 }
 0x773   : > { %v2937_v39 = vmul.f32 %v4016_v10, %v2890_v42  ;;  %v2929_v46 = vsel %vm2928_vm9, %v4012_v63, %v2925_v18  ;;  %vm2942_vm14 = vweird.f32 %v4016_v10  ;;  %v4084_v63 = vld [vmem:[%s4196_s21 + $0x30] sm:$0xff]  ;;  %v4086_v42 = vld [vmem:[%s4196_s21 + $0x20] sm:$0xff] }
 0x774   : > { %v2934_v13 = vsel %vm2931_vm10, %v2933_v23, %v2929_v46  ;;  %vm2943_vm13 = vmor %vm2941_vm7, %vm2942_vm14  ;;  %v2771_v55 = vmul.f32 %v4084_v63, %v5143_v16 }
 0x775   : > { %v2938_v37 = vsub.f32 1.0, %v2937_v39  ;;  %v2935_v26 = vmul.f32 %v5857_v32, %v2934_v13  ;;  %v4083_v32 = vld [vmem:[%s4196_s21 + $0x38] sm:$0xff] }
 0x776   : > { %v2772_v29 = vmul.f32 %v4083_v32, %v5143_v16 }
 0x777   : > { %v2939_v57 = vmul.f32 %v4016_v10, %v2938_v37  ;;  %3741 = vmatmul.msk.f32.gmra.mxu1 %vm6606_vm4, %v2935_v26 }
 0x778   : > { %3438 = vmatpush.msrb.mxu0 %v2772_v29 }
 0x779   : > { %v2940_v17 = vadd.f32 %v4016_v10, %v2939_v57 }
 0x77a   : > { %3439 = vmatpush.msrb.mxu0 %v2771_v55 }
 0x77b   : > { %v2944_v45 = vsel %vm2943_vm13, %v4016_v10, %v2940_v17  ;;  %vm6613_vm13 = vmmov %vm6608_vm2 }
 0x77c   : > { %v2949_v25 = vsel %vm2946_vm12, %v2948_v43, %v2944_v45  ;;  %3440 = vmatpush.msrb.mxu0 %v2770_v8 }
 0x77d   : > { %v2950_v51 = vmul.f32 %v5868_v24, %v2949_v25  ;;  %v2769_v24 = vmul.f32 %v4086_v42, %v5143_v16 }
 0x77f   : > { %3742 = vmatmul.msk.f32.gmra.mxu1 %vm6607_vm0, %v2950_v51  ;;  %3441 = vmatpush.msrb.mxu0 %v2769_v24 }
 0x781   : > { %3442 = vmatpush.msrb.mxu0 %v2768_v53 }
 0x783   : > { %3443 = vmatpush.msrb.mxu0 %v2767_v11 }
 0x785   : > { %3444 = vmatpush.msrb.mxu0 %v2766_v7 }
 0x787   : > { %3445 = vmatpush.msrb.mxu0 %v2765_v60 }
 0x7ab   : > { %v3264_v18 = vpop.xlane.xlu2 %3263 }
 0x7ac   : > { %4017 = vrcp.f32 %v3264_v18  ;;  %v3297_v13 = vand.u32 2147483648, %v3264_v18  ;;  %v3295_v26 = vand.u32 2147483647, %v3264_v18  ;;  %vm3291_vm8 = vweird.f32 %v3264_v18 }
 0x7ae   : > { %v3298_v9 = vor.u32 1.1754944e-38, %v3297_v13  ;;  %vm3296_vm3 = vcmp.eq.f32.partialorder %v3295_v26, 8.507059e+37 }
 0x7b2   : > { %v4018_v10 = vpop.eup %4017 }
 0x7b3   : > { %v3287_v23 = vmul.f32 %v4018_v10, %v3264_v18  ;;  %v3267_v39 = vpop.xlane.xlu2 %3266  ;;  %vm3292_vm15 = vweird.f32 %v4018_v10 }
 0x7b4   : > { %4019 = vrcp.f32 %v3267_v39  ;;  %vm3293_vm1 = vmor %vm3291_vm8, %vm3292_vm15  ;;  %v3312_v55 = vand.u32 2147483648, %v3267_v39  ;;  %vm3306_vm11 = vweird.f32 %v3267_v39  ;;  %v3310_v8 = vand.u32 2147483647, %v3267_v39 }
 0x7b5   : > { %v3288_v46 = vsub.f32 1.0, %v3287_v23 }
 0x7b6   : > { %v3313_v44 = vor.u32 1.1754944e-38, %v3312_v55  ;;  %vm3311_vm9 = vcmp.eq.f32.partialorder %v3310_v8, 8.507059e+37 }
 0x7b7   : > { %v3289_v37 = vmul.f32 %v4018_v10, %v3288_v46 }
 0x7b9   : > { %v3290_v62 = vadd.f32 %v4018_v10, %v3289_v37 }
 0x7ba   : > { %v4020_v57 = vpop.eup %4019 }
 0x7bb   : > { %v3294_v17 = vsel %vm3293_vm1, %v4018_v10, %v3290_v62  ;;  %v3302_v16 = vmul.f32 %v4020_v57, %v3267_v39  ;;  %v2893_v43 = vpop.xlane.xlu2 %2892  ;;  %v3270_v45 = vpop.xlane.xlu1 %3269  ;;  %vm3307_vm6 = vweird.f32 %v4020_v57  ;;  %vm6614_vm1 = vcmask 130048  }
 0x7bc   : > { %v3299_v25 = vsel %vm3296_vm3, %v3298_v9, %v3294_v17  ;;  %4021 = vrcp.f32 %v2893_v43  ;;  %vm5997_vm5 = vmor %vm3306_vm11, %vm3307_vm6  ;;  %v2962_v18 = vand.u32 2147483648, %v2893_v43  ;;  %v2960_v23 = vand.u32 2147483647, %v2893_v43 }
 0x7bd   : > { %v3300_v51 = vmul.f32 %v5886_v1, %v3299_v25  ;;  %v3303_v32 = vsub.f32 1.0, %v3302_v16  ;;  %4023 = vrcp.f32 %v3270_v45  ;;  %vm2956_vm14 = vweird.f32 %v2893_v43 }
 0x7be   : > { %v3327_v37 = vand.u32 2147483648, %v3270_v45  ;;  %v3325_v9 = vand.u32 2147483647, %v3270_v45  ;;  %v2963_v16 = vor.u32 1.1754944e-38, %v2962_v18  ;;  %vm2961_vm12 = vcmp.eq.f32.partialorder %v2960_v23, 8.507059e+37 }
 0x7bf   : > { %v3304_v29 = vmul.f32 %v4020_v57, %v3303_v32  ;;  %3750 = vmatmul.msk.f32.vlgmr.msrb.gmra.mxu0 %vm6608_vm2, %v3300_v51  ;;  %vm3321_vm0 = vweird.f32 %v3270_v45  ;;  %vm905_vm6 = vcmp.eq.s32.totalorder %v4370_v12, 0 }
 0x7c0   : > { %v3328_v32 = vor.u32 1.1754944e-38, %v3327_v37  ;;  %vm3326_vm8 = vcmp.eq.f32.partialorder %v3325_v9, 8.507059e+37 }
 0x7c1   : > { %v3305_v63 = vadd.f32 %v4020_v57, %v3304_v29 }
 0x7c2   : > { %v4022_v22 = vpop.eup %4021 }
 0x7c3   : > { %v4024_v42 = vpop.eup %4023  ;;  %v2952_v49 = vmul.f32 %v4022_v22, %v2893_v43  ;;  %v6001_v53 = vpop.xlane.xlu1 %2895  ;;  %v3309_v11 = vsel %vm5997_vm5, %v4020_v57, %v3305_v63  ;;  %vm2957_vm10 = vweird.f32 %v4022_v22 }
 0x7c4   : > { %v6003_v1 = vpop.xlane.xlu0 %3272  ;;  %v3317_v41 = vmul.f32 %v4024_v42, %v3270_v45  ;;  %4025 = vrcp.f32 %v6001_v53  ;;  %v3314_v10 = vsel %vm3311_vm9, %v3313_v44, %v3309_v11  ;;  %vm6012_vm4 = vmor %vm2956_vm14, %vm2957_vm10  ;;  %vm3322_vm7 = vweird.f32 %v4024_v42 }
 0x7c5   : > { %v2953_v7 = vsub.f32 1.0, %v2952_v49  ;;  %4027 = vrcp.f32 %v6003_v1  ;;  %v3315_v46 = vmul.f32 %v5897_v38, %v3314_v10  ;;  %vm3323_vm15 = vmor %vm3321_vm0, %vm3322_vm7  ;;  %vm2971_vm11 = vweird.f32 %v6001_v53 }
 0x7c6   : > { %v3318_v5 = vsub.f32 1.0, %v3317_v41  ;;  %v3340_v10 = vand.u32 2147483647, %v6003_v1  ;;  %vm1624_vm10 = vcmp.eq.s32.totalorder %v4370_v12, 1 }
 0x7c7   : > { %v2954_v60 = vmul.f32 %v4022_v22, %v2953_v7  ;;  %3751 = vmatmul.msk.f32.gmra.mxu0 %vm6613_vm13, %v3315_v46  ;;  %v2975_v7 = vand.u32 2147483647, %v6001_v53 }
 0x7c8   : > { %v3319_v39 = vmul.f32 %v4024_v42, %v3318_v5  ;;  %v2977_v5 = vand.u32 2147483648, %v6001_v53 }
 0x7c9   : > { %v2955_v13 = vadd.f32 %v4022_v22, %v2954_v60  ;;  %vm2976_vm14 = vcmp.eq.f32.partialorder %v2975_v7, 8.507059e+37 }
 0x7ca   : > { %v6010_v26 = vpop.eup %4025  ;;  %v3320_v57 = vadd.f32 %v4024_v42, %v3319_v39 }
 0x7cb   : > { %v4028_v17 = vpop.eup %4027  ;;  %v2967_v25 = vmul.f32 %v6010_v26, %v6001_v53  ;;  %v6019_v38 = vpop.xlane.xlu2 %3275  ;;  %v2959_v43 = vsel %vm6012_vm4, %v4022_v22, %v2955_v13  ;;  %vm2972_vm3 = vweird.f32 %v6010_v26  ;;  %v2978_v13 = vor.u32 1.1754944e-38, %v2977_v5 }
 0x7cc   : > { %v3332_v51 = vmul.f32 %v4028_v17, %v6003_v1  ;;  %4029 = vrcp.f32 %v6019_v38  ;;  %v2964_v63 = vsel %vm2961_vm12, %v2963_v16, %v2959_v43  ;;  %v3324_v24 = vsel %vm3323_vm15, %v4024_v42, %v3320_v57  ;;  %vm6040_vm5 = vmor %vm2971_vm11, %vm2972_vm3 }
 0x7cd   : > { %v2968_v29 = vsub.f32 1.0, %v2967_v25  ;;  %v2965_v8 = vmul.f32 %v5904_v4, %v2964_v63  ;;  %v3329_v41 = vsel %vm3326_vm8, %v3328_v32, %v3324_v24  ;;  %v3342_v4 = vand.u32 2147483648, %v6003_v1  ;;  %v6617_v32 = vld [vmem:[#allocation36_spill] sm:$0xff]  ;;  %vm6621_vm8 = vmmov %vm6614_vm1 }
 0x7ce   : > { %v3333_v55 = vsub.f32 1.0, %v3332_v51  ;;  %v3330_v45 = vmul.f32 %v5909_v58, %v3329_v41  ;;  %vm3337_vm9 = vweird.f32 %v4028_v17  ;;  %vm3336_vm4 = vweird.f32 %v6003_v1  ;;  %vm6623_vm3 = vmmov %vm6608_vm2 }
 0x7cf   : > { %v2969_v49 = vmul.f32 %v6010_v26, %v2968_v29  ;;  %3743 = vmatmul.msk.f32.gmra.mxu1 %vm6614_vm1, %v2965_v8  ;;  %vm3338_vm7 = vmor %vm3336_vm4, %vm3337_vm9  ;;  %v3343_v37 = vor.u32 1.1754944e-38, %v3342_v4  ;;  %v3357_v57 = vand.u32 2147483648, %v6019_v38  ;;  %vm3341_vm12 = vcmp.eq.f32.partialorder %v3340_v10, 8.507059e+37 }
 0x7d0   : > { %v3334_v11 = vmul.f32 %v4028_v17, %v3333_v55  ;;  %3752 = vmatmul.msk.f32.gmra.mxu0 %vm6608_vm2, %v3330_v45  ;;  %v3355_v9 = vand.u32 2147483647, %v6019_v38  ;;  %vm3351_vm0 = vweird.f32 %v6019_v38  ;;  %v1627_v29 = vperm.slane %v6617_v32, 0  ;;  %v6622_v45 = vld [vmem:[#allocation37_spill] sm:$0xff] }
 0x7d1   : > { %v2970_v22 = vadd.f32 %v6010_v26, %v2969_v49  ;;  %v6620_v24 = vmov 0.0   ;;  %v2413_v49 = vpop.f32.mrf.mxu1  ;;  %vm2416_vm2 = vcmp.eq.s32.totalorder %v4370_v12, 2 }
 0x7d2   : > { %v4030_v44 = vpop.eup %4029  ;;  %v3335_v18 = vadd.f32 %v4028_v17, %v3334_v11  ;;  %vm3356_vm1 = vcmp.eq.f32.partialorder %v3355_v9, 8.507059e+37 }
 0x7d3   : > { %v3347_v42 = vmul.f32 %v4030_v44, %v6019_v38  ;;  %v6038_v58 = vpop.xlane.xlu1 %3278  ;;  %v2974_v46 = vsel %vm6040_vm5, %v6010_v26, %v2970_v22  ;;  %vm3352_vm13 = vweird.f32 %v4030_v44  ;;  %v3358_v38 = vor.u32 1.1754944e-38, %v3357_v57 }
 0x7d4   : > { %v6045_v23 = vpop.xlane.xlu2 %2901  ;;  %4031 = vrcp.f32 %v6038_v58  ;;  %v2979_v16 = vsel %vm2976_vm14, %v2978_v13, %v2974_v46  ;;  %v3339_v25 = vsel %vm3338_vm7, %v4028_v17, %v3335_v18  ;;  %vm6062_vm15 = vmor %vm3351_vm0, %vm3352_vm13  ;;  %v3703_v17 = vsel %vm1624_vm10, 1.0, %v6620_v24 }
 0x7d5   : > { %v3348_v53 = vsub.f32 1.0, %v3347_v42  ;;  %4033 = vrcp.f32 %v6045_v23  ;;  %v6050_v39 = vpop.xlane.xlu0 %2898  ;;  %v2980_v26 = vmul.f32 %v5917_v34, %v2979_v16  ;;  %v3344_v51 = vsel %vm3341_vm12, %v3343_v37, %v3339_v25  ;;  %vm6626_vm7 = vmmov %vm6623_vm3 }
 0x7d6   : > { %4035 = vrcp.f32 %v6050_v39  ;;  %v3345_v55 = vmul.f32 %v5922_v20, %v3344_v51  ;;  %v3684_v20 = vsel %vm905_vm6, 1.0, %v6620_v24  ;;  %v908_v22 = vperm.slane %v6622_v45, 0 }
 0x7d7   : > { %v3349_v62 = vmul.f32 %v4030_v44, %v3348_v53  ;;  %3744 = vmatmul.msk.f32.gmra.mxu1 %vm6621_vm8, %v2980_v26  ;;  %v1628_v60 = vmul.f32 %v3703_v17, %v1627_v29  ;;  %v2419_v18 = vperm.slane %v2413_v49, 0  ;;  %v3372_v46 = vand.u32 2147483648, %v6038_v58 }
 0x7d8   : > { %3753 = vmatmul.msk.f32.gmra.mxu0 %vm6623_vm3, %v3345_v55  ;;  %v909_v37 = vmul.f32 %v3684_v20, %v908_v22  ;;  %v3370_v57 = vand.u32 2147483647, %v6038_v58  ;;  %vm3366_vm11 = vweird.f32 %v6038_v58  ;;  %v2990_v29 = vand.u32 2147483647, %v6050_v39 }
 0x7d9   : > { %v3350_v43 = vadd.f32 %v4030_v44, %v3349_v62  ;;  %v3730_v62 = vsel %vm2416_vm2, 1.0, %v6620_v24  ;;  %v3373_v55 = vor.u32 1.1754944e-38, %v3372_v46  ;;  %vm3001_vm10 = vweird.f32 %v6045_v23 }
 0x7da   : > { %v4032_v1 = vpop.eup %4031  ;;  %v1629_v26 = vadd.f32 %v1628_v60, %v909_v37  ;;  %v2420_v63 = vmul.f32 %v3730_v62, %v2419_v18  ;;  %vm3371_vm14 = vcmp.eq.f32.partialorder %v3370_v57, 8.507059e+37  ;;  %vm2986_vm4 = vweird.f32 %v6050_v39 }
 0x7db   : > { %v6067_v8 = vpop.eup %4033  ;;  %v3362_v34 = vmul.f32 %v4032_v1, %v6038_v58  ;;  %v3354_v41 = vsel %vm6062_vm15, %v4030_v44, %v3350_v43  ;;  %vm3367_vm6 = vweird.f32 %v4032_v1  ;;  %v2992_v43 = vand.u32 2147483648, %v6050_v39 }
 0x7dc   : > { %v4036_v11 = vpop.eup %4035  ;;  %v2997_v7 = vmul.f32 %v6067_v8, %v6045_v23  ;;  %v3359_v44 = vsel %vm3356_vm1, %v3358_v38, %v3354_v41  ;;  %vm6095_vm5 = vmor %vm3366_vm11, %vm3367_vm6  ;;  %vm3151_vm13 = vcmp.eq.s32.totalorder %v4370_v12, 3  ;;  %vm3002_vm0 = vweird.f32 %v6067_v8 }
 0x7dd   : > { %v3363_v5 = vsub.f32 1.0, %v3362_v34  ;;  %v2982_v4 = vmul.f32 %v4036_v11, %v6050_v39  ;;  %v6085_v42 = vpop.xlane.xlu0 %3281  ;;  %v3360_v9 = vmul.f32 %v5935_v28, %v3359_v44  ;;  %vm2987_vm9 = vweird.f32 %v4036_v11  ;;  %vm6120_vm8 = vmor %vm3001_vm10, %vm3002_vm0 }
 0x7de   : > { %v2998_v10 = vsub.f32 1.0, %v2997_v7  ;;  %4037 = vrcp.f32 %v6085_v42  ;;  %vm2988_vm12 = vmor %vm2986_vm4, %vm2987_vm9  ;;  %v2993_v38 = vor.u32 1.1754944e-38, %v2992_v43  ;;  %vm2991_vm15 = vcmp.eq.f32.partialorder %v2990_v29, 8.507059e+37 }
 0x7df   : > { %v3364_v53 = vmul.f32 %v4032_v1, %v3363_v5  ;;  %v2983_v13 = vsub.f32 1.0, %v2982_v4  ;;  %v3005_v39 = vand.u32 2147483647, %v6045_v23  ;;  %v3007_v45 = vand.u32 2147483648, %v6045_v23  ;;  %vm6630_vm9 = vmmov %vm6626_vm7 }
 0x7e0   : > { %v2999_v51 = vmul.f32 %v6067_v8, %v2998_v10  ;;  %3754 = vmatmul.msk.f32.gmra.mxu0 %vm6626_vm7, %v3360_v9  ;;  %v3385_v5 = vand.u32 2147483647, %v6085_v42  ;;  %v3387_v4 = vand.u32 2147483648, %v6085_v42  ;;  %v2421_v10 = vadd.f32 %v2420_v63, %v1629_v26  ;;  %vm6632_vm0 = vmmov %vm6630_vm9 }
 0x7e1   : > { %v3365_v16 = vadd.f32 %v4032_v1, %v3364_v53  ;;  %v2984_v25 = vmul.f32 %v4036_v11, %v2983_v13  ;;  %vm6629_vm3 = vcmask 130048   ;;  %v3008_v23 = vor.u32 1.1754944e-38, %v3007_v45 }
 0x7e2   : > { %vm3381_vm2 = vweird.f32 %v6085_v42  ;;  %vm3006_vm6 = vcmp.eq.f32.partialorder %v3005_v39, 8.507059e+37  ;;  %v3388_v62 = vor.u32 1.1754944e-38, %v3387_v4  ;;  %vm3495_vm10 = vcmask 27648   ;;  %vm6631_vm7 = vmmov %vm6629_vm3 }
 0x7e3   : > { %v2985_v17 = vadd.f32 %v4036_v11, %v2984_v25  ;;  %v3369_v28 = vsel %vm6095_vm5, %v4032_v1, %v3365_v16  ;;  %v6105_v49 = vpop.xlane.xlu1 %3284  ;;  %v3000_v1 = vadd.f32 %v6067_v8, %v2999_v51  ;;  %vm3386_vm5 = vcmp.eq.f32.partialorder %v3385_v5, 8.507059e+37 }
 0x7e4   : > { %v4038_v58 = vpop.eup %4037  ;;  %4039 = vrcp.f32 %v6105_v49  ;;  %v3374_v41 = vsel %vm3371_vm14, %v3373_v55, %v3369_v28  ;;  %v3400_v43 = vand.u32 2147483647, %v6105_v49  ;;  %v3402_v26 = vand.u32 2147483648, %v6105_v49 }
 0x7e5   : > { %v3377_v34 = vmul.f32 %v4038_v58, %v6085_v42  ;;  %v2989_v20 = vsel %vm2988_vm12, %v4036_v11, %v2985_v17  ;;  %v3375_v60 = vmul.f32 %v5947_v40, %v3374_v41  ;;  %vm3382_vm1 = vweird.f32 %v4038_v58 }
 0x7e6   : > { %v2994_v7 = vsel %vm2991_vm15, %v2993_v38, %v2989_v20  ;;  %v3004_v53 = vsel %vm6120_vm8, %v6067_v8, %v3000_v1  ;;  %v3749_v40 = vsel %vm3151_vm13, 1.0, %v6620_v24  ;;  %vm3383_vm11 = vmor %vm3381_vm2, %vm3382_vm1  ;;  %vm3396_vm4 = vweird.f32 %v6105_v49 }
 0x7e7   : > { %v3378_v22 = vsub.f32 1.0, %v3377_v34  ;;  %v2995_v44 = vmul.f32 %v5956_v6, %v2994_v7  ;;  %v3009_v9 = vsel %vm3006_vm6, %v3008_v23, %v3004_v53  ;;  %v3403_v55 = vor.u32 1.1754944e-38, %v3402_v26  ;;  %vm6633_vm15 = vmmov %vm6629_vm3 }
 0x7e8   : > { %3755 = vmatmul.msk.f32.gmra.mxu0 %vm6630_vm9, %v3375_v60  ;;  %v3010_v29 = vmul.f32 %v5949_v35, %v3009_v9  ;;  %vm3401_vm12 = vcmp.eq.f32.partialorder %v3400_v43, 8.507059e+37  ;;  %vm6634_vm8 = vmmov %vm6632_vm0 }
 0x7e9   : > { %v3379_v11 = vmul.f32 %v4038_v58, %v3378_v22  ;;  %3745 = vmatmul.msk.f32.gmra.mxu1 %vm6629_vm3, %v2995_v44 }
 0x7ea   : > { %v3148_v46 = vpop.f32.mrf.mxu0  ;;  %v4040_v6 = vpop.eup %4039 }
 0x7eb   : > { %v3380_v13 = vadd.f32 %v4038_v58, %v3379_v11  ;;  %v3154_v37 = vperm.slane %v3148_v46, 0  ;;  %v3392_v8 = vmul.f32 %v4040_v6, %v6105_v49  ;;  %vm3397_vm14 = vweird.f32 %v4040_v6 }
 0x7ec   : > { %v3067_v12 = vpop.f32.mrf.mxu1  ;;  %vm3398_vm13 = vmor %vm3396_vm4, %vm3397_vm14 }
 0x7ed   : > { %v3384_v24 = vsel %vm3383_vm11, %v4038_v58, %v3380_v13  ;;  %v3155_v57 = vmul.f32 %v3749_v40, %v3154_v37  ;;  %v3091_v42 = vadd.f32 %v3067_v12, %v5874_v59  ;;  %v3393_v16 = vsub.f32 1.0, %v3392_v8 }
 0x7ee   : > { %v3389_v25 = vsel %vm3386_vm5, %v3388_v62, %v3384_v24 }
 0x7ef   : > { %v3156_v51 = vadd.f32 %v3155_v57, %v2421_v10  ;;  %3479 = vst [vmem:[%s6139_s28] sm:$0xff] %v3091_v42  ;;  %v3394_v32 = vmul.f32 %v4040_v6, %v3393_v16  ;;  %v3390_v59 = vmul.f32 %v5964_v33, %v3389_v25 }
 0x7f1   : > { %3496 = vst.msk [vmem:[%s409_s11] sm:$0xf] %vm3495_vm10, %v3156_v51  ;;  %v3395_v63 = vadd.f32 %v4040_v6, %v3394_v32  ;;  %3746 = vmatmul.msk.f32.gmra.mxu1 %vm6631_vm7, %v3010_v29  ;;  %3756 = vmatmul.msk.f32.gmra.mxu0 %vm6632_vm0, %v3390_v59 }
 0x7f3   : > { %v3399_v17 = vsel %vm3398_vm13, %v4040_v6, %v3395_v63 }
 0x7f4   : > { %v3070_v28 = vpop.f32.mrf.mxu1  ;;  %v3404_v35 = vsel %vm3401_vm12, %v3403_v55, %v3399_v17 }
 0x7f5   : > { %v3092_v58 = vadd.f32 %v3070_v28, %v5879_v14  ;;  %v3405_v33 = vmul.f32 %v5970_v0, %v3404_v35 }
 0x7f7   : > { %3480 = vst [vmem:[%s6139_s28 + $0x8] sm:$0xff] %v3092_v58 }
 0x7f9   : > { %3747 = vmatmul.msk.f32.gmra.mxu1 %vm6633_vm15, %v5942_v61  ;;  %3757 = vmatmul.msk.f32.gmra.mxu0 %vm6634_vm8, %v3405_v33 }
 0x7fc   : > { %v3073_v49 = vpop.f32.mrf.mxu1 }
 0x7fd   : > { %v3093_v38 = vadd.f32 %v3073_v49, %v5884_v21 }
 0x7ff   : > { %3481 = vst [vmem:[%s6139_s28 + $0x10] sm:$0xff] %v3093_v38 }
 0x83c   : > { %v3447_v14 = vpop.f32.mrf.mxu0 }
 0x83d   : > { %v3471_v0 = vadd.f32 %v3447_v14, %v5727_v19 }
 0x83f   : > { %3487 = vst [vmem:[%s6165_s14] sm:$0xff] %v3471_v0 }
 0x844   : > { %v3450_v61 = vpop.f32.mrf.mxu0 }
 0x845   : > { %v3472_v34 = vadd.f32 %v3450_v61, %v5731_v56 }
 0x847   : > { %3488 = vst [vmem:[%s6165_s14 + $0x8] sm:$0xff] %v3472_v34 }
 0x84c   : > { %v3076_v21 = vpop.f32.mrf.mxu1 }
 0x84d   : > { %v3094_v41 = vadd.f32 %v3076_v21, %v5895_v54  ;;  %v3453_v1 = vpop.f32.mrf.mxu0 }
 0x84e   : > { %v3473_v20 = vadd.f32 %v3453_v1, %v5734_v47 }
 0x84f   : > { %3482 = vst [vmem:[%s6139_s28 + $0x18] sm:$0xff] %v3094_v41 }
 0x850   : > { %3489 = vst [vmem:[%s6165_s14 + $0x10] sm:$0xff] %v3473_v20 }
 0x854   : > { %v3079_v39 = vpop.f32.mrf.mxu1 }
 0x855   : > { %v3095_v19 = vadd.f32 %v3079_v39, %v5907_v48  ;;  %v3456_v45 = vpop.f32.mrf.mxu0 }
 0x856   : > { %v3474_v22 = vadd.f32 %v3456_v45, %v5737_v27 }
 0x857   : > { %3483 = vst [vmem:[%s6139_s28 + $0x20] sm:$0xff] %v3095_v19 }
 0x858   : > { %3490 = vst [vmem:[%s6165_s14 + $0x18] sm:$0xff] %v3474_v22 }
 0x85d   : > { %v3459_v56 = vpop.f32.mrf.mxu0 }
 0x85e   : > { %v3475_v54 = vadd.f32 %v3459_v56, %v5740_v15  ;;  %v6635_v15 = vld [vmem:[#allocation26_spill] sm:$0xff] }
 0x85f   : > { %v2007_v18 = vadd.f32 %v6635_v15, %v5723_v36 }
 0x860   : > { %3491 = vst [vmem:[%s6165_s14 + $0x20] sm:$0xff] %v3475_v54 }
 0x865   : > { %v3462_v47 = vpop.f32.mrf.mxu0 }
 0x866   : > { %v3082_v7 = vpop.f32.mrf.mxu1  ;;  %v3476_v48 = vadd.f32 %v3462_v47, %v5745_v30 }
 0x867   : > { %v3096_v5 = vadd.f32 %v3082_v7, %v5920_v2  ;;  %v2743_v2 = vadd.f32 %v5758_v50, %v2007_v18 }
 0x868   : > { %3492 = vst [vmem:[%s6165_s14 + $0x28] sm:$0xff] %v3476_v48 }
 0x869   : > { %3484 = vst [vmem:[%s6139_s28 + $0x28] sm:$0xff] %v3096_v5 }
 0x86e   : > { %v3085_v4 = vpop.f32.mrf.mxu1  ;;  %v3465_v44 = vpop.f32.mrf.mxu0 }
 0x86f   : > { %v3097_v27 = vadd.f32 %v3085_v4, %v5933_v52  ;;  %v3477_v60 = vadd.f32 %v3465_v44, %v5750_v3 }
 0x871   : > { %3485 = vst [vmem:[%s6139_s28 + $0x30] sm:$0xff] %v3097_v27 }
 0x872   : > { %3493 = vst [vmem:[%s6165_s14 + $0x30] sm:$0xff] %v3477_v60 }
 0x876   : > { %v3088_v11 = vpop.f32.mrf.mxu1  ;;  %v3468_v53 = vpop.f32.mrf.mxu0 }
 0x877   : > { %v3098_v10 = vadd.f32 %v3088_v11, %v5944_v31  ;;  %v3478_v30 = vadd.f32 %v3468_v53, %v2743_v2 }
 0x879   : > { %3486 = vst [vmem:[%s6139_s28 + $0x38] sm:$0xff] %v3098_v10 }
 0x87a   : > { %3494 = vst [vmem:[%s6165_s14 + $0x38] sm:$0xff] %v3478_v30 }
 0x87b PF: > { %s21_s30 = sadd.s32 1, %s4116_s30  }
 0x87c   : > { %p18_p7 = scmp.ge.s32.totalorder %s21_s30, 4  }
 0x87e   :  { %20 = sbr.rel (!%p18_p7) target bundleno = 1 (0x1), region = 113 }
 0x883   :  { %3548 = vsyncpa [#allocation3], 1 }
 0x884   :  { %3550 = vsyncpa [#allocation3 + $0x1], 1 }

// kernel: nsa_forward.5
= control target key start
LH: loop header
LB: loop body
LE: loop exit
PB: predicated region body
PF: predicated region fallthrough
CT: control target
= control target key end

     0   :  { %s439_s12 = smov 0   ;;  %s479_s0 = inlined_call_operand.vmem [shape: f32[2,4,32], index: 0, kind: input, shape index: {}]   ;;  %s480_s1 = inlined_call_operand.vmem [shape: f32[2,32,32], index: 1, kind: input, shape index: {}]   ;;  %s481_s2 = inlined_call_operand.vmem [shape: f32[2,32,32], index: 2, kind: input, shape index: {}]   ;;  %s482_s3 = inlined_call_operand.vmem [shape: f32[2,4,32], index: 3, kind: output, shape index: {}]  }
   0x1 LB: > { %s378_s13 = sadd.s32 4294967295, %s417_s12   ;;  %p382_p0 = scmp.ge.s32.totalorder %s417_s12, 1  ;;  %s417_s12 = sphi %s439_s12, %s13_s12  }
   0x2   : > { %p156_p1 = scmp.lt.s32.totalorder %s417_s12, 3 }
   0x4   : > { %p157_p2 = pnand %p382_p0, %p156_p1 }
   0x5   : > { %p188_p3 = scmp.lt.s32.totalorder (!%p157_p2), %s378_s13, 1 }
   0x6   : > { %160 = sbr.rel (%p157_p2) target bundleno = 549 (0x225), region = 32 }
   0xb   : > { %s484_s13 = smov (!%p188_p3, %s378_s13), 1  ;;  %vm215_vm0 = vcmask 261120   ;;  %vm252_vm1 = vcmask 257024  }
   0xc   : > { %s397_s14 = sshll.u32 %s484_s13, 5  ;;  %s383_s18 = sshll.u32 %s484_s13, 2 }
   0xd   : > { %s196_s17 = scalar_lea.vmem %s480_s1, %s397_s14  ;;  %s191_s21 = scalar_lea.vmem %s479_s0, %s383_s18 }
   0xe   : > { %v210_v0 = vld [vmem:[%s196_s17 + $0x18] sm:$0xff]  ;;  %v209_v1 = vld [vmem:[%s196_s17 + $0x10] sm:$0xff]  ;;  %v208_v2 = vld [vmem:[%s196_s17 + $0x8] sm:$0xff]  ;;  %s201_s24 = scalar_lea.vmem %s481_s2, %s397_s14  ;;  %s205_s27 = scalar_lea.vmem %s482_s3, %s383_s18 }
   0xf   : > { %389 = vmatpush.xpose.msk.msra.mxu0 %vm215_vm0, %v210_v0  ;;  %v207_v3 = vld [vmem:[%s196_s17] sm:$0xff]  ;;  %v214_v13 = vld [vmem:[%s201_s24 + $0x18] sm:$0xff]  ;;  %v213_v14 = vld [vmem:[%s201_s24 + $0x10] sm:$0xff] }
  0x10   : > { %v206_v4 = vld [vmem:[%s191_s21] sm:$0xf]  ;;  %292 = vmatpush.msra.mxu1 %v214_v13  ;;  %v212_v15 = vld [vmem:[%s201_s24 + $0x8] sm:$0xff] }
  0x11   : > { %v211_v16 = vld [vmem:[%s201_s24] sm:$0xff] }
  0x12   : > { %293 = vmatpush.msra.mxu1 %v213_v14 }
  0x13   : > { %390 = vmatpush.xpose.msk.msra.mxu0 %vm215_vm0, %v209_v1 }
  0x14   : > { %294 = vmatpush.msra.mxu1 %v212_v15 }
  0x16   : > { %295 = vmatpush.msra.mxu1 %v211_v16 }
  0x17   : > { %391 = vmatpush.xpose.msk.msra.mxu0 %vm215_vm0, %v208_v2 }
  0x1b   : > { %392 = vmatpush.xpose.msk.msra.mxu0 %vm215_vm0, %v207_v3 }
  0x1e   : > { %393 = vmatmul.msk.f32.vlgmr.msra.gmra.mxu0 %vm215_vm0, %v206_v4 }
  0x9b   : > { %v248_v5 = vpop.f32.mrf.mxu0 }
  0x9c   : > { %v251_v6 = vmul.f32 0.17677669, %v248_v5 }
  0x9e   : > { %v253_v7 = vsel %vm252_vm1, %v251_v6, -inf }
  0x9f   : > { %254 = vmax.xlane.f32.xlu0 %v253_v7 }
 0x112   : > { %v255_v8 = vpop.xlane.xlu0 %254 }
 0x113   : > { %v256_v9 = vsub.f32 %v251_v6, %v255_v8 }
 0x115   : > { %v257_v10 = vmul.f32 1.442695, %v256_v9 }
 0x117   : > { %407 = vpow2.f32 %v257_v10 }
 0x11d   : > { %v408_v11 = vpop.eup %407 }
 0x11e   : > { %v259_v12 = vsel %vm252_vm1, %v408_v11, 0.0 }
 0x11f   : > { %260 = vadd.xlane.f32.xlu0 %v259_v12 }
 0x192   : > { %v261_v17 = vpop.xlane.xlu0 %260 }
 0x193   : > { %409 = vrcp.f32 %v261_v17  ;;  %v273_v21 = vand.u32 2147483648, %v261_v17  ;;  %v271_v23 = vand.u32 2147483647, %v261_v17  ;;  %vm267_vm3 = vweird.f32 %v261_v17 }
 0x195   : > { %v274_v25 = vor.u32 1.1754944e-38, %v273_v21  ;;  %vm272_vm5 = vcmp.eq.f32.partialorder %v271_v23, 8.507059e+37 }
 0x199   : > { %v410_v18 = vpop.eup %409 }
 0x19a   : > { %v263_v19 = vmul.f32 %v410_v18, %v261_v17  ;;  %vm268_vm2 = vweird.f32 %v410_v18 }
 0x19b   : > { %vm269_vm4 = vmor %vm267_vm3, %vm268_vm2 }
 0x19c   : > { %v264_v20 = vsub.f32 1.0, %v263_v19 }
 0x19e   : > { %v265_v22 = vmul.f32 %v410_v18, %v264_v20 }
 0x1a0   : > { %v266_v24 = vadd.f32 %v410_v18, %v265_v22 }
 0x1a2   : > { %v270_v26 = vsel %vm269_vm4, %v410_v18, %v266_v24 }
 0x1a3   : > { %v275_v27 = vsel %vm272_vm5, %v274_v25, %v270_v26 }
 0x1a4   : > { %v276_v28 = vmul.f32 %v408_v11, %v275_v27 }
 0x1a6   : > { %394 = vmatmul.msk.f32.vlgmr.msra.gmra.mxu1 %vm215_vm0, %v276_v28 }
 0x223   : > { %v297_v29 = vpop.f32.mrf.mxu1 }
 0x224   : > { %300 = vst.msk [vmem:[%s205_s27] sm:$0xf] %vm252_vm1, %v297_v29 }
 0x225 PF: > { %s13_s12 = sadd.s32 1, %s417_s12  }
 0x226   : > { %p10_p4 = scmp.ge.s32.totalorder %s13_s12, 4  }
 0x228   :  { %12 = sbr.rel (!%p10_p4) target bundleno = 1 (0x1), region = 68 }

</bundles_post_ra>
